<compile_context>
chip_gen: v7x
topology: tpu7x:2x2x1
jax: 0.10.0
libtpu: 0.0.40
codegen_flags: <defaults>
</compile_context>

<pallas_src>
import numpy as np
import jax
import jax.numpy as jnp
from jax.experimental import pallas as pl
from jax.experimental.pallas import tpu as pltpu


_BLUR_ATOM_TILE = 256      # atoms per grid step in the gaussian-blur kernel


# --------------------------------------------------------------------------
# Pallas kernels
# --------------------------------------------------------------------------
def _blur_kernel(lin18_ref, lu_ref, lvy_ref, lvz_ref, pos_ref, s_ref,
                 o_ref, acc_ref):
    """One atom tile of the separable gaussian blur.

    lin18_ref: (1, 18)      grid line pre-scaled by 1/(sqrt(2)*sigma_p).
    lu_ref:    (1, B*T*18)  lin repeated per output column c  (value lin[ix]).
    lvy_ref:   (1, 324)     lin[iy] at lane iy*18+iz.
    lvz_ref:   (1, 324)     lin[iz] at lane iy*18+iz.
    pos_ref:   (TILE, 3)    atom coords, same pre-scaling (padded rows = 0).
    s_ref:     (TILE, B*T*18) one-hot scatter expanded over ix (padded rows = 0).
    o_ref:     (B*T*18, 324) bf16 output, written once on the last tile.
    acc_ref:   (B*T*18, 324) f32 VMEM accumulator, resident across tiles.
    """
    px = pos_ref[:, 0:1]                       # (TILE, 1)
    py = pos_ref[:, 1:2]
    pz = pos_ref[:, 2:3]
    lin = lin18_ref[...]                       # (1, 18)

    # Per-atom normalizer: sum_g exp(-d2) factorizes into per-axis sums.
    ex = jnp.exp(-(px - lin) ** 2)             # (TILE, 18)
    ey = jnp.exp(-(py - lin) ** 2)
    ez = jnp.exp(-(pz - lin) ** 2)
    norm = (jnp.sum(ex, axis=1, keepdims=True)
            * jnp.sum(ey, axis=1, keepdims=True)
            * jnp.sum(ez, axis=1, keepdims=True))          # (TILE, 1)
    inv = pl.reciprocal(jnp.maximum(norm, 1e-20), approx=True)

    # Outer-product factors (all elementwise work is f32; only MXU sees bf16).
    u = s_ref[...] * (inv * jnp.exp(-(px - lu_ref[...]) ** 2))       # (TILE, CU)
    v = jnp.exp(-((py - lvy_ref[...]) ** 2 + (pz - lvz_ref[...]) ** 2))  # (TILE, 324)

    # fields[(c,ix),(iy,iz)] += sum_a u * v   (contraction over the atom axis).
    contrib = jax.lax.dot_general(
        u.astype(jnp.bfloat16), v.astype(jnp.bfloat16),
        dimension_numbers=(((0,), (0,)), ((), ())),
        preferred_element_type=jnp.float32)

    @pl.when(pl.program_id(0) == 0)
    def _():
        acc_ref[...] = jnp.zeros_like(acc_ref)

    acc_ref[...] += contrib

    @pl.when(pl.program_id(0) == pl.num_programs(0) - 1)
    def _():
        o_ref[...] = acc_ref[...].astype(o_ref.dtype)


def _conv_gemm_kernel(w_ref, x_ref, b_ref, t_ref, o_ref):
    """out = relu(W @ cols + b) + t, output-transposed (Cout rows, B*D*H*W lanes).

    w_ref: (Cout, Cin*k^3) bf16 (BN scale pre-folded), x_ref: (Cin*k^3, M) bf16,
    b_ref/t_ref: (Cout, 1) f32, o_ref: (Cout, M) f32.
    """
    y = jnp.dot(w_ref[...], x_ref[...], preferred_element_type=jnp.float32)
    o_ref[...] = jnp.maximum(y + b_ref[...], 0.0) + t_ref[...]


def _head_kernel(x_ref, w4_ref, b4_ref, t4_ref, w5_ref, b5_ref, o_ref):
    """Fused dense1 + ReLU + BN-shift + dense2 head.

    x_ref: (B, 4096) bf16, w4_ref: (4096, 128) bf16, b4/t4: (1, 128) f32,
    w5_ref: (128, 21) bf16, b5: (1, 21) f32, o_ref: (B, 21) f32.
    """
    h = jnp.dot(x_ref[...], w4_ref[...], preferred_element_type=jnp.float32)
    h = jnp.maximum(h + b4_ref[...], 0.0) + t4_ref[...]
    y = jnp.dot(h.astype(jnp.bfloat16), w5_ref[...],
                preferred_element_type=jnp.float32)
    o_ref[...] = y + b5_ref[...]


# --------------------------------------------------------------------------
# Pallas wrappers (each has a jnp "mirror" branch for tight self-checking)
# --------------------------------------------------------------------------
def gaussian_blur_fields(lin18, lin_u, lin_vy, lin_vz, pos_s, s_exp,
                         *, use_pallas=True):
    """Separable gaussian blur -> bf16 fields of shape (B*T*18, 324)."""
    lin18 = jnp.asarray(lin18, jnp.float32)
    lin_u = jnp.asarray(lin_u, jnp.float32)
    lin_vy = jnp.asarray(lin_vy, jnp.float32)
    lin_vz = jnp.asarray(lin_vz, jnp.float32)
    pos_s = jnp.asarray(pos_s, jnp.float32)
    s_exp = jnp.asarray(s_exp, jnp.float32)

    G18 = lin18.shape[1]
    CU = s_exp.shape[1]
    GV = lin_vy.shape[1]
    Np = pos_s.shape[0]

    if not use_pallas:                         # jnp mirror of the kernel math
        px, py, pz = pos_s[:, 0:1], pos_s[:, 1:2], pos_s[:, 2:3]
        ex = jnp.exp(-(px - lin18) ** 2)
        ey = jnp.exp(-(py - lin18) ** 2)
        ez = jnp.exp(-(pz - lin18) ** 2)
        norm = (ex.sum(1, keepdims=True) * ey.sum(1, keepdims=True)
                * ez.sum(1, keepdims=True))
        inv = 1.0 / jnp.maximum(norm, 1e-20)
        u = s_exp * (inv * jnp.exp(-(px - lin_u) ** 2))
        v = jnp.exp(-((py - lin_vy) ** 2 + (pz - lin_vz) ** 2))
        out = jax.lax.dot_general(
            u.astype(jnp.bfloat16), v.astype(jnp.bfloat16),
            dimension_numbers=(((0,), (0,)), ((), ())),
            preferred_element_type=jnp.float32)
        return out.astype(jnp.bfloat16)

    assert Np % _BLUR_ATOM_TILE == 0
    n_tiles = Np // _BLUR_ATOM_TILE
    return pl.pallas_call(
        _blur_kernel,
        out_shape=jax.ShapeDtypeStruct((CU, GV), jnp.bfloat16),
        grid=(n_tiles,),
        in_specs=[pl.BlockSpec((1, G18), lambda t: (0, 0)),
                  pl.BlockSpec((1, CU), lambda t: (0, 0)),
                  pl.BlockSpec((1, GV), lambda t: (0, 0)),
                  pl.BlockSpec((1, GV), lambda t: (0, 0)),
                  pl.BlockSpec((_BLUR_ATOM_TILE, 3), lambda t: (t, 0)),
                  pl.BlockSpec((_BLUR_ATOM_TILE, CU), lambda t: (t, 0))],
        out_specs=pl.BlockSpec((CU, GV), lambda t: (0, 0)),
        scratch_shapes=[pltpu.VMEM((CU, GV), jnp.float32)],
        compiler_params=pltpu.CompilerParams(
            dimension_semantics=("arbitrary",)),   # accumulates across atom tiles
    )(lin18, lin_u, lin_vy, lin_vz, pos_s, s_exp)


def im2col_cb(x, k, stride, pad):
    """x: (C, B, D, H, W) -> cols (C*k^3, B*Do*Ho*Wo).

    Row order (c, kz, ky, kx) matches torch Conv3d weight.reshape(Cout, -1);
    column order (b, do, ho, wo) matches the (C, B, D, H, W) activation layout,
    so consecutive conv layers need no activation transpose at all.
    """
    C, B, D, H, W = x.shape
    xp = jnp.pad(x, ((0, 0), (0, 0), (pad, pad), (pad, pad), (pad, pad)))
    Do = (D + 2 * pad - k) // stride + 1
    Ho = (H + 2 * pad - k) // stride + 1
    Wo = (W + 2 * pad - k) // stride + 1
    patches = []
    for dz in range(k):
        for dy in range(k):
            for dx in range(k):
                patches.append(xp[:, :,
                                  dz:dz + stride * (Do - 1) + 1:stride,
                                  dy:dy + stride * (Ho - 1) + 1:stride,
                                  dx:dx + stride * (Wo - 1) + 1:stride])
    p = jnp.stack(patches, axis=1)                      # (C, k^3, B, Do, Ho, Wo)
    return p.reshape(C * k * k * k, B * Do * Ho * Wo), (Do, Ho, Wo)


def conv3d_block(x_cb, w_bf, b_col, t_col, *, k, stride, pad, use_pallas=True):
    """x_cb: (Cin, B, D, H, W) -> (Cout, B, Do, Ho, Wo) f32."""
    B = x_cb.shape[1]
    cols, (Do, Ho, Wo) = im2col_cb(x_cb, k, stride, pad)
    cols = cols.astype(jnp.bfloat16)                    # MXU operand / halve DMA
    Cout, K = w_bf.shape
    M = cols.shape[1]
    if not use_pallas:
        y = jnp.dot(w_bf, cols, preferred_element_type=jnp.float32)
        y = jnp.maximum(y + b_col, 0.0) + t_col
    else:
        y = pl.pallas_call(
            _conv_gemm_kernel,
            out_shape=jax.ShapeDtypeStruct((Cout, M), jnp.float32),
            grid=(1,),
            in_specs=[pl.BlockSpec((Cout, K), lambda i: (0, 0)),
                      pl.BlockSpec((K, M), lambda i: (0, 0)),
                      pl.BlockSpec((Cout, 1), lambda i: (0, 0)),
                      pl.BlockSpec((Cout, 1), lambda i: (0, 0))],
            out_specs=pl.BlockSpec((Cout, M), lambda i: (0, 0)),
            compiler_params=pltpu.CompilerParams(
                dimension_semantics=("arbitrary",)),
        )(w_bf, cols, b_col, t_col)
    return y.reshape(Cout, B, Do, Ho, Wo)


def head_block(x, w4_bf, b4_row, t4_row, w5_bf, b5_row, *, use_pallas=True):
    """Fused dense1+ReLU+BN-shift+dense2.  x: (B, 4096) -> (B, 21) f32."""
    x = jnp.asarray(x).astype(jnp.bfloat16)
    Mb, K4 = x.shape
    N4 = w4_bf.shape[1]
    N5 = w5_bf.shape[1]
    if not use_pallas:
        h = jnp.dot(x, w4_bf, preferred_element_type=jnp.float32)
        h = jnp.maximum(h + b4_row, 0.0) + t4_row
        return jnp.dot(h.astype(jnp.bfloat16), w5_bf,
                       preferred_element_type=jnp.float32) + b5_row
    return pl.pallas_call(
        _head_kernel,
        out_shape=jax.ShapeDtypeStruct((Mb, N5), jnp.float32),
        grid=(1,),
        in_specs=[pl.BlockSpec((Mb, K4), lambda i: (0, 0)),
                  pl.BlockSpec((K4, N4), lambda i: (0, 0)),
                  pl.BlockSpec((1, N4), lambda i: (0, 0)),
                  pl.BlockSpec((1, N4), lambda i: (0, 0)),
                  pl.BlockSpec((N4, N5), lambda i: (0, 0)),
                  pl.BlockSpec((1, N5), lambda i: (0, 0))],
        out_specs=pl.BlockSpec((Mb, N5), lambda i: (0, 0)),
        compiler_params=pltpu.CompilerParams(
            dimension_semantics=("arbitrary",)),
    )(x, w4_bf, b4_row, t4_row, w5_bf, b5_row)


# --------------------------------------------------------------------------
# Parameters
# --------------------------------------------------------------------------
def init_params(key):
    """Random parameters in PyTorch layout: conv w (Cout, Cin, k, k, k); Linear
    stored as (in, out); BatchNorm in eval mode with identity running stats."""
    ks = jax.random.split(key, 10)

    def u(k, shape, fan_in):
        bnd = 1.0 / np.sqrt(fan_in)
        return jax.random.uniform(k, shape, jnp.float32, -bnd, bnd)

    eps = 1e-5

    def bn(n):
        scale = jnp.full((n,), 1.0 / np.sqrt(1.0 + eps), jnp.float32)
        shift = jnp.zeros((n,), jnp.float32)
        return scale, shift

    p = {}
    p['w1'] = u(ks[0], (16, 6, 3, 3, 3), 6 * 27)
    p['b1'] = u(ks[1], (16,), 6 * 27)
    p['s1'], p['t1'] = bn(16)
    p['w2'] = u(ks[2], (32, 16, 3, 3, 3), 16 * 27)
    p['b2'] = u(ks[3], (32,), 16 * 27)
    p['s2'], p['t2'] = bn(32)
    p['w3'] = u(ks[4], (64, 32, 3, 3, 3), 32 * 27)
    p['b3'] = u(ks[5], (64,), 32 * 27)
    p['s3'], p['t3'] = bn(64)
    p['w4'] = u(ks[6], (4096, 128), 4096)
    p['b4'] = u(ks[7], (128,), 4096)
    p['s4'], p['t4'] = bn(128)
    p['w5'] = u(ks[8], (128, 21), 128)
    p['b5'] = u(ks[9], (21,), 128)
    return p


def fold_params(p):
    """Fold BN scale into weights/bias (valid through ReLU since scale > 0),
    reshape conv weights to GEMM layout, and cast MXU operands to bf16."""
    def conv_fold(w, b, s, t):
        cout = w.shape[0]
        w2 = (w.reshape(cout, -1) * s[:, None]).astype(jnp.bfloat16)   # (Cout, Cin*k^3)
        return w2, (b * s).reshape(cout, 1), t.reshape(cout, 1)

    fp = {}
    fp['w1'], fp['b1'], fp['t1'] = conv_fold(p['w1'], p['b1'], p['s1'], p['t1'])
    fp['w2'], fp['b2'], fp['t2'] = conv_fold(p['w2'], p['b2'], p['s2'], p['t2'])
    fp['w3'], fp['b3'], fp['t3'] = conv_fold(p['w3'], p['b3'], p['s3'], p['t3'])
    fp['w4'] = (p['w4'] * p['s4'][None, :]).astype(jnp.bfloat16)
    fp['b4'] = (p['b4'] * p['s4']).reshape(1, -1)
    fp['t4'] = p['t4'].reshape(1, -1)
    fp['w5'] = p['w5'].astype(jnp.bfloat16)
    fp['b5'] = p['b5'].reshape(1, -1)
    return fp


# --------------------------------------------------------------------------
# Host glue reproducing the data-dependent grouping of _gaussian_blurring
# --------------------------------------------------------------------------
def build_blur_inputs(x_np, *, n_atom_types, grid_dim, bins_per_angstrom, sigma,
                      tile_np=_BLUR_ATOM_TILE):
    env = x_np[:, 0].astype(np.int64)
    atype = x_np[:, 1].astype(np.int64)
    pos = x_np[:, 2:5].astype(np.float32)                       # (N, 3)
    B = int(np.unique(env).shape[0])
    N = x_np.shape[0]
    T = n_atom_types
    sigma_p = sigma * bins_per_angstrom

    # Segment index of each atom within its atom type (exactly the destination
    # row i used by the reference fields_torch[i, j]).
    seg = np.zeros(N, dtype=np.int64)
    for j in range(T):
        idx = np.where(atype == j)[0]
        if idx.shape[0] == 0:
            continue
        e = env[idx]
        seg[idx] = np.concatenate([[0], np.cumsum(e[:-1] != e[1:])])

    lin = np.linspace(-grid_dim / 2 * bins_per_angstrom + bins_per_angstrom / 2,
                      grid_dim / 2 * bins_per_angstrom - bins_per_angstrom / 2,
                      grid_dim).astype(np.float32)
    xx, yy, zz = np.meshgrid(lin, lin, lin, indexing='ij')
    grid_raw = np.stack([xx.ravel(), yy.ravel(), zz.ravel()], 0).astype(np.float32)

    # ---- kernel-side arrays: pre-scaled coords so exp(-d2) == the reference
    #      exp(-|p-g|^2 / (2*sigma_p^2)), expressed in separable per-axis form;
    #      type-major columns so the blur output reshapes straight into the
    #      (C=T, B, D, H, W) conv layout. ---------------------------------------
    inv_s = np.float32(1.0 / (np.sqrt(2.0) * sigma_p))
    lin_s = (lin * inv_s).astype(np.float32)
    G18 = grid_dim
    BT = B * T
    CU = BT * G18
    GV = G18 * G18

    lin18 = lin_s.reshape(1, G18)
    lin_u = np.tile(lin_s, BT).reshape(1, CU)          # value lin[ix] at lane c*18+ix
    lin_vy = np.repeat(lin_s, G18).reshape(1, GV)      # value lin[iy] at lane iy*18+iz
    lin_vz = np.tile(lin_s, G18).reshape(1, GV)        # value lin[iz] at lane iy*18+iz

    Np = max(tile_np, int(np.ceil(N / tile_np)) * tile_np)      # pad atom count
    pos_k = np.zeros((Np, 3), np.float32)
    pos_k[:N] = pos * inv_s
    cols_k = atype * B + seg                                    # c = j*B + i
    s_exp = np.zeros((Np, CU), np.float32)                      # padded rows stay 0
    rows = np.repeat(np.arange(N), G18)
    colidx = (cols_k[:, None] * G18 + np.arange(G18)[None, :]).ravel()
    s_exp[rows, colidx] = 1.0

    # ---- reference-side arrays (unscaled, batch-major columns / NCDHW). -------
    cols_r = seg * T + atype                                    # c = i*T + j
    onehot_r = np.zeros((N, B * T), np.float32)
    onehot_r[np.arange(N), cols_r] = 1.0

    return dict(B=B, sigma_p=sigma_p,
                lin18=lin18, lin_u=lin_u, lin_vy=lin_vy, lin_vz=lin_vz,
                pos_k=pos_k, s_exp=s_exp,
                grid_raw=grid_raw, pos_raw=pos, onehot_r=onehot_r)


# --------------------------------------------------------------------------
# Forward passes
# --------------------------------------------------------------------------
def cavity_forward(fp, blur, *, n_atom_types=6, grid_dim=18, use_pallas=True):
    """Pallas forward (use_pallas=True) or its exact jnp mirror (False)."""
    B = blur['B']
    T = n_atom_types

    fields = gaussian_blur_fields(blur['lin18'], blur['lin_u'], blur['lin_vy'],
                                  blur['lin_vz'], blur['pos_k'], blur['s_exp'],
                                  use_pallas=use_pallas)        # (T*B*18, 324) bf16
    x = fields.reshape(T, B, grid_dim, grid_dim, grid_dim)      # free reshape -> CNDHW

    x = conv3d_block(x, fp['w1'], fp['b1'], fp['t1'], k=3, stride=2, pad=1,
                     use_pallas=use_pallas)                     # (16, B, 9, 9, 9)
    x = conv3d_block(x, fp['w2'], fp['b2'], fp['t2'], k=3, stride=2, pad=0,
                     use_pallas=use_pallas)                     # (32, B, 4, 4, 4)
    x = conv3d_block(x, fp['w3'], fp['b3'], fp['t3'], k=3, stride=1, pad=1,
                     use_pallas=use_pallas)                     # (64, B, 4, 4, 4)

    h = x.transpose(1, 0, 2, 3, 4).reshape(B, -1)               # torch Flatten (C,D,H,W)
    out = head_block(h, fp['w4'], fp['b4'], fp['t4'], fp['w5'], fp['b5'],
                     use_pallas=use_pallas)                     # (B, 21)
    return out


def reference_forward(params, blur, *, n_atom_types=6, grid_dim=18):
    """Independent f32 reference mirroring the PyTorch module structure
    (direct blur with divide, lax.conv_general_dilated in NCDHW, unfolded BN)."""
    B = blur['B']
    T = n_atom_types
    sigma_p = blur['sigma_p']
    hp = jax.lax.Precision.HIGHEST

    grid = jnp.asarray(blur['grid_raw'])                        # (3, G)
    pos = jnp.asarray(blur['pos_raw'])                          # (N, 3)
    oneh = jnp.asarray(blur['onehot_r'])                        # (N, B*T)
    d2 = ((grid[:, :, None] - pos.T[:, None, :]) ** 2).sum(0)   # (G, N)
    dens = jnp.exp(-d2 / (2.0 * sigma_p ** 2))
    dens = dens / dens.sum(0, keepdims=True)
    fields = jnp.dot(dens, oneh, precision=hp)                  # (G, B*T)
    x = fields.reshape(grid_dim, grid_dim, grid_dim, B, T).transpose(3, 4, 0, 1, 2)

    dn = ('NCDHW', 'OIDHW', 'NCDHW')

    def conv_bn(x, w, b, s, t, stride, pad):
        y = jax.lax.conv_general_dilated(
            x, w, window_strides=(stride,) * 3, padding=[(pad, pad)] * 3,
            dimension_numbers=dn, precision=hp)
        y = jnp.maximum(y + b[None, :, None, None, None], 0.0)
        return y * s[None, :, None, None, None] + t[None, :, None, None, None]

    x = conv_bn(x, params['w1'], params['b1'], params['s1'], params['t1'], 2, 1)
    x = conv_bn(x, params['w2'], params['b2'], params['s2'], params['t2'], 2, 0)
    x = conv_bn(x, params['w3'], params['b3'], params['s3'], params['t3'], 1, 1)
    x = x.reshape(B, -1)
    y = jnp.dot(x, params['w4'], precision=hp) + params['b4']
    y = jnp.maximum(y, 0.0) * params['s4'] + params['t4']
    return jnp.dot(y, params['w5'], precision=hp) + params['b5']


# --------------------------------------------------------------------------
if __name__ == "__main__":
    root = jax.random.PRNGKey(0)
    pkey, akey = jax.random.split(root)
    params = init_params(pkey)
    fparams = fold_params(params)

    # Synthetic atom tensor (n_atoms, 5): 2 environments, 6 atom types, 8 atoms each.
    B, T, A = 2, 6, 8
    coords = np.asarray(jax.random.uniform(akey, (B * T * A, 3), jnp.float32,
                                           -7.5, 7.5))
    env = np.repeat(np.arange(B), T * A)
    atype = np.tile(np.tile(np.arange(T), A), B)
    x_atoms = np.concatenate([env[:, None], atype[:, None], coords],
                             axis=1).astype(np.float32)

    blur = build_blur_inputs(x_atoms, n_atom_types=T, grid_dim=18,
                             bins_per_angstrom=1.0, sigma=0.6)

    out = cavity_forward(fparams, blur, n_atom_types=T, grid_dim=18,
                         use_pallas=True)
    out = jax.block_until_ready(out)
    assert out.shape == (B, 21), out.shape
    assert np.all(np.isfinite(np.asarray(out)))

    # Tight check: identical math (folded bf16 weights, bf16 MXU operands) run
    # with plain jnp ops (only difference: exact vs approx reciprocal).
    mirror = cavity_forward(fparams, blur, n_atom_types=T, grid_dim=18,
                            use_pallas=False)
    mirror = jax.block_until_ready(mirror)
    assert np.allclose(np.asarray(out), np.asarray(mirror), rtol=1e-2, atol=1e-2)

    # Loose check: independent f32 PyTorch-faithful reference (bf16 MXU operands
    # in the Pallas path account for the residual difference).
    ref = reference_forward(params, blur, n_atom_types=T, grid_dim=18)
    ref = jax.block_until_ready(ref)
    assert np.allclose(np.asarray(out), np.asarray(ref), rtol=5e-2, atol=5e-2)

    print("KERNEL_OK")
</pallas_src>

<mosaic_0001>
module attributes {stable_mosaic.version = 11 : i64} {
  func.func @_blur_kernel(%arg0: i32, %arg1: memref<1x18xf32, #tpu.memory_space<vmem>>, %arg2: memref<1x216xf32, #tpu.memory_space<vmem>>, %arg3: memref<1x324xf32, #tpu.memory_space<vmem>>, %arg4: memref<1x324xf32, #tpu.memory_space<vmem>>, %arg5: memref<256x3xf32, #tpu.memory_space<vmem>>, %arg6: memref<256x216xf32, #tpu.memory_space<vmem>>, %arg7: memref<216x324xbf16, #tpu.memory_space<vmem>>, %arg8: memref<216x324xf32, #tpu.memory_space<vmem>>) attributes {dimension_semantics = [#tpu.dimension_semantics<arbitrary>], iteration_bounds = array<i64: 1>, scalar_prefetch = 0 : i64, scratch_operands = 1 : i64, tpu.core_type = #tpu.core_type<tc>, window_params = [{pipeline_mode = #tpu.pipeline_mode<synchronous>, transform_indices = @transform_0, window_bounds = array<i64: 1, 18>}, {pipeline_mode = #tpu.pipeline_mode<synchronous>, transform_indices = @transform_1, window_bounds = array<i64: 1, 216>}, {pipeline_mode = #tpu.pipeline_mode<synchronous>, transform_indices = @transform_2, window_bounds = array<i64: 1, 324>}, {pipeline_mode = #tpu.pipeline_mode<synchronous>, transform_indices = @transform_3, window_bounds = array<i64: 1, 324>}, {transform_indices = @transform_4, window_bounds = array<i64: 256, 3>}, {transform_indices = @transform_5, window_bounds = array<i64: 256, 216>}, {pipeline_mode = #tpu.pipeline_mode<synchronous>, transform_indices = @transform_6, window_bounds = array<i64: 216, 324>}]} {
    %c0 = arith.constant 0 : index
    %c0_0 = arith.constant 0 : index
    %0 = vector.load %arg5[%c0, %c0_0] : memref<256x3xf32, #tpu.memory_space<vmem>>, vector<256x1xf32>
    %c0_1 = arith.constant 0 : index
    %c1 = arith.constant 1 : index
    %1 = vector.load %arg5[%c0_1, %c1] : memref<256x3xf32, #tpu.memory_space<vmem>>, vector<256x1xf32>
    %c0_2 = arith.constant 0 : index
    %c2 = arith.constant 2 : index
    %2 = vector.load %arg5[%c0_2, %c2] : memref<256x3xf32, #tpu.memory_space<vmem>>, vector<256x1xf32>
    %c0_3 = arith.constant 0 : index
    %c0_4 = arith.constant 0 : index
    %3 = vector.load %arg1[%c0_3, %c0_4] : memref<1x18xf32, #tpu.memory_space<vmem>>, vector<1x18xf32>
    %4 = vector.broadcast %0 : vector<256x1xf32> to vector<256x18xf32>
    %5 = vector.broadcast %3 : vector<1x18xf32> to vector<256x18xf32>
    %6 = arith.subf %4, %5 : vector<256x18xf32>
    %7 = arith.mulf %6, %6 : vector<256x18xf32>
    %cst = arith.constant 0.000000e+00 : f32
    %8 = vector.broadcast %cst : f32 to vector<256x18xf32>
    %9 = arith.subf %8, %7 : vector<256x18xf32>
    %10 = math.exp %9 : vector<256x18xf32>
    %11 = vector.broadcast %1 : vector<256x1xf32> to vector<256x18xf32>
    %12 = vector.broadcast %3 : vector<1x18xf32> to vector<256x18xf32>
    %13 = arith.subf %11, %12 : vector<256x18xf32>
    %14 = arith.mulf %13, %13 : vector<256x18xf32>
    %cst_5 = arith.constant 0.000000e+00 : f32
    %15 = vector.broadcast %cst_5 : f32 to vector<256x18xf32>
    %16 = arith.subf %15, %14 : vector<256x18xf32>
    %17 = math.exp %16 : vector<256x18xf32>
    %18 = vector.broadcast %2 : vector<256x1xf32> to vector<256x18xf32>
    %19 = vector.broadcast %3 : vector<1x18xf32> to vector<256x18xf32>
    %20 = arith.subf %18, %19 : vector<256x18xf32>
    %21 = arith.mulf %20, %20 : vector<256x18xf32>
    %cst_6 = arith.constant 0.000000e+00 : f32
    %22 = vector.broadcast %cst_6 : f32 to vector<256x18xf32>
    %23 = arith.subf %22, %21 : vector<256x18xf32>
    %24 = math.exp %23 : vector<256x18xf32>
    %cst_7 = arith.constant dense<0.000000e+00> : vector<256xf32>
    %25 = vector.multi_reduction <add>, %10, %cst_7 [1] : vector<256x18xf32> to vector<256xf32>
    %26 = vector.shape_cast %25 : vector<256xf32> to vector<256x1xf32>
    %cst_8 = arith.constant dense<0.000000e+00> : vector<256xf32>
    %27 = vector.multi_reduction <add>, %17, %cst_8 [1] : vector<256x18xf32> to vector<256xf32>
    %28 = vector.shape_cast %27 : vector<256xf32> to vector<256x1xf32>
    %29 = arith.mulf %26, %28 : vector<256x1xf32>
    %cst_9 = arith.constant dense<0.000000e+00> : vector<256xf32>
    %30 = vector.multi_reduction <add>, %24, %cst_9 [1] : vector<256x18xf32> to vector<256xf32>
    %31 = vector.shape_cast %30 : vector<256xf32> to vector<256x1xf32>
    %32 = arith.mulf %29, %31 : vector<256x1xf32>
    %cst_10 = arith.constant 9.99999968E-21 : f32
    %33 = vector.broadcast %cst_10 : f32 to vector<256x1xf32>
    %34 = arith.maximumf %32, %33 : vector<256x1xf32>
    %35 = tpu.reciprocal %34 {approx = true} : vector<256x1xf32> -> vector<256x1xf32>
    %c0_11 = arith.constant 0 : index
    %c0_12 = arith.constant 0 : index
    %36 = vector.load %arg6[%c0_11, %c0_12] : memref<256x216xf32, #tpu.memory_space<vmem>>, vector<256x216xf32>
    %c0_13 = arith.constant 0 : index
    %c0_14 = arith.constant 0 : index
    %37 = vector.load %arg2[%c0_13, %c0_14] : memref<1x216xf32, #tpu.memory_space<vmem>>, vector<1x216xf32>
    %38 = vector.broadcast %0 : vector<256x1xf32> to vector<256x216xf32>
    %39 = vector.broadcast %37 : vector<1x216xf32> to vector<256x216xf32>
    %40 = arith.subf %38, %39 : vector<256x216xf32>
    %41 = arith.mulf %40, %40 : vector<256x216xf32>
    %cst_15 = arith.constant 0.000000e+00 : f32
    %42 = vector.broadcast %cst_15 : f32 to vector<256x216xf32>
    %43 = arith.subf %42, %41 : vector<256x216xf32>
    %44 = math.exp %43 : vector<256x216xf32>
    %45 = vector.broadcast %35 : vector<256x1xf32> to vector<256x216xf32>
    %46 = arith.mulf %45, %44 : vector<256x216xf32>
    %47 = arith.mulf %36, %46 : vector<256x216xf32>
    %c0_16 = arith.constant 0 : index
    %c0_17 = arith.constant 0 : index
    %48 = vector.load %arg3[%c0_16, %c0_17] : memref<1x324xf32, #tpu.memory_space<vmem>>, vector<1x324xf32>
    %49 = vector.broadcast %1 : vector<256x1xf32> to vector<256x324xf32>
    %50 = vector.broadcast %48 : vector<1x324xf32> to vector<256x324xf32>
    %51 = arith.subf %49, %50 : vector<256x324xf32>
    %52 = arith.mulf %51, %51 : vector<256x324xf32>
    %c0_18 = arith.constant 0 : index
    %c0_19 = arith.constant 0 : index
    %53 = vector.load %arg4[%c0_18, %c0_19] : memref<1x324xf32, #tpu.memory_space<vmem>>, vector<1x324xf32>
    %54 = vector.broadcast %2 : vector<256x1xf32> to vector<256x324xf32>
    %55 = vector.broadcast %53 : vector<1x324xf32> to vector<256x324xf32>
    %56 = arith.subf %54, %55 : vector<256x324xf32>
    %57 = arith.mulf %56, %56 : vector<256x324xf32>
    %58 = arith.addf %52, %57 : vector<256x324xf32>
    %cst_20 = arith.constant 0.000000e+00 : f32
    %59 = vector.broadcast %cst_20 : f32 to vector<256x324xf32>
    %60 = arith.subf %59, %58 : vector<256x324xf32>
    %61 = math.exp %60 : vector<256x324xf32>
    %62 = arith.truncf %47 : vector<256x216xf32> to vector<256x216xbf16>
    %63 = arith.truncf %61 : vector<256x324xf32> to vector<256x324xbf16>
    %cst_21 = arith.constant dense<0.000000e+00> : vector<216x324xf32>
    %64 = tpu.matmul %62, %63, %cst_21 {dimension_numbers = #tpu.dot_dimension_numbers<[0], [0], [1], [1], [0, 1, 1, 1], [], []>} : vector<256x216xbf16>, vector<256x324xbf16>, vector<216x324xf32> -> vector<216x324xf32>
    %c0_i32 = arith.constant 0 : i32
    %65 = arith.cmpi eq, %arg0, %c0_i32 : i32
    %66 = arith.extui %65 : i1 to i32
    %c0_i32_22 = arith.constant 0 : i32
    %67 = arith.cmpi ne, %66, %c0_i32_22 : i32
    scf.if %67 {
      %cst_29 = arith.constant 0.000000e+00 : f32
      %74 = vector.broadcast %cst_29 : f32 to vector<216x324xf32>
      %c0_30 = arith.constant 0 : index
      %c0_31 = arith.constant 0 : index
      %75 = vector.load %arg8[%c0_30, %c0_31] : memref<216x324xf32, #tpu.memory_space<vmem>>, vector<216x324xf32>
      tpu.vector_store %arg8[%c0_30, %c0_31], %74 {strides = array<i32>} : memref<216x324xf32, #tpu.memory_space<vmem>>, vector<216x324xf32>,
    } else {
    }
    %c0_23 = arith.constant 0 : index
    %c0_24 = arith.constant 0 : index
    %68 = vector.load %arg8[%c0_23, %c0_24] : memref<216x324xf32, #tpu.memory_space<vmem>>, vector<216x324xf32>
    %69 = arith.addf %68, %64 : vector<216x324xf32>
    %c0_25 = arith.constant 0 : index
    %c0_26 = arith.constant 0 : index
    %70 = vector.load %arg8[%c0_25, %c0_26] : memref<216x324xf32, #tpu.memory_space<vmem>>, vector<216x324xf32>
    tpu.vector_store %arg8[%c0_25, %c0_26], %69 {strides = array<i32>} : memref<216x324xf32, #tpu.memory_space<vmem>>, vector<216x324xf32>,
    %c0_i32_27 = arith.constant 0 : i32
    %71 = arith.cmpi eq, %arg0, %c0_i32_27 : i32
    %72 = arith.extui %71 : i1 to i32
    %c0_i32_28 = arith.constant 0 : i32
    %73 = arith.cmpi ne, %72, %c0_i32_28 : i32
    scf.if %73 {
      %c0_29 = arith.constant 0 : index
      %c0_30 = arith.constant 0 : index
      %74 = vector.load %arg8[%c0_29, %c0_30] : memref<216x324xf32, #tpu.memory_space<vmem>>, vector<216x324xf32>
      %75 = arith.truncf %74 : vector<216x324xf32> to vector<216x324xbf16>
      %c0_31 = arith.constant 0 : index
      %c0_32 = arith.constant 0 : index
      %76 = vector.load %arg7[%c0_31, %c0_32] : memref<216x324xbf16, #tpu.memory_space<vmem>>, vector<216x324xbf16>
      tpu.vector_store %arg7[%c0_31, %c0_32], %75 {strides = array<i32>} : memref<216x324xbf16, #tpu.memory_space<vmem>>, vector<216x324xbf16>,
    } else {
    }
    return
  }
  func.func @transform_0(%arg0: i32) -> (i32, i32) {
    %c0_i32 = arith.constant 0 : i32
    %c0_i32_0 = arith.constant 0 : i32
    %c0_i32_1 = arith.constant 0 : i32
    return %c0_i32, %c0_i32_0 : i32, i32
  }
  func.func @transform_1(%arg0: i32) -> (i32, i32) {
    %c0_i32 = arith.constant 0 : i32
    %c0_i32_0 = arith.constant 0 : i32
    %c0_i32_1 = arith.constant 0 : i32
    return %c0_i32, %c0_i32_0 : i32, i32
  }
  func.func @transform_2(%arg0: i32) -> (i32, i32) {
    %c0_i32 = arith.constant 0 : i32
    %c0_i32_0 = arith.constant 0 : i32
    %c0_i32_1 = arith.constant 0 : i32
    return %c0_i32, %c0_i32_0 : i32, i32
  }
  func.func @transform_3(%arg0: i32) -> (i32, i32) {
    %c0_i32 = arith.constant 0 : i32
    %c0_i32_0 = arith.constant 0 : i32
    %c0_i32_1 = arith.constant 0 : i32
    return %c0_i32, %c0_i32_0 : i32, i32
  }
  func.func @transform_4(%arg0: i32) -> (i32, i32) {
    %c0_i32 = arith.constant 0 : i32
    %c0_i32_0 = arith.constant 0 : i32
    return %arg0, %c0_i32 : i32, i32
  }
  func.func @transform_5(%arg0: i32) -> (i32, i32) {
    %c0_i32 = arith.constant 0 : i32
    %c0_i32_0 = arith.constant 0 : i32
    return %arg0, %c0_i32 : i32, i32
  }
  func.func @transform_6(%arg0: i32) -> (i32, i32) {
    %c0_i32 = arith.constant 0 : i32
    %c0_i32_0 = arith.constant 0 : i32
    %c0_i32_1 = arith.constant 0 : i32
    return %c0_i32, %c0_i32_0 : i32, i32
  }
}

</mosaic_0001>

<bundles_post_ra>
// kernel: tpu_custom_call.1
= control target key start
LH: loop header
LB: loop body
LE: loop exit
PB: predicated region body
PF: predicated region fallthrough
CT: control target
= control target key end

     0   :  { %v4773_v2 = vmov 0   ;;  %s7459_s0 = inlined_call_operand.vmem [shape: f32[1,18], index: 0, kind: input, shape index: {}]   ;;  %s7460_s1 = inlined_call_operand.vmem [shape: f32[1,216], index: 1, kind: input, shape index: {}]   ;;  %s7461_s2 = inlined_call_operand.vmem [shape: f32[1,324], index: 2, kind: input, shape index: {}]   ;;  %s7462_s3 = inlined_call_operand.vmem [shape: f32[1,324], index: 3, kind: input, shape index: {}]   ;;  %s7463_s4 = inlined_call_operand.vmem [shape: f32[256,3], index: 4, kind: input, shape index: {}]   ;;  %s7464_s5 = inlined_call_operand.vmem [shape: f32[256,216], index: 5, kind: input, shape index: {}]   ;;  %s7465_s6 = inlined_call_operand.hbm [shape: bf16[216,324], index: 6, kind: output, shape index: {}]  }
   0x1   :  { %v4818_v0 = vld [vmem:[%s7463_s4 + $0x10] sm:$0xff]  ;;  %v4823_v1 = vld [vmem:[%s7463_s4] sm:$0xff]  ;;  %4137 = vset.pattern.permute.xlu1 %v4773_v2  ;;  %4136 = vset.pattern.permute.xlu0 %v4773_v2  ;;  %v4832_v3 = vld [vmem:[%s7463_s4 + $0x18] sm:$0xff] }
   0x2   :  { %70 = vperm.xlu1 %4137, %v4818_v0   ;;  %60 = vperm.xlu0 %4136, %v4823_v1   ;;  %v4837_v4 = vld [vmem:[%s7463_s4 + $0x8] sm:$0xff]  ;;  %v4849_v6 = vld [vmem:[%s7463_s4 + $0x20] sm:$0xff]  ;;  %v4856_v7 = vld [vmem:[%s7463_s4 + $0x38] sm:$0xff] }
   0x3   :  { %v4844_v5 = vld [vmem:[%s7463_s4 + $0x28] sm:$0xff]  ;;  %v4861_v8 = vld [vmem:[%s7463_s4 + $0x30] sm:$0xff] }
   0x6   :  { %75 = vperm.xlu1 %4137, %v4832_v3   ;;  %65 = vperm.xlu0 %4136, %v4837_v4  }
   0xa   :  { %85 = vperm.xlu1 %4137, %v4844_v5   ;;  %80 = vperm.xlu0 %4136, %v4849_v6  }
   0xb   :  { %11 = vsyncpa [#allocation4], 0  ;;  %v4868_v9 = vld [vmem:[%s7463_s4 + $0x48] sm:$0xff]  ;;  %v4873_v10 = vld [vmem:[%s7463_s4 + $0x40] sm:$0xff]  ;;  %v4774_v30 = vmov 1   ;;  %v4775_v32 = vmov 2  }
   0xc   :  { %v4880_v11 = vld [vmem:[%s7463_s4 + $0x58] sm:$0xff]  ;;  %v4885_v12 = vld [vmem:[%s7463_s4 + $0x50] sm:$0xff]  ;;  %v4892_v13 = vld [vmem:[%s7463_s4 + $0x68] sm:$0xff]  ;;  %vm960_vm0 = vcmask 146432   ;;  %vm3168_vm1 = vcmask 556032   ;;  %vm3850_vm2 = vcmask 551936  }
   0xd   :  { %v4897_v14 = vld [vmem:[%s7463_s4 + $0x60] sm:$0xff]  ;;  %v4904_v15 = vld [vmem:[%s7463_s4 + $0x78] sm:$0xff]  ;;  %v4909_v16 = vld [vmem:[%s7463_s4 + $0x70] sm:$0xff] }
   0xe   :  { %95 = vperm.xlu1 %4137, %v4856_v7   ;;  %90 = vperm.xlu0 %4136, %v4861_v8   ;;  %v42_v17 = vld [vmem:[%s7463_s4 + $0x88] sm:$0xff]  ;;  %v41_v18 = vld [vmem:[%s7463_s4 + $0x80] sm:$0xff]  ;;  %v44_v19 = vld [vmem:[%s7463_s4 + $0x98] sm:$0xff] }
   0xf   :  { %v43_v20 = vld [vmem:[%s7463_s4 + $0x90] sm:$0xff]  ;;  %v4928_v21 = vld [vmem:[%s7463_s4 + $0xa8] sm:$0xff]  ;;  %v45_v22 = vld [vmem:[%s7463_s4 + $0xa0] sm:$0xff] }
  0x10   :  { %v4937_v23 = vld [vmem:[%s7463_s4 + $0xb8] sm:$0xff]  ;;  %v4942_v24 = vld [vmem:[%s7463_s4 + $0xb0] sm:$0xff]  ;;  %v4949_v25 = vld [vmem:[%s7463_s4 + $0xc8] sm:$0xff] }
  0x11   :  { %v4954_v26 = vld [vmem:[%s7463_s4 + $0xc0] sm:$0xff]  ;;  %v4961_v27 = vld [vmem:[%s7463_s4 + $0xd8] sm:$0xff]  ;;  %v4966_v28 = vld [vmem:[%s7463_s4 + $0xd0] sm:$0xff] }
  0x12   :  { %105 = vperm.xlu1 %4137, %v4868_v9   ;;  %100 = vperm.xlu0 %4136, %v4873_v10   ;;  %v4973_v29 = vld [vmem:[%s7463_s4 + $0xe0] sm:$0xff]  ;;  %v4980_v31 = vld [vmem:[%s7463_s4 + $0xf8] sm:$0xff]  ;;  %v5000_v33 = vld [vmem:[%s7463_s4 + $0xe8] sm:$0xff] }
  0x13   :  { %v55_v35 = vld [vmem:[%s7463_s4 + $0xf0] sm:$0xff]  ;;  %v5107_v55 = vld [vmem:[%s7459_s0] ss:$0 sm:$0xff] }
  0x16   :  { %115 = vperm.xlu1 %4137, %v4880_v11   ;;  %110 = vperm.xlu0 %4136, %v4885_v12  }
  0x1a   :  { %125 = vperm.xlu1 %4137, %v4892_v13   ;;  %120 = vperm.xlu0 %4136, %v4897_v14  }
  0x1e   :  { %135 = vperm.xlu1 %4137, %v4904_v15   ;;  %130 = vperm.xlu0 %4136, %v4909_v16  }
  0x22   :  { %145 = vperm.xlu1 %4137, %v42_v17   ;;  %140 = vperm.xlu0 %4136, %v41_v18  }
  0x26   :  { %155 = vperm.xlu1 %4137, %v44_v19   ;;  %150 = vperm.xlu0 %4136, %v43_v20  }
  0x2a   :  { %165 = vperm.xlu1 %4137, %v4928_v21   ;;  %160 = vperm.xlu0 %4136, %v45_v22  }
  0x2e   :  { %175 = vperm.xlu1 %4137, %v4937_v23   ;;  %170 = vperm.xlu0 %4136, %v4942_v24  }
  0x32   :  { %185 = vperm.xlu1 %4137, %v4949_v25   ;;  %180 = vperm.xlu0 %4136, %v4954_v26  }
  0x36   :  { %195 = vperm.xlu1 %4137, %v4961_v27   ;;  %190 = vperm.xlu0 %4136, %v4966_v28  }
  0x3a   :  { %4138 = vset.pattern.permute.xlu1 %v4774_v30  ;;  %200 = vperm.xlu0 %4136, %v4973_v29  }
  0x3b   :  { %453 = vperm.xlu1 %4138, %v42_v17  }
  0x3e   :  { %215 = vperm.xlu0 %4136, %v4980_v31  }
  0x3f   :  { %385 = vperm.xlu1 %4138, %v4823_v1  }
  0x42   :  { %4164 = vset.pattern.permute.xlu0 %v4774_v30 }
  0x43   :  { %457 = vperm.xlu1 %4138, %v43_v20   ;;  %449 = vperm.xlu0 %4164, %v41_v18  }
  0x47   :  { %4139 = vset.pattern.permute.xlu1 %v4775_v32  ;;  %389 = vperm.xlu0 %4164, %v4837_v4  }
  0x48   :  { %737 = vperm.xlu1 %4139, %v41_v18  }
  0x4b   :  { %461 = vperm.xlu0 %4164, %v44_v19  }
  0x4c   :  { %4140 = vset.pattern.permute.xlu1 %v4774_v30 }
  0x4d   :  { %393 = vperm.xlu1 %4140, %v4818_v0  }
  0x4f   :  { %465 = vperm.xlu0 %4164, %v45_v22  }
  0x51   :  { %397 = vperm.xlu1 %4140, %v4832_v3  }
  0x53   :  { %473 = vperm.xlu0 %4164, %v4942_v24  }
  0x55   :  { %4141 = vset.pattern.permute.xlu1 %v4775_v32 }
  0x56   :  { %677 = vperm.xlu1 %4141, %v4837_v4  }
  0x57   :  { %481 = vperm.xlu0 %4164, %v4954_v26  }
  0x5a   :  { %4142 = vset.pattern.permute.xlu1 %v4774_v30 }
  0x5b   :  { %469 = vperm.xlu1 %4142, %v4928_v21   ;;  %489 = vperm.xlu0 %4164, %v4966_v28  }
  0x5f   :  { %4143 = vset.pattern.permute.xlu1 %v4775_v32  ;;  %501 = vperm.xlu0 %4164, %v5000_v33  }
  0x60   :  { %745 = vperm.xlu1 %4143, %v43_v20  }
  0x63   :  { %433 = vperm.xlu0 %4164, %v4897_v14  }
  0x64   :  { %4144 = vset.pattern.permute.xlu1 %v4774_v30 }
  0x65   :  { %401 = vperm.xlu1 %4144, %v4849_v6  }
  0x67   :  { %445 = vperm.xlu0 %4164, %v4904_v15  }
  0x69   :  { %405 = vperm.xlu1 %4144, %v4844_v5  }
  0x6b   :  { %4168 = vset.pattern.permute.xlu0 %v4775_v32 }
  0x6c   :  { %741 = vperm.xlu0 %4168, %v42_v17   ;;  %v1443_v17 = vlaneseq }
  0x6d   :  { %4145 = vset.pattern.permute.xlu1 %v4775_v32 }
  0x6e   :  { %685 = vperm.xlu1 %4145, %v4832_v3  }
  0x70   :  { %673 = vperm.xlu0 %4168, %v4823_v1  }
  0x72   :  { %4146 = vset.pattern.permute.xlu1 %v4774_v30 }
  0x73   :  { %477 = vperm.xlu1 %4146, %v4937_v23  }
  0x74   :  { %749 = vperm.xlu0 %4168, %v44_v19  }
  0x77   :  { %4147 = vset.pattern.permute.xlu1 %v4775_v32 }
  0x78   :  { %753 = vperm.xlu1 %4147, %v45_v22   ;;  %681 = vperm.xlu0 %4168, %v4818_v0  }
  0x7c   :  { %4148 = vset.pattern.permute.xlu1 %v4774_v30  ;;  %757 = vperm.xlu0 %4168, %v4928_v21  }
  0x7d   :  { %409 = vperm.xlu1 %4148, %v4861_v8  }
  0x80   :  { %689 = vperm.xlu0 %4168, %v4849_v6  }
  0x81   :  { %413 = vperm.xlu1 %4148, %v4856_v7   ;;  %v5035_v34 = vpop.permute.xlu0 %60  ;;  %v5051_v38 = vpop.permute.xlu1 %70 }
  0x82   :  { %7545 = vst [vmem:[#allocation6_spill] sm:$0xff] %v5035_v34  ;;  %7548 = vst [vmem:[#allocation9_spill] sm:$0xff] %v5051_v38  ;;  %v226_v3 = vsub.f32 %v5051_v38, %v5107_v55  ;;  %v224_v4 = vsub.f32 %v5035_v34, %v5107_v55 }
  0x84   :  { %765 = vperm.xlu0 %4168, %v4937_v23  }
  0x85   :  { %4149 = vset.pattern.permute.xlu1 %v4775_v32  ;;  %v5042_v36 = vpop.permute.xlu0 %65  ;;  %v5057_v40 = vpop.permute.xlu1 %75 }
  0x86   :  { %693 = vperm.xlu1 %4149, %v4844_v5   ;;  %7546 = vst [vmem:[#allocation7_spill] sm:$0xff] %v5042_v36  ;;  %7550 = vst [vmem:[#allocation11_spill] sm:$0xff] %v5057_v40  ;;  %v227_v5 = vsub.f32 %v5057_v40, %v5107_v55 }
  0x88   :  { %697 = vperm.xlu0 %4168, %v4861_v8   ;;  %v225_v8 = vsub.f32 %v5042_v36, %v5107_v55 }
  0x89   :  { %v5048_v37 = vpop.permute.xlu0 %80  ;;  %v5064_v42 = vpop.permute.xlu1 %85 }
  0x8a   :  { %4150 = vset.pattern.permute.xlu1 %v4774_v30  ;;  %7547 = vst [vmem:[#allocation8_spill] sm:$0xff] %v5048_v37  ;;  %7552 = vst [vmem:[#allocation13_spill] sm:$0xff] %v5064_v42  ;;  %v257_v18 = vmul.f32 %v225_v8, %v225_v8 }
  0x8b   :  { %485 = vperm.xlu1 %4150, %v4949_v25  }
  0x8c   :  { %773 = vperm.xlu0 %4168, %v4949_v25  }
  0x8d   :  { %v5055_v39 = vpop.permute.xlu0 %90  ;;  %v5070_v44 = vpop.permute.xlu1 %95 }
  0x8e   :  { %7549 = vst [vmem:[#allocation10_spill] sm:$0xff] %v5055_v39  ;;  %7554 = vst [vmem:[#allocation15_spill] sm:$0xff] %v5070_v44  ;;  %v231_v21 = vsub.f32 %v5070_v44, %v5107_v55 }
  0x8f   :  { %4151 = vset.pattern.permute.xlu1 %v4775_v32 }
  0x90   :  { %761 = vperm.xlu1 %4151, %v4942_v24   ;;  %705 = vperm.xlu0 %4168, %v4873_v10  }
  0x91   :  { %v5061_v41 = vpop.permute.xlu0 %100  ;;  %v5076_v46 = vpop.permute.xlu1 %105 }
  0x92   :  { %7551 = vst [vmem:[#allocation12_spill] sm:$0xff] %v5061_v41  ;;  %7556 = vst [vmem:[#allocation17_spill] sm:$0xff] %v5076_v46 }
  0x94   :  { %4152 = vset.pattern.permute.xlu1 %v4774_v30  ;;  %713 = vperm.xlu0 %4168, %v4885_v12  }
  0x95   :  { %417 = vperm.xlu1 %4152, %v4873_v10   ;;  %v5066_v43 = vpop.permute.xlu0 %110  ;;  %v5082_v48 = vpop.permute.xlu1 %115  ;;  %v258_v10 = vmul.f32 %v226_v3, %v226_v3  ;;  %v232_v3 = vsub.f32 %v5061_v41, %v5107_v55 }
  0x96   :  { %7553 = vst [vmem:[#allocation14_spill] sm:$0xff] %v5066_v43  ;;  %7558 = vst [vmem:[#allocation19_spill] sm:$0xff] %v5082_v48 }
  0x97   :  { %v290_v20 = vsub.f32 0.0, %v258_v10  ;;  %v235_v10 = vsub.f32 %v5082_v48, %v5107_v55 }
  0x98   :  { %785 = vperm.xlu0 %4168, %v4973_v29  }
  0x99   :  { %421 = vperm.xlu1 %4152, %v4868_v9   ;;  %v5073_v45 = vpop.permute.xlu0 %120  ;;  %v5089_v50 = vpop.permute.xlu1 %125 }
  0x9a   :  { %7555 = vst [vmem:[#allocation16_spill] sm:$0xff] %v5073_v45  ;;  %7560 = vst [vmem:[#allocation21_spill] sm:$0xff] %v5089_v50 }
  0x9c   :  { %793 = vperm.xlu0 %4168, %v55_v35  }
  0x9d   :  { %4153 = vset.pattern.permute.xlu1 %v4775_v32  ;;  %v5080_v47 = vpop.permute.xlu0 %130  ;;  %v5095_v52 = vpop.permute.xlu1 %135 }
  0x9e   :  { %701 = vperm.xlu1 %4153, %v4856_v7   ;;  %7557 = vst [vmem:[#allocation18_spill] sm:$0xff] %v5080_v47  ;;  %7562 = vst [vmem:[#allocation23_spill] sm:$0xff] %v5095_v52 }
  0xa0   :  { %733 = vperm.xlu0 %4168, %v4904_v15   ;;  %v259_v15 = vmul.f32 %v227_v5, %v227_v5 }
  0xa1   :  { %v5086_v49 = vpop.permute.xlu0 %140  ;;  %v5101_v54 = vpop.permute.xlu1 %145 }
  0xa2   :  { %4154 = vset.pattern.permute.xlu1 %v4774_v30  ;;  %7559 = vst [vmem:[#allocation20_spill] sm:$0xff] %v5086_v49  ;;  %7564 = vst [vmem:[#allocation25_spill] sm:$0xff] %v5101_v54  ;;  %v241_v56 = vsub.f32 %v5101_v54, %v5107_v55  ;;  %v291_v25 = vsub.f32 0.0, %v259_v15 }
  0xa3   :  { %493 = vperm.xlu1 %4154, %v4961_v27  }
  0xa4   :  { %v273_v58 = vmul.f32 %v241_v56, %v241_v56 }
  0xa5   :  { %v5091_v51 = vpop.permute.xlu0 %150  ;;  %v5114_v59 = vpop.permute.xlu1 %155 }
  0xa6   :  { %7561 = vst [vmem:[#allocation22_spill] sm:$0xff] %v5091_v51  ;;  %7566 = vst [vmem:[#allocation27_spill] sm:$0xff] %v5114_v59  ;;  %v305_v61 = vsub.f32 0.0, %v273_v58 }
  0xa7   :  { %4155 = vset.pattern.permute.xlu1 %v4775_v32 }
  0xa8   :  { %769 = vperm.xlu1 %4155, %v4954_v26   ;;  %v354_v62 = vmul.f32 1.442695, %v305_v61 }
  0xa9   :  { %v5098_v53 = vpop.permute.xlu0 %160  ;;  %v5119_v63 = vpop.permute.xlu1 %165 }
  0xaa   :  { %7563 = vst [vmem:[#allocation24_spill] sm:$0xff] %v5098_v53  ;;  %7568 = vst [vmem:[#allocation29_spill] sm:$0xff] %v5119_v63  ;;  %4170 = vpow2.f32 %v354_v62 }
  0xac   :  { %4156 = vset.pattern.permute.xlu1 %v4774_v30 }
  0xad   :  { %425 = vperm.xlu1 %4156, %v4885_v12   ;;  %v5111_v57 = vpop.permute.xlu0 %170  ;;  %v5126_v1 = vpop.permute.xlu1 %175  ;;  %v229_v12 = vsub.f32 %v5064_v42, %v5107_v55 }
  0xae   :  { %7565 = vst [vmem:[#allocation26_spill] sm:$0xff] %v5111_v57  ;;  %7570 = vst [vmem:[#allocation31_spill] sm:$0xff] %v5126_v1 }
  0xb1   :  { %429 = vperm.xlu1 %4156, %v4880_v11   ;;  %v5116_v60 = vpop.permute.xlu0 %180  ;;  %v5139_v6 = vpop.permute.xlu1 %185 }
  0xb2   :  { %7567 = vst [vmem:[#allocation28_spill] sm:$0xff] %v5116_v60  ;;  %7572 = vst [vmem:[#allocation33_spill] sm:$0xff] %v5139_v6 }
  0xb5   :  { %4157 = vset.pattern.permute.xlu1 %v4775_v32  ;;  %v5121_v0 = vpop.permute.xlu0 %190  ;;  %v5153_v22 = vpop.permute.xlu1 %195 }
  0xb6   :  { %709 = vperm.xlu1 %4157, %v4868_v9   ;;  %7569 = vst [vmem:[#allocation30_spill] sm:$0xff] %v5121_v0  ;;  %v4171_v9 = vpop.eup %4170  ;;  %7574 = vst [vmem:[#allocation35_spill] sm:$0xff] %v5153_v22 }
  0xb7   :  { %v1012_v19 = vsel %vm960_vm0, %v4171_v9, 0.0 }
  0xba   :  { %4158 = vset.pattern.permute.xlu1 %v4773_v2 }
  0xbb   :  { %205 = vperm.xlu1 %4158, %v5000_v33  }
  0xbf   :  { %4159 = vset.pattern.permute.xlu1 %v4774_v30  ;;  %1013 = vadd.xlane.f32.xlu0 %v1012_v19  ;;  %v264_v19 = vmul.f32 %v232_v3, %v232_v3 }
  0xc0   :  { %497 = vperm.xlu1 %4159, %v4973_v29   ;;  %v230_v29 = vsub.f32 %v5055_v39, %v5107_v55 }
  0xc2   :  { %v262_v9 = vmul.f32 %v230_v29, %v230_v29  ;;  %v243_v29 = vsub.f32 %v5114_v59, %v5107_v55 }
  0xc4   :  { %4160 = vset.pattern.permute.xlu1 %v4775_v32 }
  0xc5   :  { %777 = vperm.xlu1 %4160, %v4966_v28   ;;  %v289_v28 = vsub.f32 0.0, %v257_v18 }
  0xc7   :  { %v322_v8 = vmul.f32 1.442695, %v289_v28 }
  0xc9   :  { %781 = vperm.xlu1 %4160, %v4961_v27   ;;  %v5158_v27 = vshrl.u32 %v1443_v17, 7 }
  0xcb   :  { %v5172_v5 = vsub.s32 0, %v5158_v27 }
  0xcd   :  { %4161 = vset.pattern.permute.xlu1 %v4774_v30  ;;  %7575 = vst [vmem:[#allocation36_spill] sm:$0xff] %v5172_v5 }
  0xce   :  { %437 = vperm.xlu1 %4161, %v4892_v13  }
  0xd2   :  { %4162 = vset.pattern.permute.xlu1 %v4775_v32 }
  0xd3   :  { %717 = vperm.xlu1 %4162, %v4880_v11   ;;  %v256_v11 = vmul.f32 %v224_v4, %v224_v4  ;;  %v5169_v4 = vpop.permute.xlu1 %453 }
  0xd5   :  { %v288_v24 = vsub.f32 0.0, %v256_v11 }
  0xd7   :  { %4163 = vset.pattern.permute.xlu1 %v4773_v2  ;;  %v5128_v2 = vpop.permute.xlu0 %200  ;;  %v320_v56 = vmul.f32 1.442695, %v288_v24  ;;  %v267_v24 = vmul.f32 %v235_v10, %v235_v10 }
  0xd8   :  { %210 = vperm.xlu1 %4163, %v55_v35   ;;  %7571 = vst [vmem:[#allocation32_spill] sm:$0xff] %v5128_v2 }
  0xdb   :  { %v5141_v7 = vpop.permute.xlu0 %215 }
  0xdc   :  { %4165 = vset.pattern.permute.xlu1 %v4774_v30  ;;  %7573 = vst [vmem:[#allocation34_spill] sm:$0xff] %v5141_v7 }
  0xdd   :  { %505 = vperm.xlu1 %4165, %v55_v35   ;;  %v233_v35 = vsub.f32 %v5076_v46, %v5107_v55 }
  0xdf   :  { %v5155_v23 = vpop.permute.xlu0 %449 }
  0xe1   :  { %509 = vperm.xlu1 %4165, %v4980_v31  }
  0xe5   :  { %4166 = vset.pattern.permute.xlu1 %v4775_v32 }
  0xe6   :  { %789 = vperm.xlu1 %4166, %v5000_v33   ;;  %v263_v33 = vmul.f32 %v231_v21, %v231_v21  ;;  %v294_v21 = vsub.f32 0.0, %v262_v9 }
  0xe8   :  { %v295_v11 = vsub.f32 0.0, %v263_v33  ;;  %v242_v33 = vsub.f32 %v5091_v51, %v5107_v55 }
  0xea   :  { %4167 = vset.pattern.permute.xlu1 %v4774_v30  ;;  %v528_v30 = vsub.f32 %v5155_v23, %v5107_v55 }
  0xeb   :  { %441 = vperm.xlu1 %4167, %v4909_v16  }
  0xec   :  { %v560_v61 = vmul.f32 %v528_v30, %v528_v30  ;;  %v5186_v30 = vpop.permute.xlu1 %385 }
  0xee   :  { %v592_v17 = vsub.f32 0.0, %v560_v61 }
  0xef   :  { %4169 = vset.pattern.permute.xlu1 %v4775_v32  ;;  %v324_v32 = vmul.f32 1.442695, %v290_v20  ;;  %v238_v20 = vsub.f32 %v5080_v47, %v5107_v55  ;;  %v249_v47 = vsub.f32 %v5139_v6, %v5107_v55 }
  0xf0   :  { %721 = vperm.xlu1 %4169, %v4897_v14   ;;  %v228_v14 = vsub.f32 %v5048_v37, %v5107_v55 }
  0xf1   :  { %4172 = vpow2.f32 %v324_v32  ;;  %v270_v61 = vmul.f32 %v238_v20, %v238_v20  ;;  %v247_v20 = vsub.f32 %v5126_v1, %v5107_v55 }
  0xf2   :  { %v260_v26 = vmul.f32 %v228_v14, %v228_v14  ;;  %4174 = vpow2.f32 %v320_v56  ;;  %v236_v14 = vsub.f32 %v5073_v45, %v5107_v55  ;;  %v5191_v56 = vsub.s32 1, %v5158_v27  ;;  %v5217_v45 = vpop.permute.xlu1 %457 }
  0xf4   :  { %725 = vperm.xlu1 %4169, %v4892_v13   ;;  %v261_v13 = vmul.f32 %v229_v12, %v229_v12  ;;  %v292_v62 = vsub.f32 0.0, %v260_v26  ;;  %v265_v12 = vmul.f32 %v233_v35, %v233_v35  ;;  %v268_v32 = vmul.f32 %v236_v14, %v236_v14  ;;  %7576 = vst [vmem:[#allocation37_spill] sm:$0xff] %v5191_v56 }
  0xf5   :  { %v640_v35 = vmul.f32 1.442695, %v592_v17 }
  0xf6   :  { %v293_v58 = vsub.f32 0.0, %v261_v13  ;;  %v328_v18 = vmul.f32 1.442695, %v292_v62  ;;  %v240_v13 = vsub.f32 %v5086_v49, %v5107_v55  ;;  %v297_v26 = vsub.f32 0.0, %v265_v12 }
  0xf7   :  { %v299_v62 = vsub.f32 0.0, %v267_v24  ;;  %v300_v12 = vsub.f32 0.0, %v268_v32  ;;  %v246_v32 = vsub.f32 %v5111_v57, %v5107_v55 }
  0xf8   :  { %797 = vperm.xlu1 %4169, %v4980_v31   ;;  %v326_v31 = vmul.f32 1.442695, %v291_v25  ;;  %v330_v15 = vmul.f32 1.442695, %v293_v58  ;;  %v334_v25 = vmul.f32 1.442695, %v295_v11  ;;  %v272_v3 = vmul.f32 %v240_v13, %v240_v13 }
  0xf9   :  { %v296_v58 = vsub.f32 0.0, %v264_v19  ;;  %v338_v9 = vmul.f32 1.442695, %v297_v26  ;;  %v275_v11 = vmul.f32 %v243_v29, %v243_v29  ;;  %v244_v19 = vsub.f32 %v5098_v53, %v5107_v55 }
  0xfa   :  { %4176 = vpow2.f32 %v326_v31  ;;  %v332_v31 = vmul.f32 1.442695, %v294_v21  ;;  %v342_v24 = vmul.f32 1.442695, %v299_v62  ;;  %v304_v13 = vsub.f32 0.0, %v272_v3 }
  0xfb   :  { %4178 = vpow2.f32 %v322_v8  ;;  %v512_v8 = vsub.f32 %v5186_v30, %v5107_v55  ;;  %v5197_v14 = vpop.eup %4172  ;;  %v336_v17 = vmul.f32 1.442695, %v296_v58  ;;  %v307_v29 = vsub.f32 0.0, %v275_v11 }
  0xfc   :  { %729 = vperm.xlu1 %4169, %v4909_v16   ;;  %v234_v16 = vsub.f32 %v5066_v43, %v5107_v55  ;;  %4180 = vpow2.f32 %v330_v15  ;;  %v245_v15 = vsub.f32 %v5119_v63, %v5107_v55  ;;  %v5203_v21 = vpop.eup %4174  ;;  %v276_v62 = vmul.f32 %v244_v19, %v244_v19 }
  0xfd   :  { %4182 = vpow2.f32 %v328_v18  ;;  %v302_v18 = vsub.f32 0.0, %v270_v61  ;;  %v279_v3 = vmul.f32 %v247_v20, %v247_v20  ;;  %v281_v20 = vmul.f32 %v249_v47, %v249_v47 }
  0xfe   :  { %v266_v28 = vmul.f32 %v234_v16, %v234_v16  ;;  %4184 = vpow2.f32 %v334_v25  ;;  %v274_v16 = vmul.f32 %v242_v33, %v242_v33  ;;  %v544_v25 = vmul.f32 %v512_v8, %v512_v8 }
  0xff   :  { %4186 = vpow2.f32 %v640_v35  ;;  %v344_v35 = vmul.f32 1.442695, %v300_v12  ;;  %v277_v61 = vmul.f32 %v245_v15, %v245_v15  ;;  %v278_v15 = vmul.f32 %v246_v32, %v246_v32 }
 0x100   :  { %v298_v10 = vsub.f32 0.0, %v266_v28  ;;  %4188 = vpow2.f32 %v332_v31  ;;  %v306_v58 = vsub.f32 0.0, %v274_v16  ;;  %v348_v31 = vmul.f32 1.442695, %v302_v18 }
 0x101   :  { %4190 = vpow2.f32 %v338_v9  ;;  %v352_v9 = vmul.f32 1.442695, %v304_v13  ;;  %v576_v11 = vsub.f32 0.0, %v544_v25  ;;  %v358_v16 = vmul.f32 1.442695, %v307_v29  ;;  %v5229_v29 = vpop.permute.xlu0 %389 }
 0x102   :  { %v340_v28 = vmul.f32 1.442695, %v298_v10  ;;  %4192 = vpow2.f32 %v336_v17  ;;  %v248_v10 = vsub.f32 %v5116_v60, %v5107_v55  ;;  %v356_v18 = vmul.f32 1.442695, %v306_v58  ;;  %v1901_v25 = vld [vmem:[%s7461_s2] sm:$0x7] }
 0x103   :  { %4194 = vpow2.f32 %v342_v24  ;;  %v309_v19 = vsub.f32 0.0, %v277_v61  ;;  %v308_v24 = vsub.f32 0.0, %v276_v62  ;;  %v311_v13 = vsub.f32 0.0, %v279_v3 }
 0x104   :  { %v5205_v26 = vpop.eup %4176  ;;  %4196 = vpow2.f32 %v340_v28  ;;  %v530_v28 = vsub.f32 %v5217_v45, %v5107_v55  ;;  %v251_v47 = vsub.f32 %v5153_v22, %v5107_v55  ;;  %v608_v58 = vmul.f32 1.442695, %v576_v11  ;;  %v5245_v11 = vpop.permute.xlu1 %737 }
 0x105   :  { %7577 = vst [vmem:[#allocation38_spill] sm:$0xff] %v5205_v26  ;;  %v5209_v33 = vpop.eup %4178  ;;  %4198 = vpow2.f32 %v344_v35  ;;  %v280_v35 = vmul.f32 %v248_v10, %v248_v10  ;;  %v310_v61 = vsub.f32 0.0, %v278_v15  ;;  %v252_v62 = vsub.f32 %v5128_v2, %v5107_v55  ;;  %v2110_v10 = vld [vmem:[%s7462_s3] sm:$0x7] }
 0x106   :  { %7578 = vst [vmem:[#allocation39_spill] sm:$0xff] %v5209_v33  ;;  %v5213_v8 = vpop.eup %4180  ;;  %4200 = vpow2.f32 %v348_v31  ;;  %v250_v31 = vsub.f32 %v5121_v0, %v5107_v55  ;;  %v362_v17 = vmul.f32 1.442695, %v309_v19  ;;  %v313_v46 = vsub.f32 0.0, %v281_v20 }
 0x107   :  { %7579 = vst [vmem:[#allocation40_spill] sm:$0xff] %v5213_v8  ;;  %v5219_v12 = vpop.eup %4182  ;;  %4202 = vpow2.f32 %v352_v9  ;;  %v5240_v9 = vrot.slane %v1901_v25, %v5172_v5  ;;  %v360_v15 = vmul.f32 1.442695, %v308_v24  ;;  %v366_v22 = vmul.f32 1.442695, %v311_v13  ;;  %v5256_v24 = vpop.permute.xlu0 %461 }
 0x108   :  { %7580 = vst [vmem:[#allocation41_spill] sm:$0xff] %v5219_v12  ;;  %v5222_v48 = vpop.eup %4184  ;;  %4204 = vpow2.f32 %v358_v16  ;;  %v562_v6 = vmul.f32 %v530_v28, %v530_v28  ;;  %v312_v44 = vsub.f32 0.0, %v280_v35  ;;  %v529_v19 = vsub.f32 %v5169_v4, %v5107_v55 }
 0x109   :  { %7581 = vst [vmem:[#allocation42_spill] sm:$0xff] %v5222_v48  ;;  %v4187_v32 = vpop.eup %4186  ;;  %4206 = vpow2.f32 %v356_v18  ;;  %v283_v18 = vmul.f32 %v251_v47, %v251_v47  ;;  %v364_v1 = vmul.f32 1.442695, %v310_v61  ;;  %v282_v0 = vmul.f32 %v250_v31, %v250_v31 }
 0x10a   :  { %v5237_v3 = vpop.eup %4188  ;;  %v1105_v2 = vsel %vm960_vm0, %v4187_v32, 0.0  ;;  %4208 = vpow2.f32 %v608_v58  ;;  %v284_v60 = vmul.f32 %v252_v62, %v252_v62  ;;  %v816_v57 = vsub.f32 %v5245_v11, %v5107_v55 }
 0x10b   :  { %7582 = vst [vmem:[#allocation43_spill] sm:$0xff] %v5237_v3  ;;  %v5247_v16 = vpop.eup %4190  ;;  %1106 = vadd.xlane.f32.xlu0 %v1105_v2  ;;  %4210 = vpow2.f32 %v362_v17  ;;  %v370_v28 = vmul.f32 1.442695, %v313_v46  ;;  %v5261_v32 = vrot.slane %v1901_v25, %v5191_v56  ;;  %v5264_v35 = vrot.slane %v2110_v10, %v5172_v5 }
 0x10c   :  { %7583 = vst [vmem:[#allocation44_spill] sm:$0xff] %v5247_v16  ;;  %v5252_v20 = vpop.eup %4192  ;;  %4212 = vpow2.f32 %v360_v15  ;;  %v7587_v47 = vsub.s32 2, %v5158_v27  ;;  %v594_v61 = vsub.f32 0.0, %v562_v6  ;;  %v5273_v31 = vrot.slane %v2110_v10, %v5191_v56 }
 0x10d   :  { %7584 = vst [vmem:[#allocation45_spill] sm:$0xff] %v5252_v20  ;;  %v5258_v13 = vpop.eup %4194  ;;  %4214 = vpow2.f32 %v366_v22  ;;  %v368_v46 = vmul.f32 1.442695, %v312_v44  ;;  %v315_v17 = vsub.f32 0.0, %v283_v18  ;;  %v561_v43 = vmul.f32 %v529_v19, %v529_v19 }
 0x10e   :  { %7585 = vst [vmem:[#allocation46_spill] sm:$0xff] %v5258_v13  ;;  %v5266_v2 = vpop.eup %4196  ;;  %v5270_v58 = vrot.slane %v1901_v25, %v7587_v47  ;;  %4216 = vpow2.f32 %v364_v1  ;;  %v314_v53 = vsub.f32 0.0, %v282_v0  ;;  %v316_v41 = vsub.f32 0.0, %v284_v60  ;;  %v5295_v0 = vpop.permute.xlu0 %465 }
 0x10f   :  { %7586 = vst [vmem:[#allocation47_spill] sm:$0xff] %v5266_v2  ;;  %v5275_v62 = vpop.eup %4198  ;;  %v848_v15 = vmul.f32 %v816_v57, %v816_v57  ;;  %4218 = vpow2.f32 %v370_v28  ;;  %v1966_v6 = vsub.f32 %v5155_v23, %v5240_v9  ;;  %v7591_v25 = vmov %v7587_v47 }
 0x110   :  { %7588 = vst [vmem:[#allocation48_spill] sm:$0xff] %v5275_v62  ;;  %v5277_v63 = vpop.eup %4200  ;;  %v5285_v47 = vrot.slane %v2110_v10, %v7591_v25  ;;  %v2175_v44 = vsub.f32 %v5245_v11, %v5264_v35  ;;  %v644_v18 = vmul.f32 1.442695, %v594_v61  ;;  %v1967_v60 = vsub.f32 %v5155_v23, %v5261_v32 }
 0x111   :  { %7589 = vst [vmem:[#allocation49_spill] sm:$0xff] %v5277_v63  ;;  %v5279_v39 = vpop.eup %4202  ;;  %v2176_v57 = vsub.f32 %v5245_v11, %v5273_v31  ;;  %v961_v1 = vsel %vm960_vm0, %v5203_v21, 0.0  ;;  %v237_v10 = vsub.f32 %v5089_v50, %v5107_v55  ;;  %4220 = vpow2.f32 %v368_v46 }
 0x112   :  { %7590 = vst [vmem:[#allocation50_spill] sm:$0xff] %v5279_v39  ;;  %v5289_v22 = vpop.eup %4204  ;;  %v374_v19 = vmul.f32 1.442695, %v315_v17  ;;  %v593_v28 = vsub.f32 0.0, %v561_v43  ;;  %962 = vadd.xlane.f32.xlu0 %v961_v1  ;;  %v372_v61 = vmul.f32 1.442695, %v314_v53  ;;  %v1969_v37 = vsub.f32 %v5169_v4, %v5240_v9 }
 0x113   :  { %7592 = vst [vmem:[#allocation51_spill] sm:$0xff] %v5289_v22  ;;  %v4207_v27 = vpop.eup %4206  ;;  %v376_v25 = vmul.f32 1.442695, %v316_v41  ;;  %v880_v42 = vsub.f32 0.0, %v848_v15  ;;  %v1970_v59 = vsub.f32 %v5169_v4, %v5261_v32  ;;  %v1968_v21 = vsub.f32 %v5155_v23, %v5270_v58 }
 0x114   :  { %v4209_v36 = vpop.eup %4208  ;;  %v2062_v40 = vmul.f32 %v1966_v6, %v1966_v6  ;;  %v2271_v51 = vmul.f32 %v2175_v44, %v2175_v44  ;;  %4222 = vpow2.f32 %v644_v18  ;;  %v2063_v46 = vmul.f32 %v1967_v60, %v1967_v60  ;;  %v5319_v44 = vpop.permute.xlu0 %473 }
 0x115   :  { %v2177_v43 = vsub.f32 %v5245_v11, %v5285_v47  ;;  %v2272_v53 = vmul.f32 %v2176_v57, %v2176_v57  ;;  %v5309_v41 = vpop.eup %4210  ;;  %v5311_v17 = vmul.f32 %v237_v10, %v237_v10  ;;  %4224 = vpow2.f32 %v374_v19  ;;  %v5328_v10 = vpop.permute.xlu1 %393 }
 0x116   :  { %7593 = vst [vmem:[#allocation52_spill] sm:$0xff] %v5309_v41  ;;  %v642_v15 = vmul.f32 1.442695, %v593_v28  ;;  %v1971_v1 = vsub.f32 %v5169_v4, %v5270_v58  ;;  %v5315_v50 = vpop.eup %4212  ;;  %4226 = vpow2.f32 %v372_v61  ;;  %v928_v23 = vmul.f32 1.442695, %v880_v42 }
 0x117   :  { %7594 = vst [vmem:[#allocation53_spill] sm:$0xff] %v5311_v17  ;;  %v513_v6 = vsub.f32 %v5229_v29, %v5107_v55  ;;  %v1057_v11 = vsel %vm960_vm0, %v4209_v36, 0.0  ;;  %v5322_v18 = vpop.eup %4214  ;;  %4228 = vpow2.f32 %v376_v25  ;;  %v5324_v60 = vmul.f32 %v1969_v37, %v1969_v37 }
 0x118   :  { %7595 = vst [vmem:[#allocation54_spill] sm:$0xff] %v5322_v18  ;;  %v1918_v57 = vsub.f32 %v5186_v30, %v5240_v9  ;;  %v2367_v4 = vadd.f32 %v2271_v51, %v2062_v40  ;;  %1058 = vadd.xlane.f32.xlu0 %v1057_v11  ;;  %v5330_v42 = vpop.eup %4216  ;;  %v5332_v19 = vmul.f32 %v1970_v59, %v1970_v59  ;;  %4230 = vpow2.f32 %v642_v15 }
 0x119   :  { %7596 = vst [vmem:[#allocation55_spill] sm:$0xff] %v5330_v42  ;;  %v2064_v28 = vmul.f32 %v1968_v21, %v1968_v21  ;;  %v2273_v61 = vmul.f32 %v2177_v43, %v2177_v43  ;;  %v2368_v34 = vadd.f32 %v2272_v53, %v2063_v46  ;;  %v5334_v36 = vpop.eup %4218  ;;  %v5336_v25 = vmul.f32 %v1971_v1, %v1971_v1 }
 0x11a   :  { %7597 = vst [vmem:[#allocation56_spill] sm:$0xff] %v5334_v36  ;;  %v1919_v37 = vsub.f32 %v5186_v30, %v5261_v32  ;;  %v1920_v40 = vsub.f32 %v5186_v30, %v5270_v58  ;;  %v1972_v51 = vsub.f32 %v5217_v45, %v5240_v9  ;;  %4232 = vpow2.f32 %v928_v23 }
 0x11b   :  { %v545_v59 = vmul.f32 %v513_v6, %v513_v6  ;;  %v531_v21 = vsub.f32 %v5256_v24, %v5107_v55  ;;  %v5346_v46 = vpop.eup %4220  ;;  %v5348_v43 = vmul.f32 %v1918_v57, %v1918_v57  ;;  %v1973_v53 = vsub.f32 %v5217_v45, %v5261_v32  ;;  %v5358_v6 = vpop.permute.xlu0 %481 }
 0x11c   :  { %7598 = vst [vmem:[#allocation57_spill] sm:$0xff] %v5346_v46  ;;  %v1974_v15 = vsub.f32 %v5217_v45, %v5270_v58  ;;  %v2463_v1 = vsub.f32 0.0, %v2367_v4  ;;  %v5354_v30 = vadd.f32 %v2273_v61, %v2064_v28  ;;  %v2464_v11 = vsub.f32 0.0, %v2368_v34  ;;  %v5369_v4 = vpop.permute.xlu1 %397 }
 0x11d   :  { %v1921_v23 = vsub.f32 %v5229_v29, %v5240_v9  ;;  %v1015_v38 = vsel %vm960_vm0, %v4207_v27, 0.0  ;;  %v5361_v56 = vmul.f32 %v1919_v37, %v1919_v37  ;;  %v5363_v57 = vmul.f32 %v1920_v40, %v1920_v40 }
 0x11e   :  { %v1922_v52 = vsub.f32 %v5229_v29, %v5261_v32  ;;  %v514_v45 = vsub.f32 %v5328_v10, %v5107_v55  ;;  %1016 = vadd.xlane.f32.xlu0 %v1015_v38  ;;  %v4223_v34 = vpop.eup %4222  ;;  %v5371_v28 = vmul.f32 %v1972_v51, %v1972_v51  ;;  %v577_v61 = vsub.f32 0.0, %v545_v59 }
 0x11f   :  { %v1923_v27 = vsub.f32 %v5229_v29, %v5270_v58  ;;  %v563_v37 = vmul.f32 %v531_v21, %v531_v21  ;;  %v5375_v54 = vpop.eup %4224  ;;  %v5377_v40 = vmul.f32 %v1973_v53, %v1973_v53  ;;  %v5379_v49 = vmul.f32 %v1974_v15, %v1974_v15 }
 0x120   :  { %7599 = vst [vmem:[#allocation58_spill] sm:$0xff] %v5375_v54  ;;  %v2607_v5 = vmul.f32 1.442695, %v2463_v1  ;;  %v532_v7 = vsub.f32 %v5295_v0, %v5107_v55  ;;  %v5383_v17 = vpop.eup %4226  ;;  %v2609_v51 = vmul.f32 1.442695, %v2464_v11  ;;  %v5386_v59 = vmul.f32 %v1921_v23, %v1921_v23  ;;  %v5401_v23 = vpop.permute.xlu0 %489 }
 0x121   :  { %7600 = vst [vmem:[#allocation59_spill] sm:$0xff] %v5383_v17  ;;  %v1975_v29 = vsub.f32 %v5256_v24, %v5240_v9  ;;  %v5390_v21 = vpop.eup %4228  ;;  %v5392_v53 = vmul.f32 %v1922_v52, %v1922_v52  ;;  %v1976_v15 = vsub.f32 %v5256_v24, %v5261_v32  ;;  %v546_v1 = vmul.f32 %v514_v45, %v514_v45 }
 0x122   :  { %7601 = vst [vmem:[#allocation60_spill] sm:$0xff] %v5390_v21  ;;  %v1111_v13 = vsel %vm960_vm0, %v4223_v34, 0.0  ;;  %v610_v54 = vmul.f32 1.442695, %v577_v61  ;;  %v5397_v63 = vmul.f32 %v1923_v27, %v1923_v27  ;;  %v595_v38 = vsub.f32 0.0, %v563_v37  ;;  %v5403_v16 = vpop.eup %4230  ;;  %v678_v61 = vpop.permute.xlu1 %677 }
 0x123   :  { %v1977_v11 = vsub.f32 %v5256_v24, %v5270_v58  ;;  %1112 = vadd.xlane.f32.xlu0 %v1111_v13  ;;  %7602 = vst [vmem:[#allocation61_spill] sm:$0xff] %v5403_v16  ;;  %4234 = vpow2.f32 %v2607_v5  ;;  %v1924_v52 = vsub.f32 %v5328_v10, %v5240_v9  ;;  %v1925_v45 = vsub.f32 %v5328_v10, %v5261_v32 }
 0x124   :  { %v564_v34 = vmul.f32 %v532_v7, %v532_v7  ;;  %v4233_v27 = vpop.eup %4232  ;;  %4236 = vpow2.f32 %v2609_v51  ;;  %v5409_v37 = vmul.f32 %v1975_v29, %v1975_v29  ;;  %v1926_v24 = vsub.f32 %v5328_v10, %v5270_v58 }
 0x125   :  { %v515_v13 = vsub.f32 %v5369_v4, %v5107_v55  ;;  %v5415_v36 = vmul.f32 %v1976_v15, %v1976_v15  ;;  %v578_v5 = vsub.f32 0.0, %v546_v1  ;;  %v1978_v62 = vsub.f32 %v5295_v0, %v5240_v9 }
 0x126   :  { %v534_v7 = vsub.f32 %v5319_v44, %v5107_v55  ;;  %4238 = vpow2.f32 %v610_v54  ;;  %v646_v48 = vmul.f32 1.442695, %v595_v38  ;;  %v5421_v51 = vmul.f32 %v1977_v11, %v1977_v11  ;;  %v5434_v38 = vpop.permute.xlu0 %501  ;;  %v5444_v17 = vpop.permute.xlu1 %469 }
 0x127   :  { %v801_v29 = vsub.f32 %v678_v61, %v5107_v55  ;;  %v5424_v21 = vmul.f32 %v1924_v52, %v1924_v52  ;;  %v5426_v10 = vmul.f32 %v1925_v45, %v1925_v45  ;;  %v596_v18 = vsub.f32 0.0, %v564_v34 }
 0x128   :  { %v1233_v15 = vsel %vm960_vm0, %v4233_v27, 0.0  ;;  %v5429_v1 = vmul.f32 %v1926_v24, %v1926_v24  ;;  %v1979_v2 = vsub.f32 %v5295_v0, %v5261_v32  ;;  %v547_v8 = vmul.f32 %v515_v13, %v515_v13 }
 0x129   :  { %v2130_v54 = vsub.f32 %v678_v61, %v5264_v35  ;;  %1234 = vadd.xlane.f32.xlu0 %v1233_v15  ;;  %v612_v11 = vmul.f32 1.442695, %v578_v5  ;;  %v1980_v52 = vsub.f32 %v5295_v0, %v5270_v58  ;;  %v5438_v45 = vmul.f32 %v1978_v62, %v1978_v62 }
 0x12a   :  { %v566_v34 = vmul.f32 %v534_v7, %v534_v7  ;;  %4240 = vpow2.f32 %v646_v48  ;;  %v1927_v27 = vsub.f32 %v5369_v4, %v5240_v9  ;;  %v1928_v24 = vsub.f32 %v5369_v4, %v5261_v32  ;;  %v746_v33 = vpop.permute.xlu1 %745 }
 0x12b   :  { %v833_v13 = vmul.f32 %v801_v29, %v801_v29  ;;  %v648_v41 = vmul.f32 1.442695, %v596_v18  ;;  %v1929_v5 = vsub.f32 %v5369_v4, %v5270_v58  ;;  %v2131_v15 = vsub.f32 %v678_v61, %v5273_v31 }
 0x12c   :  { %v2132_v62 = vsub.f32 %v678_v61, %v5285_v47  ;;  %v5450_v0 = vmul.f32 %v1979_v2, %v1979_v2  ;;  %v579_v48 = vsub.f32 0.0, %v547_v8  ;;  %v2226_v7 = vmul.f32 %v2130_v54, %v2130_v54  ;;  %v5468_v54 = vpop.permute.xlu0 %433 }
 0x12d   :  { %v536_v20 = vsub.f32 %v5358_v6, %v5107_v55  ;;  %v5454_v26 = vpop.eup %4234  ;;  %4242 = vpow2.f32 %v612_v11  ;;  %v5456_v29 = vmul.f32 %v1980_v52, %v1980_v52  ;;  %v598_v18 = vsub.f32 0.0, %v566_v34 }
 0x12e   :  { %7603 = vst [vmem:[#allocation62_spill] sm:$0xff] %v5454_v26  ;;  %v1984_v4 = vsub.f32 %v5319_v44, %v5240_v9  ;;  %v5460_v46 = vpop.eup %4236  ;;  %v5462_v22 = vmul.f32 %v1927_v27, %v1927_v27  ;;  %v5464_v2 = vmul.f32 %v1928_v24, %v1928_v24  ;;  %v1985_v8 = vsub.f32 %v5319_v44, %v5261_v32 }
 0x12f   :  { %7604 = vst [vmem:[#allocation63_spill] sm:$0xff] %v5460_v46  ;;  %v865_v61 = vsub.f32 0.0, %v833_v13  ;;  %4244 = vpow2.f32 %v648_v41  ;;  %v5470_v11 = vmul.f32 %v1929_v5, %v1929_v5  ;;  %v2227_v52 = vmul.f32 %v2131_v15, %v2131_v15 }
 0x130   :  { %v2228_v34 = vmul.f32 %v2132_v62, %v2132_v62  ;;  %v5472_v26 = vpop.eup %4238  ;;  %v614_v3 = vmul.f32 1.442695, %v579_v48  ;;  %v2322_v46 = vadd.f32 %v2226_v7, %v5386_v59  ;;  %v568_v27 = vmul.f32 %v536_v20, %v536_v20 }
 0x131   :  { %7605 = vst [vmem:[#allocation64_spill] sm:$0xff] %v5472_v26  ;;  %v533_v24 = vsub.f32 %v5444_v17, %v5107_v55  ;;  %v652_v16 = vmul.f32 1.442695, %v598_v18  ;;  %v1986_v13 = vsub.f32 %v5319_v44, %v5270_v58  ;;  %v5479_v42 = vmul.f32 %v1984_v4, %v1984_v4 }
 0x132   :  { %v967_v41 = vsel %vm960_vm0, %v5197_v14, 0.0  ;;  %v5483_v5 = vmul.f32 %v1985_v8, %v1985_v8  ;;  %v898_v15 = vmul.f32 1.442695, %v865_v61  ;;  %v1990_v59 = vsub.f32 %v5358_v6, %v5240_v9  ;;  %v5498_v61 = vpop.permute.xlu0 %445 }
 0x133   :  { %7606 = vst [vmem:[#allocation65_spill] sm:$0xff] %v5479_v42  ;;  %v1991_v20 = vsub.f32 %v5358_v6, %v5261_v32  ;;  %968 = vadd.xlane.f32.xlu0 %v967_v41  ;;  %v5490_v62 = vadd.f32 %v2227_v52, %v5392_v53  ;;  %v2324_v44 = vadd.f32 %v2228_v34, %v5397_v63  ;;  %4246 = vpow2.f32 %v614_v3  ;;  %v5515_v42 = vpop.permute.xlu1 %401 }
 0x134   :  { %7607 = vst [vmem:[#allocation66_spill] sm:$0xff] %v5483_v5  ;;  %v538_v48 = vsub.f32 %v5401_v23, %v5107_v55  ;;  %v2181_v14 = vsub.f32 %v746_v33, %v5264_v35  ;;  %v5496_v7 = vpop.eup %4240  ;;  %v2418_v18 = vsub.f32 0.0, %v2322_v46  ;;  %v600_v4 = vsub.f32 0.0, %v568_v27  ;;  %7609 = vst [vmem:[#allocation68_spill] sm:$0xff] %v5498_v61 }
 0x135   :  { %7608 = vst [vmem:[#allocation67_spill] sm:$0xff] %v5496_v7  ;;  %v565_v8 = vmul.f32 %v533_v24, %v533_v24  ;;  %4248 = vpow2.f32 %v652_v16  ;;  %v5500_v41 = vmul.f32 %v1986_v13, %v1986_v13  ;;  %v818_v53 = vsub.f32 %v746_v33, %v5107_v55 }
 0x136   :  { %v2182_v63 = vsub.f32 %v746_v33, %v5273_v31  ;;  %4250 = vpow2.f32 %v898_v15  ;;  %v1992_v52 = vsub.f32 %v5358_v6, %v5270_v58  ;;  %v5506_v34 = vmul.f32 %v1990_v59, %v1990_v59 }
 0x137   :  { %7610 = vst [vmem:[#allocation69_spill] sm:$0xff] %v5500_v41  ;;  %v5508_v7 = vmul.f32 %v1991_v20, %v1991_v20  ;;  %v4243_v3 = vpop.eup %4242  ;;  %v2420_v27 = vsub.f32 0.0, %v2324_v44  ;;  %v570_v24 = vmul.f32 %v538_v48, %v538_v48  ;;  %v2277_v16 = vmul.f32 %v2181_v14, %v2181_v14 }
 0x138   :  { %7611 = vst [vmem:[#allocation70_spill] sm:$0xff] %v5506_v34  ;;  %v5511_v13 = vmul.f32 1.442695, %v2418_v18  ;;  %v656_v26 = vmul.f32 1.442695, %v600_v4  ;;  %v597_v5 = vsub.f32 0.0, %v565_v8  ;;  %v1981_v15 = vsub.f32 %v5444_v17, %v5240_v9  ;;  %v5530_v8 = vpop.permute.xlu0 %741 }
 0x139   :  { %7612 = vst [vmem:[#allocation71_spill] sm:$0xff] %v5508_v7  ;;  %v5517_v6 = vpop.eup %4244  ;;  %v1982_v59 = vsub.f32 %v5444_v17, %v5261_v32  ;;  %v850_v20 = vmul.f32 %v818_v53, %v818_v53  ;;  %v2183_v46 = vsub.f32 %v746_v33, %v5285_v47  ;;  %v2278_v44 = vmul.f32 %v2182_v63, %v2182_v63 }
 0x13a   :  { %7613 = vst [vmem:[#allocation72_spill] sm:$0xff] %v5511_v13  ;;  %7614 = vst [vmem:[#allocation73_spill] sm:$0xff] %v5517_v6  ;;  %v1983_v48 = vsub.f32 %v5444_v17, %v5270_v58  ;;  %v1996_v14 = vsub.f32 %v5401_v23, %v5240_v9  ;;  %v1997_v18 = vsub.f32 %v5401_v23, %v5261_v32  ;;  %v602_v7 = vsub.f32 0.0, %v570_v24 }
 0x13b   :  { %v541_v4 = vsub.f32 %v5434_v38, %v5107_v55  ;;  %v1998_v53 = vsub.f32 %v5401_v23, %v5270_v58  ;;  %v2373_v33 = vadd.f32 %v2277_v16, %v5371_v28  ;;  %v1063_v63 = vsel %vm960_vm0, %v4243_v3, 0.0 }
 0x13c   :  { %v5536_v17 = vmul.f32 1.442695, %v2420_v27  ;;  %v5538_v34 = vmul.f32 %v1992_v52, %v1992_v52  ;;  %v650_v39 = vmul.f32 1.442695, %v597_v5  ;;  %v5540_v41 = vmul.f32 %v1981_v15, %v1981_v15  ;;  %1064 = vadd.xlane.f32.xlu0 %v1063_v63  ;;  %v5551_v52 = vpop.permute.xlu1 %405 }
 0x13d   :  { %4252 = vpow2.f32 %v656_v26  ;;  %v882_v12 = vsub.f32 0.0, %v850_v20  ;;  %v2279_v13 = vmul.f32 %v2183_v46, %v2183_v46  ;;  %v2374_v24 = vadd.f32 %v2278_v44, %v5377_v40  ;;  %v5543_v6 = vpop.eup %4246 }
 0x13e   :  { %7615 = vst [vmem:[#allocation74_spill] sm:$0xff] %v5538_v34  ;;  %7616 = vst [vmem:[#allocation75_spill] sm:$0xff] %v5543_v6  ;;  %v5545_v23 = vmul.f32 %v1982_v59, %v1982_v59  ;;  %v5547_v28 = vmul.f32 %v1983_v48, %v1983_v48  ;;  %v5549_v3 = vmul.f32 %v1996_v14, %v1996_v14  ;;  %v660_v16 = vmul.f32 1.442695, %v602_v7  ;;  %v5567_v48 = vpop.permute.xlu0 %673 }
 0x13f   :  { %v573_v27 = vmul.f32 %v541_v4, %v541_v4  ;;  %v5553_v5 = vpop.eup %4248  ;;  %v5555_v15 = vmul.f32 %v1997_v18, %v1997_v18  ;;  %v5557_v26 = vmul.f32 %v1998_v53, %v1998_v53  ;;  %v2469_v46 = vsub.f32 0.0, %v2373_v33 }
 0x140   :  { %7617 = vst [vmem:[#allocation76_spill] sm:$0xff] %v5545_v23  ;;  %7618 = vst [vmem:[#allocation77_spill] sm:$0xff] %v5549_v3  ;;  %v5559_v40 = vpop.eup %4250  ;;  %4254 = vpow2.f32 %v650_v39  ;;  %v2005_v59 = vsub.f32 %v5434_v38, %v5240_v9  ;;  %v2006_v20 = vsub.f32 %v5434_v38, %v5261_v32  ;;  %v524_v44 = vsub.f32 %v5468_v54, %v5107_v55  ;;  %v686_v3 = vpop.permute.xlu1 %685 }
 0x141   :  { %7619 = vst [vmem:[#allocation78_spill] sm:$0xff] %v5553_v5  ;;  %7620 = vst [vmem:[#allocation79_spill] sm:$0xff] %v5555_v15  ;;  %v932_v7 = vmul.f32 1.442695, %v882_v12  ;;  %v2375_v14 = vadd.f32 %v2279_v13, %v5379_v49  ;;  %v2470_v18 = vsub.f32 0.0, %v2374_v24  ;;  %v516_v4 = vsub.f32 %v5515_v42, %v5107_v55 }
 0x142   :  { %7621 = vst [vmem:[#allocation80_spill] sm:$0xff] %v5557_v26  ;;  %7622 = vst [vmem:[#allocation81_spill] sm:$0xff] %v5559_v40  ;;  %v605_v53 = vsub.f32 0.0, %v573_v27  ;;  %v2007_v39 = vsub.f32 %v5434_v38, %v5270_v58  ;;  %v517_v33 = vsub.f32 %v5551_v52, %v5107_v55  ;;  %v2178_v63 = vsub.f32 %v5530_v8, %v5264_v35 }
 0x143   :  { %4256 = vpow2.f32 %v660_v16  ;;  %v2619_v15 = vmul.f32 1.442695, %v2469_v46  ;;  %v2179_v12 = vsub.f32 %v5530_v8, %v5273_v31  ;;  %v800_v49 = vsub.f32 %v5567_v48, %v5107_v55 }
 0x144   :  { %v5582_v13 = vmul.f32 %v2005_v59, %v2005_v59  ;;  %v5584_v24 = vmul.f32 %v2006_v20, %v2006_v20  ;;  %v556_v27 = vmul.f32 %v524_v44, %v524_v44  ;;  %v817_v38 = vsub.f32 %v5530_v8, %v5107_v55 }
 0x145   :  { %4258 = vpow2.f32 %v932_v7  ;;  %v2471_v26 = vsub.f32 0.0, %v2375_v14  ;;  %v2621_v40 = vmul.f32 1.442695, %v2470_v18  ;;  %v548_v16 = vmul.f32 %v516_v4, %v516_v4 }
 0x146   :  { %7623 = vst [vmem:[#allocation82_spill] sm:$0xff] %v5582_v13  ;;  %7624 = vst [vmem:[#allocation83_spill] sm:$0xff] %v5584_v24  ;;  %v666_v46 = vmul.f32 1.442695, %v605_v53  ;;  %v5588_v6 = vmul.f32 %v2007_v39, %v2007_v39  ;;  %v549_v34 = vmul.f32 %v517_v33, %v517_v33  ;;  %v2274_v5 = vmul.f32 %v2178_v63, %v2178_v63 }
 0x147   :  { %v5590_v23 = vpop.eup %4252  ;;  %4260 = vpow2.f32 %v2619_v15  ;;  %v2275_v59 = vmul.f32 %v2179_v12, %v2179_v12  ;;  %v2136_v20 = vsub.f32 %v686_v3, %v5264_v35  ;;  %v832_v44 = vmul.f32 %v800_v49, %v800_v49 }
 0x148   :  { %7625 = vst [vmem:[#allocation84_spill] sm:$0xff] %v5588_v6  ;;  %7626 = vst [vmem:[#allocation85_spill] sm:$0xff] %v5590_v23  ;;  %v588_v13 = vsub.f32 0.0, %v556_v27  ;;  %v849_v24 = vmul.f32 %v817_v38, %v817_v38  ;;  %v2180_v7 = vsub.f32 %v5530_v8, %v5285_v47  ;;  %v2137_v14 = vsub.f32 %v686_v3, %v5273_v31 }
 0x149   :  { %v2623_v18 = vmul.f32 1.442695, %v2471_v26  ;;  %v1954_v4 = vsub.f32 %v5468_v54, %v5240_v9  ;;  %v580_v53 = vsub.f32 0.0, %v548_v16  ;;  %v803_v39 = vsub.f32 %v686_v3, %v5107_v55 }
 0x14a   :  { %v5599_v33 = vpop.eup %4254  ;;  %v5603_v15 = vsub.f32 %v5468_v54, %v5261_v32  ;;  %v581_v63 = vsub.f32 0.0, %v549_v34  ;;  %v2370_v12 = vadd.f32 %v2274_v5, %v5324_v60  ;;  %v2138_v8 = vsub.f32 %v686_v3, %v5285_v47 }
 0x14b   :  { %7627 = vst [vmem:[#allocation86_spill] sm:$0xff] %v5599_v33  ;;  %4262 = vpow2.f32 %v2621_v40  ;;  %v2371_v26 = vadd.f32 %v2275_v59, %v5332_v19  ;;  %v2232_v49 = vmul.f32 %v2136_v20, %v2136_v20  ;;  %v864_v27 = vsub.f32 0.0, %v832_v44  ;;  %v5619_v44 = vpop.permute.xlu1 %477 }
 0x14c   :  { %v632_v38 = vmul.f32 1.442695, %v588_v13  ;;  %v881_v16 = vsub.f32 0.0, %v849_v24  ;;  %v2276_v6 = vmul.f32 %v2180_v7, %v2180_v7  ;;  %v2233_v55 = vmul.f32 %v2137_v14, %v2137_v14 }
 0x14d   :  { %v5608_v23 = vpop.eup %4256  ;;  %4264 = vpow2.f32 %v2623_v18  ;;  %v5612_v33 = vsub.f32 %v5468_v54, %v5270_v58  ;;  %v616_v34 = vmul.f32 1.442695, %v580_v53  ;;  %v835_v60 = vmul.f32 %v803_v39, %v803_v39 }
 0x14e   :  { %7628 = vst [vmem:[#allocation87_spill] sm:$0xff] %v5608_v23  ;;  %v1930_v3 = vsub.f32 %v5515_v42, %v5240_v9  ;;  %v618_v5 = vmul.f32 1.442695, %v581_v63  ;;  %v2466_v19 = vsub.f32 0.0, %v2370_v12  ;;  %v2234_v40 = vmul.f32 %v2138_v8, %v2138_v8 }
 0x14f   :  { %7629 = vst [vmem:[#allocation88_spill] sm:$0xff] %v5612_v33  ;;  %v5616_v59 = vpop.eup %4258  ;;  %4266 = vpow2.f32 %v666_v46  ;;  %v2467_v13 = vsub.f32 0.0, %v2371_v26  ;;  %v2328_v24 = vadd.f32 %v2232_v49, %v5462_v22  ;;  %v896_v20 = vmul.f32 1.442695, %v864_v27 }
 0x150   :  { %4268 = vpow2.f32 %v632_v38  ;;  %v930_v54 = vmul.f32 1.442695, %v881_v16  ;;  %v5622_v7 = vadd.f32 %v2276_v6, %v5336_v25  ;;  %v2329_v14 = vadd.f32 %v2233_v55, %v5464_v2  ;;  %v750_v6 = vpop.permute.xlu0 %749  ;;  %v5652_v38 = vld [vmem:[%s7459_s0] ss:$0 sm:$0xff] }
 0x151   :  { %v5625_v18 = vpop.eup %4260  ;;  %v5627_v53 = vmul.f32 %v1954_v4, %v1954_v4  ;;  %4270 = vpow2.f32 %v616_v34  ;;  %v5631_v46 = vsub.f32 %v5515_v42, %v5261_v32  ;;  %v867_v22 = vsub.f32 0.0, %v835_v60  ;;  %v754_v34 = vpop.permute.xlu1 %753 }
 0x152   :  { %7630 = vst [vmem:[#allocation89_spill] sm:$0xff] %v5625_v18  ;;  %v5635_v39 = vsub.f32 %v5515_v42, %v5270_v58  ;;  %4272 = vpow2.f32 %v618_v5  ;;  %v2613_v63 = vmul.f32 1.442695, %v2466_v19  ;;  %v2330_v25 = vadd.f32 %v2234_v40, %v5470_v11 }
 0x153   :  { %7631 = vst [vmem:[#allocation90_spill] sm:$0xff] %v5627_v53  ;;  %v5638_v2 = vmul.f32 %v1930_v3, %v1930_v3  ;;  %v2615_v12 = vmul.f32 1.442695, %v2467_v13  ;;  %v2424_v4 = vsub.f32 0.0, %v2328_v24  ;;  %4274 = vpow2.f32 %v896_v20 }
 0x154   :  { %v5642_v8 = vsub.f32 %v5498_v61, %v5240_v9  ;;  %4276 = vpow2.f32 %v930_v54  ;;  %v2468_v26 = vsub.f32 0.0, %v5622_v7  ;;  %v2425_v49 = vsub.f32 0.0, %v2329_v14  ;;  %v682_v33 = vpop.permute.xlu0 %681 }
 0x155   :  { %v5645_v42 = vpop.eup %4262  ;;  %v902_v27 = vmul.f32 1.442695, %v867_v22  ;;  %v2128_v11 = vsub.f32 %v5567_v48, %v5273_v31  ;;  %v535_v16 = vsub.f32 %v5619_v44, %v5652_v38  ;;  %v2184_v55 = vsub.f32 %v750_v6, %v5264_v35 }
 0x156   :  { %7632 = vst [vmem:[#allocation91_spill] sm:$0xff] %v5642_v8  ;;  %7633 = vst [vmem:[#allocation92_spill] sm:$0xff] %v5645_v42  ;;  %4278 = vpow2.f32 %v2613_v63  ;;  %v2426_v60 = vsub.f32 0.0, %v2330_v25  ;;  %v819_v3 = vsub.f32 %v750_v6, %v5652_v38  ;;  %v2185_v5 = vsub.f32 %v750_v6, %v5273_v31 }
 0x157   :  { %v5659_v19 = vpop.eup %4264  ;;  %4280 = vpow2.f32 %v2615_v12  ;;  %v2529_v40 = vmul.f32 1.442695, %v2424_v4  ;;  %v2127_v13 = vsub.f32 %v5567_v48, %v5264_v35  ;;  %v2186_v24 = vsub.f32 %v750_v6, %v5285_v47 }
 0x158   :  { %v2531_v20 = vmul.f32 1.442695, %v2425_v49  ;;  %v2129_v54 = vsub.f32 %v5567_v48, %v5285_v47  ;;  %v820_v7 = vsub.f32 %v754_v34, %v5652_v38  ;;  %v2187_v14 = vsub.f32 %v754_v34, %v5264_v35 }
 0x159   :  { %v5668_v22 = vpop.eup %4266  ;;  %v2224_v63 = vmul.f32 %v2128_v11, %v2128_v11  ;;  %v567_v25 = vmul.f32 %v535_v16, %v535_v16  ;;  %v2280_v18 = vmul.f32 %v2184_v55, %v2184_v55  ;;  %v2188_v12 = vsub.f32 %v754_v34, %v5273_v31 }
 0x15a   :  { %7634 = vst [vmem:[#allocation93_spill] sm:$0xff] %v5668_v22  ;;  %v5671_v4 = vpop.eup %4268  ;;  %4282 = vpow2.f32 %v902_v27  ;;  %v2533_v42 = vmul.f32 1.442695, %v2426_v60  ;;  %v851_v6 = vmul.f32 %v819_v3, %v819_v3  ;;  %v2281_v49 = vmul.f32 %v2185_v5, %v2185_v5 }
 0x15b   :  { %7635 = vst [vmem:[#allocation94_spill] sm:$0xff] %v5671_v4  ;;  %v5673_v53 = vpop.eup %4270  ;;  %4284 = vpow2.f32 %v2529_v40  ;;  %v5675_v48 = vmul.f32 %v2127_v13, %v2127_v13  ;;  %v2282_v23 = vmul.f32 %v2186_v24, %v2186_v24  ;;  %v2189_v8 = vsub.f32 %v754_v34, %v5285_v47 }
 0x15c   :  { %v5678_v22 = vpop.eup %4272  ;;  %4286 = vpow2.f32 %v2531_v20  ;;  %v2225_v11 = vmul.f32 %v2129_v54, %v2129_v54  ;;  %v852_v16 = vmul.f32 %v820_v7, %v820_v7  ;;  %v2283_v55 = vmul.f32 %v2187_v14, %v2187_v14 }
 0x15d   :  { %v4275_v4 = vpop.eup %4274  ;;  %v5681_v27 = vadd.f32 %v2224_v63, %v5361_v56  ;;  %v599_v60 = vsub.f32 0.0, %v567_v25  ;;  %v2376_v3 = vadd.f32 %v2280_v18, %v5409_v37  ;;  %v2284_v5 = vmul.f32 %v2188_v12, %v2188_v12 }
 0x15e   :  { %v5684_v40 = vpop.eup %4276  ;;  %4288 = vpow2.f32 %v2533_v42  ;;  %v883_v13 = vsub.f32 0.0, %v851_v6  ;;  %v2377_v34 = vadd.f32 %v2281_v49, %v5415_v36  ;;  %v7636_v24 = vsub.f32 0.0, %v5354_v30  ;;  %v758_v49 = vpop.permute.xlu0 %757 }
 0x15f   :  { %v2378_v54 = vadd.f32 %v2282_v23, %v5421_v51  ;;  %v2285_v7 = vmul.f32 %v2189_v8, %v2189_v8  ;;  %v2135_v14 = vsub.f32 %v682_v33, %v5285_v47  ;;  %v2617_v56 = vmul.f32 1.442695, %v2468_v26 }
 0x160   :  { %v2611_v20 = vmul.f32 1.442695, %v7636_v24  ;;  %v5691_v63 = vpop.eup %4278  ;;  %v2321_v37 = vadd.f32 %v2225_v11, %v5363_v57  ;;  %v884_v18 = vsub.f32 0.0, %v852_v16  ;;  %v2379_v25 = vadd.f32 %v2283_v55, %v5438_v45 }
 0x161   :  { %7637 = vst [vmem:[#allocation95_spill] sm:$0xff] %v5691_v63  ;;  %v1185_v42 = vsel %vm960_vm0, %v4275_v4, 0.0  ;;  %v5696_v12 = vpop.eup %4280  ;;  %v654_v36 = vmul.f32 1.442695, %v599_v60  ;;  %v2472_v30 = vsub.f32 0.0, %v2376_v3  ;;  %v2380_v6 = vadd.f32 %v2284_v5, %v5450_v0 }
 0x162   :  { %7638 = vst [vmem:[#allocation96_spill] sm:$0xff] %v5696_v12  ;;  %v2134_v51 = vsub.f32 %v682_v33, %v5273_v31  ;;  %1186 = vadd.xlane.f32.xlu0 %v1185_v42  ;;  %v934_v23 = vmul.f32 1.442695, %v883_v13  ;;  %v2473_v8 = vsub.f32 0.0, %v2377_v34  ;;  %v2133_v26 = vsub.f32 %v682_v33, %v5264_v35 }
 0x163   :  { %4290 = vpow2.f32 %v2611_v20  ;;  %v2474_v57 = vsub.f32 0.0, %v2378_v54  ;;  %v2381_v45 = vadd.f32 %v2285_v7, %v5456_v29  ;;  %v2231_v11 = vmul.f32 %v2135_v14, %v2135_v14  ;;  %v5709_v20 = vpop.permute.xlu1 %409 }
 0x164   :  { %4292 = vpow2.f32 %v2617_v56  ;;  %v5702_v4 = vpop.eup %4282  ;;  %v2416_v16 = vsub.f32 0.0, %v5681_v27  ;;  %v936_v55 = vmul.f32 1.442695, %v884_v18  ;;  %v2475_v0 = vsub.f32 0.0, %v2379_v25 }
 0x165   :  { %v802_v60 = vsub.f32 %v682_v33, %v5652_v38  ;;  %v5706_v3 = vpop.eup %4284  ;;  %v2625_v5 = vmul.f32 1.442695, %v2472_v30  ;;  %v2476_v13 = vsub.f32 0.0, %v2380_v6  ;;  %v2230_v34 = vmul.f32 %v2134_v51, %v2134_v51 }
 0x166   :  { %v2192_v24 = vsub.f32 %v758_v49, %v5285_v47  ;;  %v5711_v29 = vpop.eup %4286  ;;  %v2417_v54 = vsub.f32 0.0, %v2321_v37  ;;  %4294 = vpow2.f32 %v654_v36  ;;  %v2627_v7 = vmul.f32 1.442695, %v2473_v8 }
 0x167   :  { %v2229_v14 = vmul.f32 %v2133_v26, %v2133_v26  ;;  %4296 = vpow2.f32 %v934_v23  ;;  %v2629_v27 = vmul.f32 1.442695, %v2474_v57  ;;  %v2477_v56 = vsub.f32 0.0, %v2381_v45  ;;  %v5721_v45 = vpop.permute.xlu1 %413 }
 0x168   :  { %v2327_v33 = vadd.f32 %v2231_v11, %v5429_v1  ;;  %v5714_v18 = vpop.eup %4288  ;;  %v2319_v25 = vadd.f32 %v5675_v48, %v5348_v43  ;;  %4298 = vpow2.f32 %v936_v55  ;;  %v2631_v42 = vmul.f32 1.442695, %v2475_v0 }
 0x169   :  { %v834_v30 = vmul.f32 %v802_v60, %v802_v60  ;;  %4300 = vpow2.f32 %v2625_v5  ;;  %v2633_v6 = vmul.f32 1.442695, %v2476_v13  ;;  %v2326_v37 = vadd.f32 %v2230_v34, %v5426_v10 }
 0x16a   :  { %v2288_v36 = vmul.f32 %v2192_v24, %v2192_v24  ;;  %v2515_v51 = vmul.f32 1.442695, %v2417_v54  ;;  %4302 = vpow2.f32 %v2627_v7  ;;  %v2325_v23 = vadd.f32 %v2229_v14, %v5424_v21 }
 0x16b   :  { %v2513_v8 = vmul.f32 1.442695, %v2416_v16  ;;  %4304 = vpow2.f32 %v2629_v27  ;;  %v2635_v1 = vmul.f32 1.442695, %v2477_v56  ;;  %v2423_v26 = vsub.f32 0.0, %v2327_v33 }
 0x16c   :  { %v821_v57 = vsub.f32 %v758_v49, %v5652_v38  ;;  %4306 = vpow2.f32 %v2631_v42  ;;  %v866_v48 = vsub.f32 0.0, %v834_v30  ;;  %v2190_v11 = vsub.f32 %v758_v49, %v5264_v35 }
 0x16d   :  { %v4291_v43 = vpop.eup %4290  ;;  %v7639_v10 = vsub.f32 0.0, %v5490_v62  ;;  %4308 = vpow2.f32 %v2633_v6  ;;  %v2422_v60 = vsub.f32 0.0, %v2326_v37  ;;  %v2191_v21 = vsub.f32 %v758_v49, %v5273_v31 }
 0x16e   :  { %v4293_v0 = vpop.eup %4292  ;;  %v2384_v16 = vadd.f32 %v2288_v36, %v5547_v28  ;;  %v2421_v5 = vsub.f32 0.0, %v2325_v23  ;;  %4310 = vpow2.f32 %v2513_v8  ;;  %v1021_v34 = vsel %vm960_vm0, %v5315_v50, 0.0 }
 0x16f   :  { %v2519_v55 = vmul.f32 1.442695, %v7639_v10  ;;  %v2761_v13 = vpack.c.bf16 %v4293_v0, %v4291_v43  ;;  %v1933_v24 = vsub.f32 %v5551_v52, %v5240_v9  ;;  %v2415_v54 = vsub.f32 0.0, %v2319_v25  ;;  %1022 = vadd.xlane.f32.xlu0 %v1021_v34  ;;  %v5740_v25 = vpop.permute.xlu1 %693  ;;  %v7643_v0 = vld [vmem:[#allocation76_spill] sm:$0xff] }
 0x170   :  { %4312 = vpow2.f32 %v2635_v1  ;;  %v2527_v62 = vmul.f32 1.442695, %v2423_v26  ;;  %v5732_v7 = vpop.eup %4294  ;;  %v1934_v49 = vsub.f32 %v5551_v52, %v5261_v32  ;;  %v1935_v28 = vsub.f32 %v5551_v52, %v5270_v58 }
 0x171   :  { %v900_v14 = vmul.f32 1.442695, %v866_v48  ;;  %4029 = vmatprep.subr.bf16.mxu1 %v2761_v13  ;;  %4314 = vpow2.f32 %v2519_v55  ;;  %v5738_v27 = vpop.eup %4296  ;;  %v2525_v50 = vmul.f32 1.442695, %v2422_v60  ;;  %v2286_v56 = vmul.f32 %v2190_v11, %v2190_v11 }
 0x172   :  { %v2480_v33 = vsub.f32 0.0, %v2384_v16  ;;  %4316 = vpow2.f32 %v2515_v51  ;;  %v5742_v42 = vpop.eup %4298  ;;  %v2523_v30 = vmul.f32 1.442695, %v2421_v5  ;;  %v853_v6 = vmul.f32 %v821_v57, %v821_v57  ;;  %v5763_v57 = vpop.permute.xlu0 %689 }
 0x173   :  { %v2287_v37 = vmul.f32 %v2191_v21, %v2191_v21  ;;  %4318 = vpow2.f32 %v5536_v17  ;;  %v5745_v36 = vpop.eup %4300  ;;  %v5749_v52 = vmul.f32 %v5631_v46, %v5631_v46  ;;  %v5753_v23 = vmul.f32 %v5635_v39, %v5635_v39  ;;  %v5781_v13 = vpop.permute.xlu1 %485 }
 0x174   :  { %7640 = vst [vmem:[#allocation97_spill] sm:$0xff] %v5745_v36  ;;  %v2511_v8 = vmul.f32 1.442695, %v2415_v54  ;;  %4320 = vpow2.f32 %v2527_v62  ;;  %v5755_v51 = vpop.eup %4302  ;;  %v5757_v1 = vmul.f32 %v1933_v24, %v1933_v24  ;;  %v5759_v26 = vmul.f32 %v1934_v49, %v1934_v49 }
 0x175   :  { %7641 = vst [vmem:[#allocation98_spill] sm:$0xff] %v5755_v51  ;;  %v1987_v17 = vsub.f32 %v5619_v44, %v5240_v9  ;;  %4322 = vpow2.f32 %v900_v14  ;;  %v5765_v46 = vpop.eup %4304  ;;  %v1988_v39 = vsub.f32 %v5619_v44, %v5261_v32  ;;  %v2382_v43 = vadd.f32 %v2286_v56, %v5540_v41  ;;  %v7645_v41 = vld [vmem:[#allocation73_spill] sm:$0xff] }
 0x176   :  { %4324 = vpow2.f32 %v2525_v50  ;;  %v2641_v48 = vmul.f32 1.442695, %v2480_v33  ;;  %v5770_v11 = vpop.eup %4306  ;;  %v5772_v10 = vmul.f32 %v1935_v28, %v1935_v28  ;;  %v885_v55 = vsub.f32 0.0, %v853_v6  ;;  %v7646_v28 = vld [vmem:[#allocation72_spill] sm:$0xff] }
 0x177   :  { %7642 = vst [vmem:[#allocation99_spill] sm:$0xff] %v5770_v11  ;;  %4326 = vpow2.f32 %v2523_v30  ;;  %v2383_v60 = vadd.f32 %v2287_v37, %v7643_v0  ;;  %v5775_v21 = vpop.eup %4308  ;;  %v518_v16 = vsub.f32 %v5709_v20, %v5652_v38  ;;  %v2140_v5 = vsub.f32 %v5763_v57, %v5273_v31 }
 0x178   :  { %7644 = vst [vmem:[#allocation76_spill] sm:$0xff] %v5775_v21  ;;  %4328 = vpow2.f32 %v2511_v8  ;;  %v1117_v34 = vsel %vm960_vm0, %v7645_v41, 0.0  ;;  %v4311_v24 = vpop.eup %4310  ;;  %v1989_v54 = vsub.f32 %v5619_v44, %v5270_v58  ;;  %v5787_v62 = vmul.f32 %v1987_v17, %v1987_v17 }
 0x179   :  { %v2143_v49 = vsub.f32 %v5740_v25, %v5273_v31  ;;  %4330 = vpow2.f32 %v7646_v28  ;;  %1118 = vadd.xlane.f32.xlu0 %v1117_v34  ;;  %v5794_v50 = vmul.f32 %v1988_v39, %v1988_v39  ;;  %v2478_v56 = vsub.f32 0.0, %v2382_v43 }
 0x17a   :  { %v5792_v14 = vpop.eup %4312  ;;  %4332 = vpow2.f32 %v2641_v48  ;;  %v2144_v33 = vsub.f32 %v5740_v25, %v5285_v47  ;;  %v938_v6 = vmul.f32 1.442695, %v885_v55  ;;  %v2479_v44 = vsub.f32 0.0, %v2383_v60 }
 0x17b   :  { %v4315_v30 = vpop.eup %4314  ;;  %v1936_v37 = vsub.f32 %v5709_v20, %v5240_v9  ;;  %v2142_v8 = vsub.f32 %v5740_v25, %v5264_v35  ;;  %v5802_v0 = vmul.f32 %v518_v16, %v518_v16  ;;  %v2141_v39 = vsub.f32 %v5763_v57, %v5285_v47 }
 0x17c   :  { %v4317_v17 = vpop.eup %4316  ;;  %v2236_v43 = vmul.f32 %v2140_v5, %v2140_v5  ;;  %v2736_v48 = vpack.c.bf16 %v4315_v30, %v4311_v24  ;;  %v1937_v34 = vsub.f32 %v5709_v20, %v5261_v32  ;;  %v2139_v55 = vsub.f32 %v5763_v57, %v5264_v35  ;;  %v5814_v24 = vpop.permute.xlu1 %761 }
 0x17d   :  { %v4319_v41 = vpop.eup %4318  ;;  %v2239_v60 = vmul.f32 %v2143_v49, %v2143_v49  ;;  %v2764_v28 = vpack.c.bf16 %v5765_v46, %v5659_v19  ;;  %v2637_v21 = vmul.f32 1.442695, %v2478_v56  ;;  %v1938_v16 = vsub.f32 %v5709_v20, %v5270_v58 }
 0x17e   :  { %v4321_v11 = vpop.eup %4320  ;;  %v2240_v36 = vmul.f32 %v2144_v33, %v2144_v33  ;;  %2847 = vmatprep.subr.bf16.mxu0 %v2736_v48  ;;  %v2737_v5 = vpack.c.bf16 %v4319_v41, %v4317_v17  ;;  %v5818_v51 = vmul.f32 %v1989_v54, %v1989_v54  ;;  %4334 = vpow2.f32 %v938_v6  ;;  %v766_v33 = vpop.permute.xlu0 %765 }
 0x17f   :  { %v5816_v30 = vpop.eup %4322  ;;  %v2639_v63 = vmul.f32 1.442695, %v2479_v44  ;;  %v2238_v49 = vmul.f32 %v2142_v8, %v2142_v8  ;;  %v582_v19 = vsub.f32 0.0, %v5802_v0  ;;  %v5821_v46 = vmul.f32 %v1936_v37, %v1936_v37 }
 0x180   :  { %v4325_v12 = vpop.eup %4324  ;;  %v2237_v56 = vmul.f32 %v2141_v39, %v2141_v39  ;;  %v2332_v20 = vadd.f32 %v2236_v43, %v5749_v52  ;;  %4030 = vmatpush3.bf16.msra.mxu1 %v2737_v5  ;;  %v804_v48 = vsub.f32 %v5763_v57, %v5652_v38  ;;  %v2235_v41 = vmul.f32 %v2139_v55, %v2139_v55 }
 0x181   :  { %v4327_v17 = vpop.eup %4326  ;;  %v2335_v54 = vadd.f32 %v2239_v60, %v5759_v26  ;;  %4031 = vmatprep.subr.bf16.mxu1 %v2764_v28  ;;  %v2740_v6 = vpack.c.bf16 %v5714_v18, %v4321_v11  ;;  %4336 = vpow2.f32 %v2637_v21  ;;  %v5828_v8 = vmul.f32 %v1937_v34, %v1937_v34  ;;  %v5840_v60 = vpop.permute.xlu1 %417 }
 0x182   :  { %v4329_v44 = vpop.eup %4328  ;;  %v5830_v37 = vmul.f32 %v1938_v16, %v1938_v16  ;;  %v2336_v52 = vadd.f32 %v2240_v36, %v5772_v10  ;;  %v519_v39 = vsub.f32 %v5721_v45, %v5652_v38  ;;  %v2196_v57 = vsub.f32 %v766_v33, %v5264_v35 }
 0x183   :  { %v4331_v0 = vpop.eup %4330  ;;  %v2334_v43 = vadd.f32 %v2238_v49, %v5757_v1  ;;  %v2739_v26 = vpack.c.bf16 %v5711_v29, %v4325_v12  ;;  %v2333_v18 = vadd.f32 %v2237_v56, %v5753_v23  ;;  %v2428_v11 = vsub.f32 0.0, %v2332_v20 }
 0x184   :  { %v4333_v55 = vpop.eup %4332  ;;  %v2197_v21 = vsub.f32 %v766_v33, %v5273_v31  ;;  %v2735_v34 = vpack.c.bf16 %v4331_v0, %v4329_v44  ;;  %4032 = vmatpush3.bf16.msra.mxu1 %v2740_v6  ;;  %v836_v36 = vmul.f32 %v804_v48, %v804_v48  ;;  %v2331_v10 = vadd.f32 %v2235_v41, %v5638_v2 }
 0x185   :  { %v2198_v28 = vsub.f32 %v766_v33, %v5285_v47  ;;  %v2431_v16 = vsub.f32 0.0, %v2335_v54  ;;  %v823_v1 = vsub.f32 %v766_v33, %v5652_v38  ;;  %v2432_v5 = vsub.f32 0.0, %v2336_v52 }
 0x186   :  { %2848 = vmatpush1.bf16.msra.mxu0 %v2735_v34  ;;  %v1239_v12 = vsel %vm960_vm0, %v5616_v59, 0.0  ;;  %v2738_v29 = vpack.c.bf16 %v5706_v3, %v4327_v17  ;;  %v551_v23 = vmul.f32 %v519_v39, %v519_v39  ;;  %v2292_v49 = vmul.f32 %v2196_v57, %v2196_v57 }
 0x187   :  { %v2430_v56 = vsub.f32 0.0, %v2334_v43  ;;  %2849 = vmatprep.subr.bf16.mxu0 %v2739_v26  ;;  %1240 = vadd.xlane.f32.xlu0 %v1239_v12  ;;  %v2767_v20 = vpack.c.bf16 %v4333_v55, %v5792_v14  ;;  %v620_v2 = vmul.f32 1.442695, %v582_v19  ;;  %v2429_v48 = vsub.f32 0.0, %v2333_v18  ;;  %v5855_v14 = vpop.permute.xlu1 %421 }
 0x188   :  { %v2537_v41 = vmul.f32 1.442695, %v2428_v11  ;;  %v2293_v54 = vmul.f32 %v2197_v21, %v2197_v21  ;;  %v5849_v6 = vpop.eup %4334  ;;  %v2427_v33 = vsub.f32 0.0, %v2331_v10  ;;  %v2294_v44 = vmul.f32 %v2198_v28, %v2198_v28  ;;  %v7648_v11 = vld [vmem:[#allocation41_spill] sm:$0xff] }
 0x189   :  { %v2543_v52 = vmul.f32 1.442695, %v2431_v16  ;;  %v2195_v59 = vsub.f32 %v5814_v24, %v5285_v47  ;;  %4033 = vmatprep.subr.bf16.mxu1 %v2767_v20  ;;  %4338 = vpow2.f32 %v2639_v63  ;;  %v855_v3 = vmul.f32 %v823_v1, %v823_v1  ;;  %v698_v63 = vpop.permute.xlu0 %697 }
 0x18a   :  { %v805_v17 = vsub.f32 %v5740_v25, %v5652_v38  ;;  %v2545_v0 = vmul.f32 1.442695, %v2432_v5  ;;  %2850 = vmatpush1.bf16.msra.mxu0 %v2738_v29  ;;  %v868_v19 = vsub.f32 0.0, %v836_v36  ;;  %v583_v39 = vsub.f32 0.0, %v551_v23 }
 0x18b   :  { %v2388_v57 = vadd.f32 %v2292_v49, %v5787_v62  ;;  %v2541_v43 = vmul.f32 1.442695, %v2430_v56  ;;  %v5858_v26 = vpop.eup %4336  ;;  %4340 = vpow2.f32 %v2537_v41  ;;  %v2539_v55 = vmul.f32 1.442695, %v2429_v48  ;;  %v7649_v56 = vld [vmem:[#allocation69_spill] sm:$0xff] }
 0x18c   :  { %7647 = vst [vmem:[#allocation73_spill] sm:$0xff] %v5858_v26  ;;  %v2389_v18 = vadd.f32 %v2293_v54, %v5794_v50  ;;  %v973_v21 = vsel %vm960_vm0, %v7648_v11, 0.0  ;;  %v2535_v25 = vmul.f32 1.442695, %v2427_v33  ;;  %v2390_v34 = vadd.f32 %v2294_v44, %v5818_v51  ;;  %v5868_v51 = vpop.permute.xlu1 %701 }
 0x18d   :  { %4342 = vpow2.f32 %v2543_v52  ;;  %v2291_v10 = vmul.f32 %v2195_v59, %v2195_v59  ;;  %974 = vadd.xlane.f32.xlu0 %v973_v21  ;;  %v1939_v62 = vsub.f32 %v5721_v45, %v5240_v9  ;;  %v887_v36 = vsub.f32 0.0, %v855_v3 }
 0x18e   :  { %v837_v28 = vmul.f32 %v805_v17, %v805_v17  ;;  %4344 = vpow2.f32 %v2545_v0  ;;  %v2484_v16 = vsub.f32 0.0, %v2388_v57  ;;  %v806_v50 = vsub.f32 %v698_v63, %v5652_v38 }
 0x18f   :  { %4346 = vpow2.f32 %v2541_v43  ;;  %v2145_v1 = vsub.f32 %v698_v63, %v5264_v35  ;;  %v904_v5 = vmul.f32 1.442695, %v868_v19  ;;  %v622_v12 = vmul.f32 1.442695, %v583_v39 }
 0x190   :  { %4348 = vpow2.f32 %v2539_v55  ;;  %v2485_v29 = vsub.f32 0.0, %v2389_v18  ;;  %v2486_v23 = vsub.f32 0.0, %v2390_v34  ;;  %v2146_v49 = vsub.f32 %v698_v63, %v5273_v31  ;;  %v5881_v11 = vpop.permute.xlu1 %493 }
 0x191   :  { %4350 = vpow2.f32 %v2535_v25  ;;  %v2387_v20 = vadd.f32 %v2291_v10, %v7649_v56  ;;  %v942_v48 = vmul.f32 1.442695, %v887_v36  ;;  %v869_v41 = vsub.f32 0.0, %v837_v28 }
 0x192   :  { %4352 = vpow2.f32 %v620_v2  ;;  %v2147_v54 = vsub.f32 %v698_v63, %v5285_v47  ;;  %v1940_v33 = vsub.f32 %v5721_v45, %v5261_v32  ;;  %v2649_v44 = vmul.f32 1.442695, %v2484_v16 }
 0x193   :  { %v838_v52 = vmul.f32 %v806_v50, %v806_v50  ;;  %v2241_v59 = vmul.f32 %v2145_v1, %v2145_v1  ;;  %v5875_v3 = vpop.eup %4338  ;;  %4354 = vpow2.f32 %v904_v5  ;;  %v1941_v17 = vsub.f32 %v5721_v45, %v5270_v58  ;;  %v774_v50 = vpop.permute.xlu0 %773 }
 0x194   :  { %7650 = vst [vmem:[#allocation72_spill] sm:$0xff] %v5875_v3  ;;  %v2651_v0 = vmul.f32 1.442695, %v2485_v29  ;;  %v1069_v2 = vsel %vm960_vm0, %v5673_v53, 0.0  ;;  %4356 = vpow2.f32 %v622_v12  ;;  %v2653_v19 = vmul.f32 1.442695, %v2486_v23 }
 0x195   :  { %v2242_v39 = vmul.f32 %v2146_v49, %v2146_v49  ;;  %v2483_v57 = vsub.f32 0.0, %v2387_v20  ;;  %1070 = vadd.xlane.f32.xlu0 %v1069_v2  ;;  %v4341_v43 = vpop.eup %4340  ;;  %v2035_v55 = vmul.f32 %v1939_v62, %v1939_v62  ;;  %4358 = vpow2.f32 %v942_v48 }
 0x196   :  { %v906_v18 = vmul.f32 1.442695, %v869_v41  ;;  %v2243_v63 = vmul.f32 %v2147_v54, %v2147_v54  ;;  %4360 = vpow2.f32 %v2649_v44  ;;  %v870_v25 = vsub.f32 0.0, %v838_v52  ;;  %v5901_v44 = vpop.permute.xlu1 %769 }
 0x197   :  { %v4343_v21 = vpop.eup %4342  ;;  %v2337_v45 = vadd.f32 %v2241_v59, %v5821_v46  ;;  %v1191_v53 = vsel %vm960_vm0, %v5816_v30, 0.0  ;;  %v2036_v10 = vmul.f32 %v1940_v33, %v1940_v33  ;;  %v2037_v36 = vmul.f32 %v1941_v17, %v1941_v17 }
 0x198   :  { %v4345_v34 = vpop.eup %4344  ;;  %4362 = vpow2.f32 %v2651_v0  ;;  %v2148_v62 = vsub.f32 %v5868_v51, %v5264_v35  ;;  %v2338_v16 = vadd.f32 %v2242_v39, %v5828_v8  ;;  %v2647_v1 = vmul.f32 1.442695, %v2483_v57 }
 0x199   :  { %v4347_v28 = vpop.eup %4346  ;;  %4364 = vpow2.f32 %v2653_v19  ;;  %1192 = vadd.xlane.f32.xlu0 %v1191_v53  ;;  %v2149_v46 = vsub.f32 %v5868_v51, %v5273_v31  ;;  %v2339_v30 = vadd.f32 %v2243_v63, %v5830_v37  ;;  %v537_v12 = vsub.f32 %v5781_v13, %v5652_v38 }
 0x19a   :  { %v4349_v5 = vpop.eup %4348  ;;  %v2150_v29 = vsub.f32 %v5868_v51, %v5285_v47  ;;  %v2742_v23 = vpack.c.bf16 %v4343_v21, %v4341_v43  ;;  %4366 = vpow2.f32 %v906_v18  ;;  %v908_v56 = vmul.f32 1.442695, %v870_v25 }
 0x19b   :  { %v4351_v49 = vpop.eup %4350  ;;  %v2433_v8 = vsub.f32 0.0, %v2337_v45  ;;  %v2743_v20 = vpack.c.bf16 %v4345_v34, %v4349_v5  ;;  %v1993_v41 = vsub.f32 %v5781_v13, %v5240_v9  ;;  %v2202_v54 = vsub.f32 %v774_v50, %v5264_v35  ;;  %v7653_v5 = vld [vmem:[#allocation50_spill] sm:$0xff] }
 0x19c   :  { %v5896_v48 = vpop.eup %4352  ;;  %v2244_v37 = vmul.f32 %v2148_v62, %v2148_v62  ;;  %2851 = vmatprep.subr.bf16.mxu0 %v2742_v23  ;;  %v2741_v33 = vpack.c.bf16 %v4347_v28, %v4351_v49  ;;  %v1994_v52 = vsub.f32 %v5781_v13, %v5261_v32  ;;  %v2203_v59 = vsub.f32 %v774_v50, %v5273_v31  ;;  %v5924_v49 = vpop.permute.xlu1 %425 }
 0x19d   :  { %4368 = vpow2.f32 %v2647_v1  ;;  %v2245_v17 = vmul.f32 %v2149_v46, %v2149_v46  ;;  %4034 = vmatpush3.bf16.msra.mxu1 %v2743_v20  ;;  %v5906_v0 = vpop.eup %4354  ;;  %v2434_v2 = vsub.f32 0.0, %v2338_v16  ;;  %v2435_v19 = vsub.f32 0.0, %v2339_v30 }
 0x19e   :  { %v569_v39 = vmul.f32 %v537_v12, %v537_v12  ;;  %v2246_v57 = vmul.f32 %v2150_v29, %v2150_v29  ;;  %2852 = vmatpush1.bf16.msra.mxu0 %v2741_v33  ;;  %v5908_v43 = vpop.eup %4356  ;;  %v2547_v18 = vmul.f32 1.442695, %v2433_v8  ;;  %v1995_v63 = vsub.f32 %v5781_v13, %v5270_v58 }
 0x19f   :  { %v825_v21 = vsub.f32 %v774_v50, %v5652_v38  ;;  %v2204_v25 = vsub.f32 %v774_v50, %v5285_v47  ;;  %v5914_v45 = vpop.eup %4358  ;;  %4370 = vpow2.f32 %v908_v56  ;;  %v2089_v53 = vmul.f32 %v1993_v41, %v1993_v41  ;;  %v7655_v41 = vld [vmem:[#allocation55_spill] sm:$0xff] }
 0x1a0   :  { %7651 = vst [vmem:[#allocation41_spill] sm:$0xff] %v5914_v45  ;;  %v2298_v34 = vmul.f32 %v2202_v54, %v2202_v54  ;;  %v2340_v62 = vadd.f32 %v2244_v37, %v2035_v55  ;;  %v5916_v28 = vpop.eup %4360  ;;  %v2090_v16 = vmul.f32 %v1994_v52, %v1994_v52  ;;  %v2299_v1 = vmul.f32 %v2203_v59, %v2203_v59 }
 0x1a1   :  { %7652 = vst [vmem:[#allocation69_spill] sm:$0xff] %v5916_v28  ;;  %v2341_v46 = vadd.f32 %v2245_v17, %v2036_v10  ;;  %v1009_v30 = vsel %vm960_vm0, %v7653_v5, 0.0  ;;  %v2549_v13 = vmul.f32 1.442695, %v2434_v2  ;;  %v601_v29 = vsub.f32 0.0, %v569_v39  ;;  %v7669_v28 = vld [vmem:[#allocation51_spill] sm:$0xff] }
 0x1a2   :  { %v5920_v12 = vpop.eup %4362  ;;  %v2193_v50 = vsub.f32 %v5814_v24, %v5264_v35  ;;  %v2342_v23 = vadd.f32 %v2246_v57, %v2037_v36  ;;  %1010 = vadd.xlane.f32.xlu1 %v1009_v30  ;;  %v2091_v56 = vmul.f32 %v1995_v63, %v1995_v63  ;;  %v857_v8 = vmul.f32 %v825_v21, %v825_v21 }
 0x1a3   :  { %7654 = vst [vmem:[#allocation50_spill] sm:$0xff] %v5920_v12  ;;  %v4365_v55 = vpop.eup %4364  ;;  %v2300_v20 = vmul.f32 %v2204_v25, %v2204_v25  ;;  %v1027_v10 = vsel %vm960_vm0, %v7655_v41, 0.0  ;;  %4372 = vpow2.f32 %v2547_v18  ;;  %v2551_v54 = vmul.f32 1.442695, %v2435_v19 }
 0x1a4   :  { %v2394_v37 = vadd.f32 %v2298_v34, %v2089_v53  ;;  %v2436_v33 = vsub.f32 0.0, %v2340_v62  ;;  %1028 = vadd.xlane.f32.xlu0 %v1027_v10  ;;  %v5928_v52 = vpop.eup %4366  ;;  %v2395_v59 = vadd.f32 %v2299_v1, %v2090_v16  ;;  %v822_v36 = vsub.f32 %v5814_v24, %v5652_v38  ;;  %v7657_v53 = vld [vmem:[#allocation61_spill] sm:$0xff]  ;;  %v7658_v1 = vld [vmem:[#allocation78_spill] sm:$0xff] }
 0x1a5   :  { %7656 = vst [vmem:[#allocation55_spill] sm:$0xff] %v5928_v52  ;;  %v2194_v17 = vsub.f32 %v5814_v24, %v5273_v31  ;;  %v2437_v2 = vsub.f32 0.0, %v2341_v46  ;;  %v1964_v39 = vsub.f32 %v5498_v61, %v5261_v32  ;;  %4374 = vpow2.f32 %v2549_v13  ;;  %v5940_v46 = vpop.permute.xlu1 %429  ;;  %v7691_v52 = vld [vmem:[#allocation80_spill] sm:$0xff] }
 0x1a6   :  { %v2289_v57 = vmul.f32 %v2193_v50, %v2193_v50  ;;  %v2438_v18 = vsub.f32 0.0, %v2342_v23  ;;  %v658_v63 = vmul.f32 1.442695, %v601_v29  ;;  %v889_v21 = vsub.f32 0.0, %v857_v8  ;;  %v7659_v23 = vld [vmem:[#allocation65_spill] sm:$0xff] }
 0x1a7   :  { %v4369_v19 = vpop.eup %4368  ;;  %v2396_v25 = vadd.f32 %v2300_v20, %v2091_v56  ;;  %v1108_v34 = vsel %vm960_vm0, %v7657_v53, 0.0  ;;  %4376 = vpow2.f32 %v2551_v54  ;;  %v2490_v62 = vsub.f32 0.0, %v2394_v37  ;;  %v7660_v37 = vld [vmem:[#allocation39_spill] sm:$0xff]  ;;  %v7661_v53 = vld [vmem:[#allocation66_spill] sm:$0xff] }
 0x1a8   :  { %v2553_v16 = vmul.f32 1.442695, %v2436_v33  ;;  %1109 = vadd.xlane.f32.xlu1 %v1108_v34  ;;  %v1123_v24 = vsel %vm960_vm0, %v7658_v1, 0.0  ;;  %v2491_v5 = vsub.f32 0.0, %v2395_v59  ;;  %v854_v30 = vmul.f32 %v822_v36, %v822_v36  ;;  %v706_v36 = vpop.permute.xlu0 %705 }
 0x1a9   :  { %v2290_v13 = vmul.f32 %v2194_v17, %v2194_v17  ;;  %v2555_v50 = vmul.f32 1.442695, %v2437_v2  ;;  %1124 = vadd.xlane.f32.xlu0 %v1123_v24  ;;  %v5942_v29 = vpop.eup %4370  ;;  %v2385_v56 = vadd.f32 %v2289_v57, %v7659_v23  ;;  %v2557_v8 = vmul.f32 1.442695, %v2438_v18 }
 0x1aa   :  { %v2201_v20 = vsub.f32 %v5901_v44, %v5285_v47  ;;  %v2770_v41 = vpack.c.bf16 %v4365_v55, %v4369_v19  ;;  %4378 = vpow2.f32 %v658_v63  ;;  %v946_v10 = vmul.f32 1.442695, %v889_v21  ;;  %v7662_v21 = vld [vmem:[#allocation74_spill] sm:$0xff] }
 0x1ab   :  { %v2492_v54 = vsub.f32 0.0, %v2396_v25  ;;  %v964_v33 = vsel %vm960_vm0, %v7660_v37, 0.0  ;;  %v2661_v59 = vmul.f32 1.442695, %v2490_v62  ;;  %4380 = vpow2.f32 %v2553_v16  ;;  %v5956_v62 = vpop.permute.xlu1 %709 }
 0x1ac   :  { %v2297_v17 = vmul.f32 %v2201_v20, %v2201_v20  ;;  %4035 = vmatprep.subr.bf16.mxu1 %v2770_v41  ;;  %965 = vadd.xlane.f32.xlu1 %v964_v33  ;;  %v1245_v2 = vsel %vm960_vm0, %v5742_v42, 0.0  ;;  %v2663_v57 = vmul.f32 1.442695, %v2491_v5  ;;  %v886_v18 = vsub.f32 0.0, %v854_v30  ;;  %v7663_v42 = vld [vmem:[#allocation88_spill] sm:$0xff]  ;;  %v7664_v30 = vld [vmem:[#allocation91_spill] sm:$0xff] }
 0x1ad   :  { %v2386_v34 = vadd.f32 %v2290_v13, %v7661_v53  ;;  %4382 = vpow2.f32 %v2555_v50  ;;  %1246 = vadd.xlane.f32.xlu0 %v1245_v2  ;;  %v5952_v55 = vpop.eup %4372  ;;  %v2481_v19 = vsub.f32 0.0, %v2385_v56  ;;  %v808_v63 = vsub.f32 %v706_v36, %v5652_v38 }
 0x1ae   :  { %4384 = vpow2.f32 %v2557_v8  ;;  %v2393_v25 = vadd.f32 %v2297_v17, %v7662_v21  ;;  %v5960_v16 = vmul.f32 %v5603_v15, %v5603_v15  ;;  %v5964_v1 = vmul.f32 %v7663_v42, %v7663_v42  ;;  %v5982_v17 = vpop.permute.xlu0 %713 }
 0x1af   :  { %v1965_v24 = vsub.f32 %v5498_v61, %v5270_v58  ;;  %4386 = vpow2.f32 %v946_v10  ;;  %v5968_v5 = vpop.eup %4374  ;;  %v5972_v13 = vmul.f32 %v7664_v30, %v7664_v30  ;;  %v5974_v50 = vmul.f32 %v1964_v39, %v1964_v39 }
 0x1b0   :  { %4388 = vpow2.f32 %v2661_v59  ;;  %v2665_v23 = vmul.f32 1.442695, %v2492_v54  ;;  %v940_v15 = vmul.f32 1.442695, %v886_v18  ;;  %v2482_v56 = vsub.f32 0.0, %v2386_v34  ;;  %v7665_v59 = vld [vmem:[#allocation64_spill] sm:$0xff] }
 0x1b1   :  { %4390 = vpow2.f32 %v2663_v57  ;;  %v2489_v8 = vsub.f32 0.0, %v2393_v25  ;;  %v5976_v20 = vpop.eup %4376  ;;  %v2643_v41 = vmul.f32 1.442695, %v2481_v19  ;;  %v5978_v37 = vmul.f32 %v808_v63, %v808_v63  ;;  %v7666_v57 = vld [vmem:[#allocation43_spill] sm:$0xff] }
 0x1b2   :  { %v2151_v10 = vsub.f32 %v706_v36, %v5264_v35  ;;  %v2152_v33 = vsub.f32 %v706_v36, %v5273_v31  ;;  %v2153_v39 = vsub.f32 %v706_v36, %v5285_v47  ;;  %v810_v54 = vsub.f32 %v5982_v17, %v5652_v38  ;;  %v5997_v36 = vpop.permute.xlu1 %205 }
 0x1b3   :  { %v1060_v2 = vsel %vm960_vm0, %v7665_v59, 0.0  ;;  %v979_v18 = vsel %vm960_vm0, %v7666_v57, 0.0  ;;  %4392 = vpow2.f32 %v2665_v23  ;;  %v520_v53 = vsub.f32 %v5840_v60, %v5652_v38  ;;  %7667 = vst [vmem:[#allocation61_spill] sm:$0xff] %v5997_v36 }
 0x1b4   :  { %v1942_v34 = vsub.f32 %v5840_v60, %v5240_v9  ;;  %v1943_v19 = vsub.f32 %v5840_v60, %v5261_v32  ;;  %1061 = vadd.xlane.f32.xlu1 %v1060_v2  ;;  %980 = vadd.xlane.f32.xlu0 %v979_v18  ;;  %v5999_v63 = vpop.eup %4378  ;;  %v6001_v21 = vmul.f32 %v1965_v24, %v1965_v24  ;;  %4394 = vpow2.f32 %v940_v15 }
 0x1b5   :  { %7668 = vst [vmem:[#allocation78_spill] sm:$0xff] %v5999_v63  ;;  %v1944_v25 = vsub.f32 %v5840_v60, %v5270_v58  ;;  %v2659_v42 = vmul.f32 1.442695, %v2489_v8  ;;  %v4381_v38 = vpop.eup %4380  ;;  %v2645_v30 = vmul.f32 1.442695, %v2482_v56  ;;  %v872_v23 = vsub.f32 0.0, %v5978_v37 }
 0x1b6   :  { %v2247_v59 = vmul.f32 %v2151_v10, %v2151_v10  ;;  %v2248_v57 = vmul.f32 %v2152_v33, %v2152_v33  ;;  %4396 = vpow2.f32 %v2643_v41  ;;  %v2249_v2 = vmul.f32 %v2153_v39, %v2153_v39  ;;  %v6028_v39 = vpop.permute.xlu1 %497 }
 0x1b7   :  { %v4383_v61 = vpop.eup %4382  ;;  %v842_v18 = vmul.f32 %v810_v54, %v810_v54  ;;  %v1018_v12 = vsel %vm960_vm0, %v7669_v28, 0.0  ;;  %v6008_v26 = vmul.f32 %v520_v53, %v520_v53  ;;  %v2038_v15 = vmul.f32 %v1942_v34, %v1942_v34  ;;  %v7673_v53 = vld [vmem:[#allocation67_spill] sm:$0xff] }
 0x1b8   :  { %v4385_v24 = vpop.eup %4384  ;;  %v2039_v3 = vmul.f32 %v1943_v19, %v1943_v19  ;;  %1019 = vadd.xlane.f32.xlu1 %v1018_v12  ;;  %v1075_v60 = vsel %vm960_vm0, %v5896_v48, 0.0  ;;  %v2040_v8 = vmul.f32 %v1944_v25, %v1944_v25  ;;  %v1946_v41 = vsub.f32 %v5855_v14, %v5261_v32 }
 0x1b9   :  { %v6012_v56 = vpop.eup %4386  ;;  %v1947_v37 = vsub.f32 %v5855_v14, %v5270_v58  ;;  %4398 = vpow2.f32 %v2659_v42  ;;  %1076 = vadd.xlane.f32.xlu0 %v1075_v60  ;;  %v1197_v10 = vsel %vm960_vm0, %v5906_v0, 0.0  ;;  %v2154_v12 = vsub.f32 %v5956_v62, %v5264_v35  ;;  %v6037_v60 = vpop.permute.xlu0 %785 }
 0x1ba   :  { %7670 = vst [vmem:[#allocation65_spill] sm:$0xff] %v6012_v56  ;;  %v6018_v28 = vpop.eup %4388  ;;  %v2155_v48 = vsub.f32 %v5956_v62, %v5273_v31  ;;  %v2156_v33 = vsub.f32 %v5956_v62, %v5285_v47  ;;  %v1114_v34 = vsel %vm960_vm0, %v7673_v53, 0.0  ;;  %v2745_v19 = vpack.c.bf16 %v4383_v61, %v5968_v5  ;;  %v6044_v53 = vld [vmem:[%s7459_s0] ss:$0 sm:$0xff] }
 0x1bb   :  { %7671 = vst [vmem:[#allocation39_spill] sm:$0xff] %v6018_v28  ;;  %v6030_v54 = vpop.eup %4390  ;;  %v2746_v0 = vpack.c.bf16 %v4385_v24, %v5976_v20  ;;  %v2744_v25 = vpack.c.bf16 %v4381_v38, %v5952_v55  ;;  %4400 = vpow2.f32 %v2645_v30  ;;  %v2343_v42 = vadd.f32 %v2247_v59, %v2038_v15 }
 0x1bc   :  { %7672 = vst [vmem:[#allocation66_spill] sm:$0xff] %v6030_v54  ;;  %v1945_v28 = vsub.f32 %v5855_v14, %v5240_v9  ;;  %1115 = vadd.xlane.f32.xlu1 %v1114_v34  ;;  %v2251_v56 = vmul.f32 %v2155_v48, %v2155_v48  ;;  %v874_v45 = vsub.f32 0.0, %v842_v18  ;;  %v828_v61 = vsub.f32 %v6037_v60, %v6044_v53 }
 0x1bd   :  { %1198 = vadd.xlane.f32.xlu0 %v1197_v10  ;;  %v2252_v55 = vmul.f32 %v2156_v33, %v2156_v33  ;;  %2853 = vmatprep.subr.bf16.mxu0 %v2745_v19  ;;  %v1236_v5 = vsel %vm960_vm0, %v5684_v40, 0.0  ;;  %v4393_v20 = vpop.eup %4392  ;;  %v912_v38 = vmul.f32 1.442695, %v872_v23  ;;  %v2344_v30 = vadd.f32 %v2248_v57, %v2039_v3  ;;  %v7674_v40 = vld [vmem:[#allocation57_spill] sm:$0xff]  ;;  %v6055_v3 = vpop.permute.xlu1 %777 }
 0x1be   :  { %v2042_v59 = vmul.f32 %v1946_v41, %v1946_v41  ;;  %v2250_v24 = vmul.f32 %v2154_v12, %v2154_v12  ;;  %4036 = vmatpush3.bf16.msra.mxu1 %v2746_v0  ;;  %2854 = vmatpush1.bf16.msra.mxu0 %v2744_v25  ;;  %v4395_v18 = vpop.eup %4394  ;;  %v2157_v15 = vsub.f32 %v5982_v17, %v5264_v35  ;;  %v584_v48 = vsub.f32 0.0, %v6008_v26 }
 0x1bf   :  { %v2345_v34 = vadd.f32 %v2249_v2, %v2040_v8  ;;  %v2043_v10 = vmul.f32 %v1947_v37, %v1947_v37  ;;  %v2439_v33 = vsub.f32 0.0, %v2343_v42  ;;  %v2041_v19 = vmul.f32 %v1945_v28, %v1945_v28 }
 0x1c0   :  { %v2347_v54 = vadd.f32 %v2251_v56, %v2042_v59  ;;  %1237 = vadd.xlane.f32.xlu1 %v1236_v5  ;;  %v1033_v23 = vsel %vm960_vm0, %v7674_v40, 0.0  ;;  %v6057_v57 = vpop.eup %4396  ;;  %v916_v41 = vmul.f32 1.442695, %v874_v45  ;;  %v2158_v12 = vsub.f32 %v5982_v17, %v5273_v31  ;;  %v7676_v5 = vld [vmem:[#allocation38_spill] sm:$0xff] }
 0x1c1   :  { %7675 = vst [vmem:[#allocation74_spill] sm:$0xff] %v6057_v57  ;;  %v521_v26 = vsub.f32 %v5855_v14, %v6044_v53  ;;  %v2348_v2 = vadd.f32 %v2252_v55, %v2043_v10  ;;  %1034 = vadd.xlane.f32.xlu0 %v1033_v23  ;;  %v2159_v56 = vsub.f32 %v5982_v17, %v5285_v47  ;;  %v2440_v8 = vsub.f32 0.0, %v2344_v30  ;;  %v6069_v57 = vpop.permute.xlu0 %793  ;;  %v7677_v55 = vld [vmem:[#allocation85_spill] sm:$0xff]  ;;  %v7680_v23 = vld [vmem:[#allocation75_spill] sm:$0xff] }
 0x1c2   :  { %v860_v37 = vmul.f32 %v828_v61, %v828_v61  ;;  %v2346_v28 = vadd.f32 %v2250_v24, %v2041_v19  ;;  %4402 = vpow2.f32 %v912_v38  ;;  %v624_v25 = vmul.f32 1.442695, %v584_v48 }
 0x1c3   :  { %v4399_v0 = vpop.eup %4398  ;;  %v2441_v42 = vsub.f32 0.0, %v2345_v34  ;;  %v970_v45 = vsel %vm960_vm0, %v7676_v5, 0.0  ;;  %v6067_v59 = vmul.f32 %v2157_v15, %v2157_v15  ;;  %v2559_v40 = vmul.f32 1.442695, %v2439_v33 }
 0x1c4   :  { %v2443_v14 = vsub.f32 0.0, %v2347_v54  ;;  %971 = vadd.xlane.f32.xlu1 %v970_v45  ;;  %v1129_v17 = vsel %vm960_vm0, %v7677_v55, 0.0  ;;  %4404 = vpow2.f32 %v916_v41  ;;  %v553_v61 = vmul.f32 %v521_v26, %v521_v26  ;;  %v6079_v54 = vpop.permute.xlu1 %781 }
 0x1c5   :  { %v830_v38 = vsub.f32 %v6069_v57, %v6044_v53  ;;  %v2444_v30 = vsub.f32 0.0, %v2348_v2  ;;  %1130 = vadd.xlane.f32.xlu0 %v1129_v17  ;;  %v6075_v24 = vpop.eup %4400  ;;  %v2561_v48 = vmul.f32 1.442695, %v2440_v8  ;;  %v892_v15 = vsub.f32 0.0, %v860_v37  ;;  %7679 = vst [vmem:[#allocation91_spill] sm:$0xff] %v6079_v54 }
 0x1c6   :  { %7678 = vst [vmem:[#allocation88_spill] sm:$0xff] %v6075_v24  ;;  %v807_v34 = vsub.f32 %v5868_v51, %v6044_v53  ;;  %v2442_v10 = vsub.f32 0.0, %v2346_v28  ;;  %4406 = vpow2.f32 %v624_v25  ;;  %v2563_v33 = vmul.f32 1.442695, %v2441_v42 }
 0x1c7   :  { %v2773_v19 = vpack.c.bf16 %v4393_v20, %v4399_v0  ;;  %v1066_v41 = vsel %vm960_vm0, %v7680_v23, 0.0  ;;  %4408 = vpow2.f32 %v2559_v40  ;;  %v2211_v26 = vsub.f32 %v6037_v60, %v5264_v35 }
 0x1c8   :  { %v824_v2 = vsub.f32 %v5901_v44, %v6044_v53  ;;  %v2567_v8 = vmul.f32 1.442695, %v2443_v14  ;;  %1067 = vadd.xlane.f32.xlu1 %v1066_v41  ;;  %v585_v37 = vsub.f32 0.0, %v553_v61  ;;  %v862_v51 = vmul.f32 %v830_v38, %v830_v38  ;;  %v6094_v14 = vpop.permute.xlu0 %733  ;;  %v6100_v61 = vpop.permute.xlu1 %437 }
 0x1c9   :  { %v2569_v28 = vmul.f32 1.442695, %v2444_v30  ;;  %4037 = vmatprep.subr.bf16.mxu1 %v2773_v19  ;;  %v1251_v25 = vsel %vm960_vm0, %v4395_v18, 0.0  ;;  %v6088_v42 = vmul.f32 %v2158_v12, %v2158_v12  ;;  %4410 = vpow2.f32 %v2561_v48  ;;  %7681 = vst [vmem:[#allocation64_spill] sm:$0xff] %v6094_v14  ;;  %v7682_v18 = vld [vmem:[#allocation81_spill] sm:$0xff] }
 0x1ca   :  { %v839_v20 = vmul.f32 %v807_v34, %v807_v34  ;;  %v2565_v0 = vmul.f32 1.442695, %v2442_v10  ;;  %1252 = vadd.xlane.f32.xlu0 %v1251_v25  ;;  %4412 = vpow2.f32 %v2563_v33  ;;  %v952_v5 = vmul.f32 1.442695, %v892_v15  ;;  %v7684_v34 = vld [vmem:[#allocation45_spill] sm:$0xff] }
 0x1cb   :  { %v2212_v45 = vsub.f32 %v6037_v60, %v5273_v31  ;;  %v2213_v40 = vsub.f32 %v6037_v60, %v5285_v47  ;;  %v6096_v55 = vmul.f32 %v2159_v56, %v2159_v56  ;;  %v856_v17 = vmul.f32 %v824_v2, %v824_v2 }
 0x1cc   :  { %4414 = vpow2.f32 %v2567_v8  ;;  %v1188_v12 = vsel %vm960_vm0, %v7682_v18, 0.0  ;;  %v6102_v38 = vpop.eup %4402  ;;  %v6104_v30 = vmul.f32 %v2211_v26, %v2211_v26  ;;  %v626_v48 = vmul.f32 1.442695, %v585_v37  ;;  %v6138_v18 = vpop.permute.xlu1 %717 }
 0x1cd   :  { %v894_v15 = vsub.f32 0.0, %v862_v51  ;;  %4416 = vpow2.f32 %v2569_v28  ;;  %1189 = vadd.xlane.f32.xlu1 %v1188_v12  ;;  %v871_v60 = vsub.f32 0.0, %v839_v20  ;;  %v2172_v56 = vsub.f32 %v6094_v14, %v5264_v35  ;;  %7687 = vst [vmem:[#allocation57_spill] sm:$0xff] %v6138_v18  ;;  %v6147_v63 = vpop.xlane.xlu0 %1013 }
 0x1ce   :  { %7683 = vst [vmem:[#allocation43_spill] sm:$0xff] %v6104_v30  ;;  %4418 = vpow2.f32 %v2565_v0  ;;  %v985_v10 = vsel %vm960_vm0, %v7684_v34, 0.0  ;;  %v6110_v33 = vpop.eup %4404  ;;  %v6112_v19 = vmul.f32 %v2212_v45, %v2212_v45  ;;  %v6114_v23 = vmul.f32 %v2213_v40, %v2213_v40  ;;  %7689 = vst [vmem:[#allocation38_spill] sm:$0xff] %v6147_v63 }
 0x1cf   :  { %7685 = vst [vmem:[#allocation51_spill] sm:$0xff] %v6110_v33  ;;  %4420 = vpow2.f32 %v952_v5  ;;  %v2173_v41 = vsub.f32 %v6094_v14, %v5273_v31  ;;  %986 = vadd.xlane.f32.xlu0 %v985_v10  ;;  %v6120_v26 = vsub.f32 %v6069_v57, %v5264_v35  ;;  %v888_v2 = vsub.f32 0.0, %v856_v17  ;;  %v7688_v10 = vld [vmem:[#allocation52_spill] sm:$0xff] }
 0x1d0   :  { %7686 = vst [vmem:[#allocation67_spill] sm:$0xff] %v6112_v19  ;;  %v522_v8 = vsub.f32 %v5924_v49, %v6044_v53  ;;  %v2207_v37 = vsub.f32 %v6055_v3, %v5285_v47  ;;  %v4407_v51 = vpop.eup %4406  ;;  %v956_v28 = vmul.f32 1.442695, %v894_v15  ;;  %v2174_v25 = vsub.f32 %v6094_v14, %v5285_v47 }
 0x1d1   :  { %v2001_v20 = vsub.f32 %v5881_v11, %v5270_v58  ;;  %v2210_v0 = vsub.f32 %v6079_v54, %v5285_v47  ;;  %v6132_v5 = vpop.eup %4408  ;;  %4422 = vpow2.f32 %v626_v48  ;;  %v6136_v45 = vsub.f32 %v6069_v57, %v5273_v31 }
 0x1d2   :  { %v910_v40 = vmul.f32 1.442695, %v871_v60  ;;  %v2268_v17 = vmul.f32 %v2172_v56, %v2172_v56  ;;  %v2269_v12 = vmul.f32 %v2173_v41, %v2173_v41  ;;  %v1948_v15 = vsub.f32 %v5924_v49, %v5240_v9 }
 0x1d3   :  { %v2306_v34 = vmul.f32 %v2210_v0, %v2210_v0  ;;  %v1024_v14 = vsel %vm960_vm0, %v7688_v10, 0.0  ;;  %v4411_v24 = vpop.eup %4410  ;;  %v944_v19 = vmul.f32 1.442695, %v888_v2  ;;  %v554_v54 = vmul.f32 %v522_v8, %v522_v8 }
 0x1d4   :  { %v1949_v48 = vsub.f32 %v5924_v49, %v5261_v32  ;;  %v2303_v30 = vmul.f32 %v2207_v37, %v2207_v37  ;;  %1025 = vadd.xlane.f32.xlu1 %v1024_v14  ;;  %v4413_v60 = vpop.eup %4412  ;;  %4424 = vpow2.f32 %v956_v28  ;;  %v2270_v56 = vmul.f32 %v2174_v25, %v2174_v25  ;;  %v7690_v25 = vld [vmem:[#allocation86_spill] sm:$0xff] }
 0x1d5   :  { %v2097_v33 = vmul.f32 %v2001_v20, %v2001_v20  ;;  %v1081_v41 = vsel %vm960_vm0, %v4407_v51, 0.0  ;;  %v6151_v10 = vsub.f32 %v6069_v57, %v5285_v47  ;;  %4426 = vpow2.f32 %v910_v40 }
 0x1d6   :  { %v4415_v0 = vpop.eup %4414  ;;  %v6154_v2 = vadd.f32 %v2268_v17, %v5972_v13  ;;  %v1950_v14 = vsub.f32 %v5924_v49, %v5270_v58  ;;  %1082 = vadd.xlane.f32.xlu0 %v1081_v41  ;;  %v6159_v37 = vadd.f32 %v2269_v12, %v5974_v50  ;;  %v2044_v51 = vmul.f32 %v1948_v15, %v1948_v15  ;;  %v6164_v17 = vpop.permute.xlu1 %210 }
 0x1d7   :  { %v4417_v8 = vpop.eup %4416  ;;  %v2402_v28 = vadd.f32 %v2306_v34, %v2097_v33  ;;  %v1120_v20 = vsel %vm960_vm0, %v7690_v25, 0.0  ;;  %4428 = vpow2.f32 %v944_v19  ;;  %v586_v57 = vsub.f32 0.0, %v554_v54  ;;  %7692 = vst [vmem:[#allocation85_spill] sm:$0xff] %v6164_v17  ;;  %v6175_v19 = vpop.xlane.xlu0 %1106 }
 0x1d8   :  { %v4419_v63 = vpop.eup %4418  ;;  %v2045_v40 = vmul.f32 %v1949_v48, %v1949_v48  ;;  %v2399_v13 = vadd.f32 %v2303_v30, %v7691_v52  ;;  %1121 = vadd.xlane.f32.xlu1 %v1120_v20  ;;  %v6169_v41 = vadd.f32 %v2270_v56, %v6001_v21  ;;  %v1951_v50 = vsub.f32 %v5940_v46, %v5240_v9 }
 0x1d9   :  { %v6166_v49 = vpop.eup %4420  ;;  %v1203_v33 = vsel %vm960_vm0, %v5942_v29, 0.0  ;;  %v2748_v12 = vpack.c.bf16 %v4415_v0, %v4411_v24  ;;  %7693 = vst [vmem:[#allocation75_spill] sm:$0xff] %v6175_v19  ;;  %v2046_v54 = vmul.f32 %v1950_v14, %v1950_v14  ;;  %v1952_v52 = vsub.f32 %v5940_v46, %v5261_v32 }
 0x1da   :  { %v1953_v30 = vsub.f32 %v5940_v46, %v5270_v58  ;;  %1204 = vadd.xlane.f32.xlu0 %v1203_v33  ;;  %v2749_v15 = vpack.c.bf16 %v4417_v8, %v4413_v60  ;;  %v2349_v21 = vadd.f32 %v6067_v59, %v2044_v51  ;;  %v2498_v34 = vsub.f32 0.0, %v2402_v28  ;;  %v7694_v59 = vld [vmem:[#allocation59_spill] sm:$0xff]  ;;  %v6198_v20 = vpop.permute.xlu1 %505  ;;  %v7696_v33 = vld [vmem:[#allocation40_spill] sm:$0xff] }
 0x1db   :  { %2855 = vmatprep.subr.bf16.mxu0 %v2748_v12  ;;  %v2747_v48 = vpack.c.bf16 %v4419_v63, %v6132_v5  ;;  %v1242_v29 = vsel %vm960_vm0, %v5738_v27, 0.0  ;;  %v6185_v24 = vpop.eup %4422  ;;  %v628_v56 = vmul.f32 1.442695, %v586_v57  ;;  %v2350_v0 = vadd.f32 %v6088_v42, %v2045_v40 }
 0x1dc   :  { %v2495_v14 = vsub.f32 0.0, %v2399_v13  ;;  %4038 = vmatpush3.bf16.msra.mxu1 %v2749_v15  ;;  %1243 = vadd.xlane.f32.xlu1 %v1242_v29  ;;  %v2160_v60 = vsub.f32 %v6138_v18, %v5264_v35  ;;  %v2047_v8 = vmul.f32 %v1951_v50, %v1951_v50  ;;  %v1039_v51 = vsel %vm960_vm0, %v7694_v59, 0.0  ;;  %v6204_v15 = vpop.xlane.xlu0 %962 }
 0x1dd   :  { %2856 = vmatpush1.bf16.msra.mxu0 %v2747_v48  ;;  %v2161_v63 = vsub.f32 %v6138_v18, %v5273_v31  ;;  %v2162_v27 = vsub.f32 %v6138_v18, %v5285_v47  ;;  %v2048_v5 = vmul.f32 %v1952_v52, %v1952_v52  ;;  %v2049_v28 = vmul.f32 %v1953_v30, %v1953_v30 }
 0x1de   :  { %v540_v42 = vsub.f32 %v6028_v39, %v6044_v53  ;;  %1040 = vadd.xlane.f32.xlu0 %v1039_v51  ;;  %v2256_v25 = vmul.f32 %v2160_v60, %v2160_v60  ;;  %v6200_v57 = vpop.eup %4424  ;;  %v2677_v40 = vmul.f32 1.442695, %v2498_v34  ;;  %v976_v12 = vsel %vm960_vm0, %v7696_v33, 0.0  ;;  %7697 = vst [vmem:[#allocation45_spill] sm:$0xff] %v6204_v15 }
 0x1df   :  { %7695 = vst [vmem:[#allocation81_spill] sm:$0xff] %v6200_v57  ;;  %v2257_v13 = vmul.f32 %v2161_v63, %v2161_v63  ;;  %v2258_v50 = vmul.f32 %v2162_v27, %v2162_v27  ;;  %v6206_v48 = vpop.eup %4426  ;;  %v2199_v52 = vsub.f32 %v5901_v44, %v5264_v35  ;;  %v2200_v30 = vsub.f32 %v5901_v44, %v5273_v31  ;;  %v7698_v63 = vld [vmem:[#allocation87_spill] sm:$0xff] }
 0x1e0   :  { %v2445_v29 = vsub.f32 0.0, %v2349_v21  ;;  %v2671_v60 = vmul.f32 1.442695, %v2495_v14  ;;  %977 = vadd.xlane.f32.xlu1 %v976_v12  ;;  %v2352_v59 = vadd.f32 %v2256_v25, %v2047_v8  ;;  %v1135_v27 = vsel %vm960_vm0, %v7698_v63, 0.0  ;;  %v7702_v63 = vld [vmem:[#allocation47_spill] sm:$0xff] }
 0x1e1   :  { %v2353_v34 = vadd.f32 %v2257_v13, %v2048_v5  ;;  %v2354_v51 = vadd.f32 %v2258_v50, %v2049_v28  ;;  %v4429_v33 = vpop.eup %4428  ;;  %4430 = vpow2.f32 %v628_v56  ;;  %v2351_v15 = vadd.f32 %v6096_v55, %v2046_v54  ;;  %v6221_v56 = vpop.permute.xlu1 %509 }
 0x1e2   :  { %v2446_v19 = vsub.f32 0.0, %v2350_v0  ;;  %v572_v18 = vmul.f32 %v540_v42, %v540_v42  ;;  %1136 = vadd.xlane.f32.xlu0 %v1135_v27  ;;  %v826_v57 = vsub.f32 %v6055_v3, %v6044_v53  ;;  %4432 = vpow2.f32 %v2677_v40  ;;  %v6224_v42 = vpop.xlane.xlu0 %1058 }
 0x1e3   :  { %v2449_v44 = vsub.f32 0.0, %v2353_v34  ;;  %v1072_v21 = vsel %vm960_vm0, %v5678_v22, 0.0  ;;  %v539_v14 = vsub.f32 %v5881_v11, %v6044_v53  ;;  %v2295_v8 = vmul.f32 %v2199_v52, %v2199_v52  ;;  %7699 = vst [vmem:[#allocation52_spill] sm:$0xff] %v6224_v42 }
 0x1e4   :  { %v2296_v5 = vmul.f32 %v2200_v30, %v2200_v30  ;;  %v2450_v28 = vsub.f32 0.0, %v2354_v51  ;;  %1073 = vadd.xlane.f32.xlu1 %v1072_v21  ;;  %v2571_v55 = vmul.f32 1.442695, %v2445_v29  ;;  %4434 = vpow2.f32 %v2671_v60 }
 0x1e5   :  { %v2448_v54 = vsub.f32 0.0, %v2352_v59  ;;  %v1257_v0 = vsel %vm960_vm0, %v4429_v33, 0.0  ;;  %v2460_v25 = vsub.f32 0.0, %v6154_v2  ;;  %v2447_v40 = vsub.f32 0.0, %v2351_v15  ;;  %v7700_v59 = vld [vmem:[#allocation70_spill] sm:$0xff]  ;;  %v7701_v2 = vld [vmem:[#allocation71_spill] sm:$0xff] }
 0x1e6   :  { %v2573_v22 = vmul.f32 1.442695, %v2446_v19  ;;  %v2004_v13 = vsub.f32 %v6028_v39, %v5270_v58  ;;  %1258 = vadd.xlane.f32.xlu0 %v1257_v0  ;;  %v604_v50 = vsub.f32 0.0, %v572_v18  ;;  %v858_v12 = vmul.f32 %v826_v57, %v826_v57 }
 0x1e7   :  { %v2579_v52 = vmul.f32 1.442695, %v2449_v44  ;;  %v1194_v30 = vsel %vm960_vm0, %v5702_v4, 0.0  ;;  %v2461_v29 = vsub.f32 0.0, %v6159_v37  ;;  %v571_v60 = vmul.f32 %v539_v14, %v539_v14  ;;  %v6238_v37 = vpop.permute.xlu1 %789  ;;  %v6244_v14 = vpop.xlane.xlu0 %1016 }
 0x1e8   :  { %v2391_v34 = vadd.f32 %v2295_v8, %v7700_v59  ;;  %v2581_v51 = vmul.f32 1.442695, %v2450_v28  ;;  %1195 = vadd.xlane.f32.xlu1 %v1194_v30  ;;  %v2392_v15 = vadd.f32 %v2296_v5, %v7701_v2  ;;  %4436 = vpow2.f32 %v2571_v55  ;;  %7703 = vst [vmem:[#allocation86_spill] sm:$0xff] %v6244_v14 }
 0x1e9   :  { %v2577_v19 = vmul.f32 1.442695, %v2448_v54  ;;  %v991_v27 = vsel %vm960_vm0, %v7702_v63, 0.0  ;;  %4438 = vpow2.f32 %v2573_v22  ;;  %v2575_v18 = vmul.f32 1.442695, %v2447_v40 }
 0x1ea   :  { %v523_v57 = vsub.f32 %v5940_v46, %v6044_v53  ;;  %v2100_v4 = vmul.f32 %v2004_v13, %v2004_v13  ;;  %992 = vadd.xlane.f32.xlu0 %v991_v27  ;;  %v6242_v33 = vmul.f32 %v6120_v26, %v6120_v26  ;;  %v664_v44 = vmul.f32 1.442695, %v604_v50 }
 0x1eb   :  { %v890_v21 = vsub.f32 0.0, %v858_v12  ;;  %4440 = vpow2.f32 %v2579_v52  ;;  %v4431_v8 = vpop.eup %4430  ;;  %v2462_v5 = vsub.f32 0.0, %v6169_v41  ;;  %v2601_v28 = vmul.f32 1.442695, %v2460_v25  ;;  %v7704_v52 = vld [vmem:[#allocation54_spill] sm:$0xff]  ;;  %v6255_v59 = vpop.permute.xlu1 %441 }
 0x1ec   :  { %v809_v46 = vsub.f32 %v5956_v62, %v6044_v53  ;;  %4442 = vpow2.f32 %v2581_v51  ;;  %v4433_v55 = vpop.eup %4432  ;;  %v2603_v54 = vmul.f32 1.442695, %v2461_v29  ;;  %v603_v0 = vsub.f32 0.0, %v571_v60  ;;  %v6263_v2 = vpop.xlane.xlu0 %1112 }
 0x1ed   :  { %v2487_v40 = vsub.f32 0.0, %v2391_v34  ;;  %4444 = vpow2.f32 %v2577_v19  ;;  %v2488_v26 = vsub.f32 0.0, %v2392_v15  ;;  %v555_v22 = vmul.f32 %v523_v57, %v523_v57  ;;  %7705 = vst [vmem:[#allocation80_spill] sm:$0xff] %v6263_v2 }
 0x1ee   :  { %4446 = vpow2.f32 %v2575_v18  ;;  %v2405_v13 = vadd.f32 %v6114_v23, %v2100_v4  ;;  %v4435_v50 = vpop.eup %4434  ;;  %v948_v12 = vmul.f32 1.442695, %v890_v21  ;;  %v1030_v41 = vsel %vm960_vm0, %v7704_v52, 0.0 }
 0x1ef   :  { %4448 = vpow2.f32 %v664_v44  ;;  %v1087_v25 = vsel %vm960_vm0, %v4431_v8, 0.0  ;;  %v2605_v62 = vmul.f32 1.442695, %v2462_v5  ;;  %v841_v30 = vmul.f32 %v809_v46, %v809_v46  ;;  %1031 = vadd.xlane.f32.xlu1 %v1030_v41 }
 0x1f0   :  { %v253_v29 = vsub.f32 %v5997_v36, %v6044_v53  ;;  %1088 = vadd.xlane.f32.xlu0 %v1087_v25  ;;  %v2776_v60 = vpack.c.bf16 %v4433_v55, %v4435_v50  ;;  %v6259_v23 = vmul.f32 %v6136_v45, %v6136_v45  ;;  %4450 = vpow2.f32 %v2601_v28 }
 0x1f1   :  { %v662_v34 = vmul.f32 1.442695, %v603_v0  ;;  %v254_v51 = vsub.f32 %v6164_v17, %v6044_v53  ;;  %4452 = vpow2.f32 %v2603_v54  ;;  %v2655_v15 = vmul.f32 1.442695, %v2487_v40  ;;  %v6287_v40 = vpop.permute.xlu1 %721 }
 0x1f2   :  { %v2657_v19 = vmul.f32 1.442695, %v2488_v26  ;;  %4039 = vmatprep.subr.bf16.mxu1 %v2776_v60  ;;  %v2216_v63 = vsub.f32 %v6238_v37, %v5285_v47  ;;  %v4437_v27 = vpop.eup %4436  ;;  %v2501_v18 = vsub.f32 0.0, %v2405_v13  ;;  %4454 = vpow2.f32 %v948_v12  ;;  %v7706_v13 = vld [vmem:[#allocation60_spill] sm:$0xff]  ;;  %v6293_v12 = vpop.xlane.xlu0 %1234 }
 0x1f3   :  { %v1126_v45 = vsel %vm960_vm0, %v5732_v7, 0.0  ;;  %v1209_v57 = vsel %vm960_vm0, %v6102_v38, 0.0  ;;  %v4439_v4 = vpop.eup %4438  ;;  %4456 = vpow2.f32 %v2605_v62  ;;  %v587_v44 = vsub.f32 0.0, %v555_v22 }
 0x1f4   :  { %v873_v21 = vsub.f32 0.0, %v841_v30  ;;  %v6271_v8 = vmul.f32 %v253_v29, %v253_v29  ;;  %1127 = vadd.xlane.f32.xlu1 %v1126_v45  ;;  %1210 = vadd.xlane.f32.xlu0 %v1209_v57  ;;  %v6275_v28 = vmul.f32 %v6151_v10, %v6151_v10  ;;  %4458 = vpow2.f32 %v662_v34 }
 0x1f5   :  { %v4441_v5 = vpop.eup %4440  ;;  %v6279_v7 = vsub.f32 %v5881_v11, %v5240_v9  ;;  %v286_v46 = vmul.f32 %v254_v51, %v254_v51  ;;  %v6283_v55 = vsub.f32 %v5881_v11, %v5261_v32  ;;  %4460 = vpow2.f32 %v2655_v15 }
 0x1f6   :  { %v4443_v38 = vpop.eup %4442  ;;  %v542_v54 = vsub.f32 %v6198_v20, %v6044_v53  ;;  %v2312_v0 = vmul.f32 %v2216_v63, %v2216_v63  ;;  %4462 = vpow2.f32 %v2657_v19  ;;  %v2683_v26 = vmul.f32 1.442695, %v2501_v18  ;;  %v7707_v19 = vld [vmem:[#allocation84_spill] sm:$0xff] }
 0x1f7   :  { %v4445_v10 = vpop.eup %4444  ;;  %v1248_v22 = vsel %vm960_vm0, %v5849_v6, 0.0  ;;  %v1045_v50 = vsel %vm960_vm0, %v7706_v13, 0.0  ;;  %v6295_v52 = vmul.f32 1.442695, %v587_v44  ;;  %v6297_v41 = vmul.f32 1.442695, %v873_v21 }
 0x1f8   :  { %v4447_v11 = vpop.eup %4446  ;;  %1249 = vadd.xlane.f32.xlu1 %v1248_v22  ;;  %1046 = vadd.xlane.f32.xlu0 %v1045_v50  ;;  %v2751_v62 = vpack.c.bf16 %v4441_v5, %v4439_v4  ;;  %v6302_v29 = vsub.f32 %v6028_v39, %v5240_v9  ;;  %v1957_v6 = vsub.f32 %v6100_v61, %v5240_v9  ;;  %v318_v60 = vsub.f32 0.0, %v286_v46  ;;  %v7708_v4 = vld [vmem:[#allocation42_spill] sm:$0xff]  ;;  %v6332_v50 = vpop.xlane.xlu0 %968 }
 0x1f9   :  { %v4449_v30 = vpop.eup %4448  ;;  %v2752_v34 = vpack.c.bf16 %v4443_v38, %v4447_v11  ;;  %v6308_v51 = vsub.f32 %v6028_v39, %v5261_v32  ;;  %v574_v15 = vmul.f32 %v542_v54, %v542_v54  ;;  %v2408_v63 = vadd.f32 %v2312_v0, %v7707_v19  ;;  %v6328_v54 = vpop.permute.xlu1 %725  ;;  %7710 = vst [vmem:[#allocation40_spill] sm:$0xff] %v6332_v50 }
 0x1fa   :  { %2857 = vmatprep.subr.bf16.mxu0 %v2751_v62  ;;  %v2750_v18 = vpack.c.bf16 %v4445_v10, %v4437_v27  ;;  %v6311_v45 = vpop.eup %4450  ;;  %4464 = vpow2.f32 %v2683_v26  ;;  %v2010_v57 = vsub.f32 %v6198_v20, %v5270_v58  ;;  %v982_v44 = vsel %vm960_vm0, %v7708_v4, 0.0  ;;  %7709 = vst [vmem:[#allocation59_spill] sm:$0xff] %v6328_v54 }
 0x1fb   :  { %4040 = vmatpush3.bf16.msra.mxu1 %v2752_v34  ;;  %v2163_v21 = vsub.f32 %v6287_v40, %v5264_v35  ;;  %v6319_v39 = vpop.eup %4452  ;;  %v1958_v5 = vsub.f32 %v6100_v61, %v5261_v32  ;;  %v1141_v27 = vsel %vm960_vm0, %v4449_v30, 0.0  ;;  %v2164_v46 = vsub.f32 %v6287_v40, %v5273_v31 }
 0x1fc   :  { %2858 = vmatpush1.bf16.msra.mxu0 %v2750_v18  ;;  %983 = vadd.xlane.f32.xlu1 %v982_v44  ;;  %v2165_v38 = vsub.f32 %v6287_v40, %v5285_v47  ;;  %v4455_v0 = vpop.eup %4454  ;;  %v1959_v10 = vsub.f32 %v6100_v61, %v5270_v58  ;;  %v2053_v26 = vmul.f32 %v1957_v6, %v1957_v6  ;;  %v380_v22 = vmul.f32 1.442695, %v318_v60  ;;  %v6357_v14 = vpop.xlane.xlu0 %1064 }
 0x1fd   :  { %1142 = vadd.xlane.f32.xlu0 %v1141_v27  ;;  %v2259_v13 = vmul.f32 %v2163_v21, %v2163_v21  ;;  %v6334_v11 = vpop.eup %4456  ;;  %v606_v62 = vsub.f32 0.0, %v574_v15  ;;  %v2504_v30 = vsub.f32 0.0, %v2408_v63  ;;  %v2260_v34 = vmul.f32 %v2164_v46, %v2164_v46 }
 0x1fe   :  { %v2261_v19 = vmul.f32 %v2165_v38, %v2165_v38  ;;  %v6336_v18 = vpop.eup %4458  ;;  %v2106_v4 = vmul.f32 %v2010_v57, %v2010_v57  ;;  %v1078_v44 = vsel %vm960_vm0, %v5908_v43, 0.0  ;;  %v2166_v6 = vsub.f32 %v6328_v54, %v5264_v35  ;;  %v7711_v38 = vld [vmem:[#allocation90_spill] sm:$0xff] }
 0x1ff   :  { %v2167_v60 = vsub.f32 %v6328_v54, %v5273_v31  ;;  %v6344_v21 = vpop.eup %4460  ;;  %v2356_v27 = vadd.f32 %v2260_v34, %v5960_v16  ;;  %v1263_v63 = vsel %vm960_vm0, %v4455_v0, 0.0  ;;  %v2168_v57 = vsub.f32 %v6328_v54, %v5285_v47 }
 0x200   :  { %v2357_v15 = vadd.f32 %v2261_v19, %v5964_v1  ;;  %1079 = vadd.xlane.f32.xlu1 %v1078_v44  ;;  %v6351_v46 = vpop.eup %4462  ;;  %v2054_v43 = vmul.f32 %v1958_v5, %v1958_v5  ;;  %v2355_v25 = vadd.f32 %v2259_v13, %v7711_v38  ;;  %v2262_v17 = vmul.f32 %v2166_v6, %v2166_v6  ;;  %v6355_v44 = vpop.permute.xlu1 %797 }
 0x201   :  { %1264 = vadd.xlane.f32.xlu0 %v1263_v63  ;;  %v2263_v36 = vmul.f32 %v2167_v60, %v2167_v60  ;;  %v2055_v50 = vmul.f32 %v1959_v10, %v1959_v10  ;;  %v2689_v42 = vmul.f32 1.442695, %v2504_v30  ;;  %v2452_v2 = vsub.f32 0.0, %v2356_v27  ;;  %v7712_v60 = vld [vmem:[#allocation55_spill] sm:$0xff] }
 0x202   :  { %v2264_v16 = vmul.f32 %v2168_v57, %v2168_v57  ;;  %v668_v34 = vmul.f32 1.442695, %v606_v62  ;;  %v2411_v1 = vadd.f32 %v6275_v28, %v2106_v4  ;;  %v2358_v19 = vadd.f32 %v2262_v17, %v2053_v26  ;;  %v7713_v28 = vld [vmem:[#allocation48_spill] sm:$0xff] }
 0x203   :  { %v2359_v0 = vadd.f32 %v2263_v36, %v2054_v43  ;;  %4466 = vpow2.f32 %v380_v22  ;;  %v2453_v5 = vsub.f32 0.0, %v2357_v15  ;;  %v2585_v54 = vmul.f32 1.442695, %v2452_v2  ;;  %v7714_v43 = vld [vmem:[#allocation56_spill] sm:$0xff] }
 0x204   :  { %v2360_v13 = vadd.f32 %v2264_v16, %v2055_v50  ;;  %v6359_v63 = vpop.eup %4464  ;;  %v2451_v6 = vsub.f32 0.0, %v2355_v25  ;;  %v2454_v10 = vsub.f32 0.0, %v2358_v19  ;;  %v1200_v62 = vsel %vm960_vm0, %v7712_v60, 0.0  ;;  %v6367_v25 = vpop.xlane.xlu0 %1186 }
 0x205   :  { %v2455_v30 = vsub.f32 0.0, %v2359_v0  ;;  %v2013_v17 = vsub.f32 %v6221_v56, %v5270_v58  ;;  %4468 = vpow2.f32 %v2689_v42  ;;  %1201 = vadd.xlane.f32.xlu1 %v1200_v62  ;;  %v997_v26 = vsel %vm960_vm0, %v7713_v28, 0.0  ;;  %v730_v16 = vpop.permute.xlu1 %729 }
 0x206   :  { %v2456_v36 = vsub.f32 0.0, %v2360_v13  ;;  %4470 = vpow2.f32 %v668_v34  ;;  %v2507_v2 = vsub.f32 0.0, %v2411_v1  ;;  %v2589_v22 = vmul.f32 1.442695, %v2454_v10  ;;  %998 = vadd.xlane.f32.xlu0 %v997_v26 }
 0x207   :  { %v2591_v50 = vmul.f32 1.442695, %v2455_v30  ;;  %v526_v4 = vsub.f32 %v6255_v59, %v6044_v53  ;;  %4472 = vpow2.f32 %v2585_v54  ;;  %v2587_v27 = vmul.f32 1.442695, %v2453_v5  ;;  %v7715_v54 = vld [vmem:[#allocation94_spill] sm:$0xff] }
 0x208   :  { %v2593_v15 = vmul.f32 1.442695, %v2456_v36  ;;  %v2583_v57 = vmul.f32 1.442695, %v2451_v6  ;;  %4474 = vpow2.f32 %v2589_v22  ;;  %v2222_v42 = vsub.f32 %v6355_v44, %v5285_v47 }
 0x209   :  { %v1036_v38 = vsel %vm960_vm0, %v7714_v43, 0.0  ;;  %v1960_v34 = vsub.f32 %v6255_v59, %v5240_v9  ;;  %v1961_v1 = vsub.f32 %v6255_v59, %v5261_v32  ;;  %4476 = vpow2.f32 %v2591_v50 }
 0x20a   :  { %1037 = vadd.xlane.f32.xlu1 %v1036_v38  ;;  %v1093_v19 = vsel %vm960_vm0, %v7715_v54, 0.0  ;;  %v2109_v0 = vmul.f32 %v2013_v17, %v2013_v17  ;;  %v1962_v5 = vsub.f32 %v6255_v59, %v5270_v58  ;;  %4478 = vpow2.f32 %v2593_v15  ;;  %v6388_v17 = vpop.xlane.xlu0 %1022 }
 0x20b   :  { %v2318_v13 = vmul.f32 %v2222_v42, %v2222_v42  ;;  %1094 = vadd.xlane.f32.xlu0 %v1093_v19  ;;  %v558_v6 = vmul.f32 %v526_v4, %v526_v4  ;;  %4480 = vpow2.f32 %v2587_v27  ;;  %v2169_v10 = vsub.f32 %v730_v16, %v5264_v35 }
 0x20c   :  { %v2170_v30 = vsub.f32 %v730_v16, %v5273_v31  ;;  %v812_v60 = vsub.f32 %v6287_v40, %v6044_v53  ;;  %4482 = vpow2.f32 %v2583_v57  ;;  %v2171_v36 = vsub.f32 %v730_v16, %v5285_v47 }
 0x20d   :  { %v2414_v62 = vadd.f32 %v2318_v13, %v2109_v0  ;;  %v4467_v28 = vpop.eup %4466  ;;  %v2056_v58 = vmul.f32 %v1960_v34, %v1960_v34  ;;  %v2057_v59 = vmul.f32 %v1961_v1, %v1961_v1  ;;  %v2265_v26 = vmul.f32 %v2169_v10, %v2169_v10  ;;  %v7717_v34 = vld [vmem:[#allocation78_spill] sm:$0xff] }
 0x20e   :  { %v2266_v22 = vmul.f32 %v2170_v30, %v2170_v30  ;;  %v2695_v50 = vmul.f32 1.442695, %v2507_v2  ;;  %v2058_v4 = vmul.f32 %v1962_v5, %v1962_v5  ;;  %v2267_v15 = vmul.f32 %v2171_v36, %v2171_v36 }
 0x20f   :  { %v2510_v27 = vsub.f32 0.0, %v2414_v62  ;;  %v4469_v42 = vpop.eup %4468  ;;  %v7716_v43 = vsub.f32 0.0, %v6271_v8  ;;  %v590_v40 = vsub.f32 0.0, %v558_v6  ;;  %v2361_v57 = vadd.f32 %v2265_v26, %v2056_v58  ;;  %v7718_v8 = vld [vmem:[#allocation51_spill] sm:$0xff] }
 0x210   :  { %v2362_v54 = vadd.f32 %v2266_v22, %v2057_v59  ;;  %v4471_v47 = vpop.eup %4470  ;;  %v844_v19 = vmul.f32 %v812_v60, %v812_v60  ;;  %v2363_v13 = vadd.f32 %v2267_v15, %v2058_v4  ;;  %v1132_v1 = vsel %vm960_vm0, %v7717_v34, 0.0  ;;  %v6403_v59 = vpop.xlane.xlu0 %1118 }
 0x211   :  { %v6392_v38 = vmul.f32 1.442695, %v7716_v43  ;;  %v2701_v0 = vmul.f32 1.442695, %v2510_v27  ;;  %v4473_v10 = vpop.eup %4472  ;;  %v2098_v2 = vmul.f32 %v6302_v29, %v6302_v29  ;;  %v2457_v5 = vsub.f32 0.0, %v2361_v57  ;;  %1133 = vadd.xlane.f32.xlu1 %v1132_v1 }
 0x212   :  { %v2458_v30 = vsub.f32 0.0, %v2362_v54  ;;  %v1215_v62 = vsel %vm960_vm0, %v7718_v8, 0.0  ;;  %v4475_v6 = vpop.eup %4474  ;;  %v2099_v36 = vmul.f32 %v6308_v51, %v6308_v51  ;;  %4484 = vpow2.f32 %v2695_v50  ;;  %v7719_v54 = vld [vmem:[#allocation41_spill] sm:$0xff] }
 0x213   :  { %v2459_v60 = vsub.f32 0.0, %v2363_v13  ;;  %1216 = vadd.xlane.f32.xlu0 %v1215_v62  ;;  %v2779_v58 = vpack.c.bf16 %v4469_v42, %v6359_v63  ;;  %v4477_v26 = vpop.eup %4476  ;;  %v636_v22 = vmul.f32 1.442695, %v590_v40  ;;  %4486 = vpow2.f32 %v2701_v0  ;;  %v7720_v13 = vld [vmem:[#allocation43_spill] sm:$0xff] }
 0x214   :  { %v2595_v29 = vmul.f32 1.442695, %v2457_v5  ;;  %v2597_v4 = vmul.f32 1.442695, %v2458_v30  ;;  %v4479_v27 = vpop.eup %4478  ;;  %v876_v15 = vsub.f32 0.0, %v844_v19  ;;  %v814_v43 = vsub.f32 %v730_v16, %v6044_v53  ;;  %v7721_v19 = vld [vmem:[#allocation91_spill] sm:$0xff] }
 0x215   :  { %v2599_v57 = vmul.f32 1.442695, %v2459_v60  ;;  %4041 = vmatprep.subr.bf16.mxu1 %v2779_v58  ;;  %v1254_v51 = vsel %vm960_vm0, %v7719_v54, 0.0  ;;  %v4481_v50 = vpop.eup %4480  ;;  %v6409_v34 = vadd.f32 %v7720_v13, %v2098_v2  ;;  %v2205_v63 = vsub.f32 %v6055_v3, %v5264_v35  ;;  %v6422_v60 = vpop.xlane.xlu0 %1240 }
 0x216   :  { %4488 = vpow2.f32 %v2595_v29  ;;  %1255 = vadd.xlane.f32.xlu1 %v1254_v51  ;;  %v1051_v42 = vsel %vm960_vm0, %v4467_v28, 0.0  ;;  %v4483_v40 = vpop.eup %4482  ;;  %v2209_v53 = vsub.f32 %v7721_v19, %v5273_v31  ;;  %v2754_v16 = vpack.c.bf16 %v4477_v26, %v4473_v10  ;;  %v7722_v28 = vld [vmem:[#allocation44_spill] sm:$0xff]  ;;  %v7723_v10 = vld [vmem:[#allocation67_spill] sm:$0xff] }
 0x217   :  { %4490 = vpow2.f32 %v2597_v4  ;;  %1052 = vadd.xlane.f32.xlu0 %v1051_v42  ;;  %v2755_v0 = vpack.c.bf16 %v4479_v27, %v4481_v50  ;;  %v2206_v1 = vsub.f32 %v6055_v3, %v5273_v31  ;;  %v2208_v2 = vsub.f32 %v7721_v19, %v5264_v35 }
 0x218   :  { %4492 = vpow2.f32 %v2599_v57  ;;  %v2753_v5 = vpack.c.bf16 %v4475_v6, %v4483_v40  ;;  %v920_v30 = vmul.f32 1.442695, %v876_v15  ;;  %v846_v8 = vmul.f32 %v814_v43, %v814_v43  ;;  %2859 = vmatprep.subr.bf16.mxu0 %v2754_v16  ;;  %v7724_v57 = vld [vmem:[#allocation77_spill] sm:$0xff]  ;;  %v7725_v40 = vld [vmem:[#allocation79_spill] sm:$0xff]  ;;  %v6456_v16 = vld [vmem:[%s7459_s0] ss:$0 sm:$0xff] }
 0x219   :  { %4494 = vpow2.f32 %v636_v22  ;;  %v988_v62 = vsel %vm960_vm0, %v7722_v28, 0.0  ;;  %4042 = vmatpush3.bf16.msra.mxu1 %v2755_v0  ;;  %v6426_v58 = vadd.f32 %v7723_v10, %v2099_v36  ;;  %v2301_v3 = vmul.f32 %v2205_v63, %v2205_v63  ;;  %v7726_v10 = vld [vmem:[#allocation49_spill] sm:$0xff] }
 0x21a   :  { %4496 = vpow2.f32 %v6295_v52  ;;  %989 = vadd.xlane.f32.xlu1 %v988_v62  ;;  %v1147_v26 = vsel %vm960_vm0, %v4471_v47, 0.0  ;;  %2860 = vmatpush1.bf16.msra.mxu0 %v2753_v5  ;;  %v2095_v6 = vmul.f32 %v6279_v7, %v6279_v7  ;;  %v2305_v22 = vmul.f32 %v2209_v53, %v2209_v53  ;;  %v6450_v63 = vpop.xlane.xlu0 %974 }
 0x21b   :  { %4498 = vpow2.f32 %v6297_v41  ;;  %v2215_v29 = vsub.f32 %v6238_v37, %v5273_v31  ;;  %1148 = vadd.xlane.f32.xlu0 %v1147_v26  ;;  %v2096_v52 = vmul.f32 %v6283_v55, %v6283_v55  ;;  %v2302_v36 = vmul.f32 %v2206_v1, %v2206_v1 }
 0x21c   :  { %4500 = vpow2.f32 %v6392_v38  ;;  %v2304_v4 = vmul.f32 %v2208_v2, %v2208_v2  ;;  %v4485_v27 = vpop.eup %4484  ;;  %v2499_v47 = vsub.f32 0.0, %v6409_v34  ;;  %v878_v15 = vsub.f32 0.0, %v846_v8 }
 0x21d   :  { %4502 = vpow2.f32 %v920_v30  ;;  %v1084_v7 = vsel %vm960_vm0, %v6185_v24, 0.0  ;;  %v4487_v41 = vpop.eup %4486  ;;  %v2500_v43 = vsub.f32 0.0, %v6426_v58  ;;  %v6442_v54 = vadd.f32 %v2301_v3, %v7724_v57 }
 0x21e   :  { %v2214_v55 = vsub.f32 %v6238_v37, %v5264_v35  ;;  %1085 = vadd.xlane.f32.xlu1 %v1084_v7  ;;  %v1269_v38 = vsel %vm960_vm0, %v6166_v49, 0.0  ;;  %v2401_v51 = vadd.f32 %v2305_v22, %v2096_v52  ;;  %v2311_v50 = vmul.f32 %v2215_v29, %v2215_v29  ;;  %v7727_v22 = vld [vmem:[#allocation83_spill] sm:$0xff] }
 0x21f   :  { %v2221_v13 = vsub.f32 %v6355_v44, %v5273_v31  ;;  %1270 = vadd.xlane.f32.xlu0 %v1269_v38  ;;  %v2782_v24 = vpack.c.bf16 %v4487_v41, %v4485_v27  ;;  %v2398_v53 = vadd.f32 %v2302_v36, %v7725_v40  ;;  %v827_v49 = vsub.f32 %v7721_v19, %v6456_v16  ;;  %v7728_v27 = vld [vmem:[#allocation63_spill] sm:$0xff] }
 0x220   :  { %v4489_v42 = vpop.eup %4488  ;;  %v2400_v0 = vadd.f32 %v2304_v4, %v2095_v6  ;;  %v2009_v1 = vsub.f32 %v6198_v20, %v5261_v32  ;;  %v2012_v2 = vsub.f32 %v6221_v56, %v5261_v32  ;;  %v924_v5 = vmul.f32 1.442695, %v878_v15 }
 0x221   :  { %v4491_v31 = vpop.eup %4490  ;;  %v1206_v30 = vsel %vm960_vm0, %v6206_v48, 0.0  ;;  %4043 = vmatprep.subr.bf16.mxu1 %v2782_v24  ;;  %v2756_v8 = vpack.c.bf16 %v6311_v45, %v4489_v42  ;;  %v2310_v62 = vmul.f32 %v2214_v55, %v2214_v55  ;;  %v2220_v19 = vsub.f32 %v6355_v44, %v5264_v35  ;;  %v7730_v55 = vld [vmem:[#allocation58_spill] sm:$0xff] }
 0x222   :  { %v4493_v28 = vpop.eup %4492  ;;  %1207 = vadd.xlane.f32.xlu1 %v1206_v30  ;;  %v1003_v3 = vsel %vm960_vm0, %v7726_v10, 0.0  ;;  %v2757_v26 = vpack.c.bf16 %v6319_v39, %v4491_v31  ;;  %v2497_v32 = vsub.f32 0.0, %v2401_v51  ;;  %v2407_v29 = vadd.f32 %v2311_v50, %v7727_v22  ;;  %v7729_v39 = vld [vmem:[#allocation96_spill] sm:$0xff]  ;;  %v6486_v38 = vpop.xlane.xlu0 %1070  ;;  %v7732_v31 = vld [vmem:[#allocation62_spill] sm:$0xff] }
 0x223   :  { %v4495_v6 = vpop.eup %4494  ;;  %v2317_v52 = vmul.f32 %v2221_v13, %v2221_v13  ;;  %1004 = vadd.xlane.f32.xlu0 %v1003_v3  ;;  %v2758_v48 = vpack.c.bf16 %v6334_v11, %v4493_v28  ;;  %v2494_v36 = vsub.f32 0.0, %v2398_v53  ;;  %v2008_v35 = vsub.f32 %v6198_v20, %v5240_v9  ;;  %v7735_v10 = vld [vmem:[#allocation98_spill] sm:$0xff] }
 0x224   :  { %v6474_v45 = vpop.eup %4496  ;;  %v2011_v4 = vsub.f32 %v6221_v56, %v5240_v9  ;;  %2861 = vmatprep.subr.bf16.mxu0 %v2757_v26  ;;  %v2760_v15 = vpack.c.bf16 %v7729_v39, %v7728_v27  ;;  %v2105_v41 = vmul.f32 %v2009_v1, %v2009_v1  ;;  %v2108_v57 = vmul.f32 %v2012_v2, %v2012_v2  ;;  %v7731_v9 = vld [vmem:[#allocation82_spill] sm:$0xff]  ;;  %v7733_v2 = vld [vmem:[#allocation95_spill] sm:$0xff]  ;;  %v7738_v39 = vld [vmem:[#allocation76_spill] sm:$0xff] }
 0x225   :  { %v6482_v7 = vpop.eup %4498  ;;  %4504 = vpow2.f32 %v924_v5  ;;  %v1042_v11 = vsel %vm960_vm0, %v7730_v55, 0.0  ;;  %4044 = vmatpush3.bf16.msra.mxu1 %v2758_v48  ;;  %2862 = vmatpush1.bf16.msra.mxu0 %v2756_v8  ;;  %v2496_v51 = vsub.f32 0.0, %v2400_v0  ;;  %v2406_v50 = vadd.f32 %v2310_v62, %v7731_v9  ;;  %v7734_v0 = vld [vmem:[#allocation92_spill] sm:$0xff] }
 0x226   :  { %v6488_v20 = vpop.eup %4500  ;;  %v2316_v13 = vmul.f32 %v2220_v19, %v2220_v19  ;;  %1043 = vadd.xlane.f32.xlu1 %v1042_v11  ;;  %v1099_v24 = vsel %vm960_vm0, %v4495_v6, 0.0  ;;  %2863 = vmatprep.subr.bf16.mxu0 %v2760_v15  ;;  %v2675_v40 = vmul.f32 1.442695, %v2497_v32  ;;  %v2503_v53 = vsub.f32 0.0, %v2407_v29  ;;  %v7739_v15 = vld [vmem:[#allocation72_spill] sm:$0xff]  ;;  %v7740_v11 = vld [vmem:[#allocation65_spill] sm:$0xff] }
 0x227   :  { %v4503_v42 = vpop.eup %4502  ;;  %v2413_v1 = vadd.f32 %v2317_v52, %v2108_v57  ;;  %1100 = vadd.xlane.f32.xlu0 %v1099_v24  ;;  %v2759_v5 = vpack.c.bf16 %v7733_v2, %v7732_v31  ;;  %v2493_v30 = vsub.f32 0.0, %v6442_v54  ;;  %v2104_v8 = vmul.f32 %v2008_v35, %v2008_v35  ;;  %v7736_v35 = vld [vmem:[#allocation89_spill] sm:$0xff] }
 0x228   :  { %v2107_v28 = vmul.f32 %v2011_v4, %v2011_v4  ;;  %v2763_v62 = vpack.c.bf16 %v7735_v10, %v7734_v0  ;;  %v2669_v19 = vmul.f32 1.442695, %v2494_v36  ;;  %v859_v3 = vmul.f32 %v827_v49, %v827_v49  ;;  %v7737_v36 = vld [vmem:[#allocation97_spill] sm:$0xff]  ;;  %v6503_v4 = vpop.xlane.xlu0 %1192  ;;  %v7746_v0 = vld [vmem:[#allocation46_spill] sm:$0xff] }
 0x229   :  { %v2410_v26 = vadd.f32 %v6259_v23, %v2105_v41  ;;  %v1138_v6 = vsel %vm960_vm0, %v6336_v18, 0.0  ;;  %2864 = vmatpush1.bf16.msra.mxu0 %v2759_v5  ;;  %v2673_v32 = vmul.f32 1.442695, %v2496_v51  ;;  %v2502_v22 = vsub.f32 0.0, %v2406_v50  ;;  %v7744_v5 = vld [vmem:[#allocation88_spill] sm:$0xff] }
 0x22a   :  { %v2412_v29 = vadd.f32 %v2316_v13, %v2107_v28  ;;  %1139 = vadd.xlane.f32.xlu1 %v1138_v6  ;;  %v1221_v52 = vsel %vm960_vm0, %v4503_v42, 0.0  ;;  %2865 = vmatprep.subr.bf16.mxu0 %v2763_v62  ;;  %4506 = vpow2.f32 %v2675_v40  ;;  %v2687_v54 = vmul.f32 1.442695, %v2503_v53  ;;  %v7741_v13 = vld [vmem:[#allocation81_spill] sm:$0xff]  ;;  %v7742_v42 = vld [vmem:[#allocation99_spill] sm:$0xff]  ;;  %v7748_v6 = vld [vmem:[#allocation74_spill] sm:$0xff] }
 0x22b   :  { %v2509_v48 = vsub.f32 0.0, %v2413_v1  ;;  %1222 = vadd.xlane.f32.xlu0 %v1221_v52  ;;  %v2762_v49 = vpack.c.bf16 %v7737_v36, %v7736_v35  ;;  %v2681_v23 = vmul.f32 1.442695, %v2500_v43  ;;  %v2667_v18 = vmul.f32 1.442695, %v2493_v30  ;;  %v7743_v40 = vld [vmem:[#allocation73_spill] sm:$0xff] }
 0x22c   :  { %v2409_v27 = vadd.f32 %v6242_v33, %v2104_v8  ;;  %v2766_v41 = vpack.c.bf16 %v7739_v15, %v7738_v39  ;;  %4508 = vpow2.f32 %v2669_v19  ;;  %v891_v57 = vsub.f32 0.0, %v859_v3  ;;  %v7745_v30 = vld [vmem:[#allocation50_spill] sm:$0xff]  ;;  %v7747_v62 = vld [vmem:[#allocation53_spill] sm:$0xff] }
 0x22d   :  { %v2506_v55 = vsub.f32 0.0, %v2410_v26  ;;  %v1260_v51 = vsel %vm960_vm0, %v7740_v11, 0.0  ;;  %2866 = vmatpush1.bf16.msra.mxu0 %v2762_v49  ;;  %4510 = vpow2.f32 %v2673_v32  ;;  %v2685_v9 = vmul.f32 1.442695, %v2502_v22  ;;  %v7749_v32 = vld [vmem:[#allocation69_spill] sm:$0xff]  ;;  %v7752_v39 = vld [vmem:[#allocation34_spill] sm:$0xff] }
 0x22e   :  { %v2508_v50 = vsub.f32 0.0, %v2412_v29  ;;  %1261 = vadd.xlane.f32.xlu1 %v1260_v51  ;;  %v1275_v58 = vsel %vm960_vm0, %v7741_v13, 0.0  ;;  %2867 = vmatprep.subr.bf16.mxu0 %v2766_v41  ;;  %v525_v33 = vsub.f32 %v6100_v61, %v6456_v16  ;;  %4512 = vpow2.f32 %v2687_v54  ;;  %v7750_v29 = vld [vmem:[#allocation57_spill] sm:$0xff] }
 0x22f   :  { %v4505_v43 = vpop.eup %4504  ;;  %v2699_v24 = vmul.f32 1.442695, %v2509_v48  ;;  %1276 = vadd.xlane.f32.xlu0 %v1275_v58  ;;  %v2765_v53 = vpack.c.bf16 %v7743_v40, %v7742_v42  ;;  %v6518_v1 = vpop.xlane.xlu1 %1010  ;;  %v2679_v31 = vmul.f32 1.442695, %v2499_v47  ;;  %4514 = vpow2.f32 %v2667_v18  ;;  %v7751_v48 = vld [vmem:[#allocation66_spill] sm:$0xff] }
 0x230   :  { %v2505_v2 = vsub.f32 0.0, %v2409_v27  ;;  %v2769_v8 = vpack.c.bf16 %v7745_v30, %v7744_v5  ;;  %4516 = vpow2.f32 %v2681_v23  ;;  %v2693_v28 = vmul.f32 1.442695, %v2506_v55  ;;  %v6551_v58 = vld [vmem:[%s7460_s1] sm:$0x3] }
 0x231   :  { %v994_v61 = vsel %vm960_vm0, %v7746_v0, 0.0  ;;  %2868 = vmatpush1.bf16.msra.mxu0 %v2765_v53  ;;  %v6526_v10 = vpop.xlane.xlu0 %1028  ;;  %v301_v19 = vsub.f32 0.0, %v7747_v62  ;;  %4518 = vpow2.f32 %v2685_v9  ;;  %v2697_v3 = vmul.f32 1.442695, %v2508_v50  ;;  %v7754_v30 = vld [vmem:[#allocation36_spill] sm:$0xff] }
 0x232   :  { %995 = vadd.xlane.f32.xlu1 %v994_v61  ;;  %v1227_v34 = vsel %vm960_vm0, %v4505_v43, 0.0  ;;  %2869 = vmatprep.subr.bf16.mxu0 %v2769_v8  ;;  %v950_v47 = vmul.f32 1.442695, %v891_v57  ;;  %v557_v26 = vmul.f32 %v525_v33, %v525_v33  ;;  %4520 = vpow2.f32 %v2699_v24  ;;  %v7755_v62 = vld [vmem:[#allocation20_spill] sm:$0xff] }
 0x233   :  { %1228 = vadd.xlane.f32.xlu0 %v1227_v34  ;;  %v2768_v22 = vpack.c.bf16 %v7749_v32, %v7748_v6  ;;  %4522 = vpow2.f32 %v2679_v31  ;;  %v811_v52 = vsub.f32 %v7750_v29, %v6456_v16  ;;  %v2691_v54 = vmul.f32 1.442695, %v2505_v2 }
 0x234   :  { %v2772_v35 = vpack.c.bf16 %v7751_v48, %v6351_v46  ;;  %v4507_v36 = vpop.eup %4506  ;;  %4524 = vpow2.f32 %v2693_v28  ;;  %v1090_v49 = vsel %vm960_vm0, %v6474_v45, 0.0  ;;  %v255_v15 = vsub.f32 %v7752_v39, %v6456_v16  ;;  %v7753_v46 = vld [vmem:[#allocation39_spill] sm:$0xff] }
 0x235   :  { %2870 = vmatpush1.bf16.msra.mxu0 %v2768_v22  ;;  %v6538_v23 = vpop.xlane.xlu1 %1109  ;;  %4526 = vpow2.f32 %v2697_v3  ;;  %v589_v41 = vsub.f32 0.0, %v557_v26  ;;  %v2771_v57 = vpack.c.bf16 %v7753_v46, %v6344_v21  ;;  %v346_v11 = vmul.f32 1.442695, %v301_v19 }
 0x236   :  { %1091 = vadd.xlane.f32.xlu1 %v1090_v49  ;;  %2871 = vmatprep.subr.bf16.mxu0 %v2772_v35  ;;  %v6540_v18 = vpop.xlane.xlu0 %1124  ;;  %v4509_v27 = vpop.eup %4508  ;;  %4528 = vpow2.f32 %v950_v47  ;;  %v843_v45 = vmul.f32 %v811_v52, %v811_v52  ;;  %v1212_v50 = vsel %vm960_vm0, %v6482_v7, 0.0  ;;  %v287_v21 = vmul.f32 %v255_v15, %v255_v15  ;;  %v7757_v52 = vld [vmem:[#allocation93_spill] sm:$0xff]  ;;  %v7758_v49 = vld [vmem:[#allocation75_spill] sm:$0xff] }
 0x237   :  { %v4511_v55 = vpop.eup %4510  ;;  %4530 = vpow2.f32 %v2691_v54  ;;  %v2775_v51 = vpack.c.bf16 %v4507_v36, %v4509_v27  ;;  %v634_v33 = vmul.f32 1.442695, %v589_v41  ;;  %v543_v7 = vsub.f32 %v6221_v56, %v6456_v16 }
 0x238   :  { %v4513_v9 = vpop.eup %4512  ;;  %4532 = vpow2.f32 %v346_v11  ;;  %v875_v31 = vsub.f32 0.0, %v843_v45  ;;  %v6559_v8 = vrot.slane %v6551_v58, %v7754_v30  ;;  %v1048_v28 = vsel %vm960_vm0, %v6488_v20, 0.0  ;;  %v7756_v20 = vld [vmem:[#allocation25_spill] sm:$0xff] }
 0x239   :  { %2872 = vmatpush1.bf16.msra.mxu0 %v2771_v57  ;;  %v4515_v13 = vpop.eup %4514  ;;  %v966_v42 = vpop.xlane.xlu1 %965  ;;  %v319_v3 = vsub.f32 0.0, %v287_v21  ;;  %4534 = vpow2.f32 %v634_v33  ;;  %v575_v26 = vmul.f32 %v543_v7, %v543_v7  ;;  %v829_v6 = vsub.f32 %v6238_v37, %v6456_v16  ;;  %v7759_v37 = vld [vmem:[#allocation23_spill] sm:$0xff] }
 0x23a   :  { %1213 = vadd.xlane.f32.xlu1 %v1212_v50  ;;  %2873 = vmatprep.subr.bf16.mxu0 %v2775_v51  ;;  %v4517_v43 = vpop.eup %4516  ;;  %v2774_v24 = vpack.c.bf16 %v4511_v55, %v4515_v13  ;;  %v6553_v40 = vpop.xlane.xlu0 %1246  ;;  %v1485_v19 = vsub.f32 %v7755_v62, %v6559_v8  ;;  %v918_v47 = vmul.f32 1.442695, %v875_v31  ;;  %v1487_v29 = vsub.f32 %v7756_v20, %v6559_v8 }
 0x23b   :  { %v4519_v53 = vpop.eup %4518  ;;  %v2778_v2 = vpack.c.bf16 %v4513_v9, %v4517_v43  ;;  %v1144_v54 = vsel %vm960_vm0, %v7757_v52, 0.0  ;;  %v1169_v27 = vmul.f32 %v7758_v49, %v6518_v1  ;;  %v239_v41 = vsub.f32 %v7759_v37, %v6456_v16 }
 0x23c   :  { %v4521_v5 = vpop.eup %4520  ;;  %v1549_v46 = vmul.f32 %v1485_v19, %v1485_v19  ;;  %v382_v55 = vmul.f32 1.442695, %v319_v3  ;;  %4536 = vpow2.f32 %v918_v47  ;;  %v607_v11 = vsub.f32 0.0, %v575_v26  ;;  %v7762_v47 = vld [vmem:[#allocation38_spill] sm:$0xff] }
 0x23d   :  { %2874 = vmatpush1.bf16.msra.mxu0 %v2774_v24  ;;  %v4523_v0 = vpop.eup %4522  ;;  %v861_v45 = vmul.f32 %v829_v6, %v829_v6  ;;  %v1551_v51 = vmul.f32 %v1487_v29, %v1487_v29  ;;  %v1297_v1 = vmul.f32 %v6293_v12, %v1169_v27  ;;  %v271_v21 = vmul.f32 %v239_v41, %v239_v41  ;;  %v7760_v24 = vld [vmem:[#allocation68_spill] sm:$0xff] }
 0x23e   :  { %1049 = vadd.xlane.f32.xlu1 %v1048_v28  ;;  %2875 = vmatprep.subr.bf16.mxu0 %v2778_v2  ;;  %v4525_v61 = vpop.eup %4524  ;;  %v2777_v56 = vpack.c.bf16 %v4519_v53, %v4523_v0  ;;  %v1613_v33 = vsub.f32 0.0, %v1549_v46  ;;  %4538 = vpow2.f32 %v382_v55  ;;  %v670_v53 = vmul.f32 1.442695, %v607_v11  ;;  %v7763_v55 = vld [vmem:[#allocation37_spill] sm:$0xff] }
 0x23f   :  { %v4527_v34 = vpop.eup %4526  ;;  %v2781_v32 = vpack.c.bf16 %v4521_v5, %v4525_v61  ;;  %v893_v31 = vsub.f32 0.0, %v861_v45  ;;  %v1615_v2 = vsub.f32 0.0, %v1551_v51  ;;  %v1329_v28 = vmax.f32 %v1297_v1, 1e-20  ;;  %v7764_v51 = vld [vmem:[#allocation9_spill] sm:$0xff] }
 0x240   :  { %v4529_v22 = vpop.eup %4528  ;;  %v303_v0 = vsub.f32 0.0, %v271_v21  ;;  %v1709_v61 = vmul.f32 1.442695, %v1613_v33  ;;  %4540 = vpow2.f32 %v670_v53  ;;  %v1170_v26 = vmul.f32 %v6538_v23, %v7762_v47 }
 0x241   :  { %2876 = vmatpush1.bf16.msra.mxu0 %v2777_v56  ;;  %v1062_v48 = vpop.xlane.xlu1 %1061  ;;  %v6571_v35 = vpop.xlane.xlu0 %980  ;;  %v1266_v9 = vsel %vm960_vm0, %v4529_v22, 0.0  ;;  %v954_v3 = vmul.f32 1.442695, %v893_v31  ;;  %v7761_v56 = vld [vmem:[#allocation59_spill] sm:$0xff]  ;;  %v1713_v6 = vmul.f32 1.442695, %v1615_v2  ;;  %4542 = vrcp.f32 %v1329_v28 }
 0x242   :  { %v4531_v36 = vpop.eup %4530  ;;  %1145 = vadd.xlane.f32.xlu1 %v1144_v54  ;;  %2877 = vmatprep.subr.bf16.mxu0 %v2781_v32  ;;  %v6575_v15 = vmul.f32 %v1062_v48, %v966_v42  ;;  %v527_v42 = vsub.f32 %v7760_v24, %v6456_v16  ;;  %v350_v48 = vmul.f32 1.442695, %v303_v0  ;;  %4544 = vpow2.f32 %v1709_v61  ;;  %v7766_v31 = vld [vmem:[#allocation6_spill] sm:$0xff] }
 0x243   :  { %v2780_v57 = vpack.c.bf16 %v4527_v34, %v4531_v36  ;;  %v4533_v13 = vpop.eup %4532  ;;  %v813_v34 = vsub.f32 %v7761_v56, %v6456_v16  ;;  %4546 = vpow2.f32 %v954_v3  ;;  %v831_v27 = vsub.f32 %v6355_v44, %v6456_v16 }
 0x244   :  { %v4535_v7 = vpop.eup %4534  ;;  %v1000_v5 = vsel %vm960_vm0, %v4533_v13, 0.0  ;;  %v559_v19 = vmul.f32 %v527_v42, %v527_v42  ;;  %4548 = vpow2.f32 %v1713_v6  ;;  %v6606_v11 = vrot.slane %v6551_v58, %v7763_v55  ;;  %v7765_v13 = vld [vmem:[#allocation64_spill] sm:$0xff] }
 0x245   :  { %2878 = vmatpush1.bf16.msra.mxu0 %v2780_v57  ;;  %v6580_v50 = vpop.xlane.xlu1 %1019  ;;  %v1096_v32 = vsel %vm960_vm0, %v4535_v7, 0.0  ;;  %v845_v49 = vmul.f32 %v813_v34, %v813_v34  ;;  %v815_v1 = vsub.f32 %v7765_v13, %v6456_v16  ;;  %v863_v33 = vmul.f32 %v831_v27, %v831_v27 }
 0x246   :  { %1267 = vadd.xlane.f32.xlu1 %v1266_v9  ;;  %v6583_v43 = vpop.xlane.xlu0 %1076  ;;  %v4537_v29 = vpop.eup %4536  ;;  %v591_v36 = vsub.f32 0.0, %v559_v19  ;;  %v1457_v9 = vsub.f32 %v7764_v51, %v6559_v8  ;;  %v1458_v53 = vsub.f32 %v7764_v51, %v6606_v11  ;;  %v1453_v7 = vsub.f32 %v7766_v31, %v6559_v8  ;;  %v7768_v51 = vld [vmem:[#allocation11_spill] sm:$0xff] }
 0x247   :  { %v1218_v23 = vsel %vm960_vm0, %v4537_v29, 0.0  ;;  %v877_v21 = vsub.f32 0.0, %v845_v49  ;;  %v1454_v2 = vsub.f32 %v7766_v31, %v6606_v11  ;;  %v847_v0 = vmul.f32 %v815_v1, %v815_v1 }
 0x248   :  { %v4539_v57 = vpop.eup %4538  ;;  %v638_v44 = vmul.f32 1.442695, %v591_v36  ;;  %v895_v19 = vsub.f32 0.0, %v863_v33  ;;  %v1522_v47 = vmul.f32 %v1458_v53, %v1458_v53  ;;  %v7767_v36 = vld [vmem:[#allocation22_spill] sm:$0xff] }
 0x249   :  { %v6588_v30 = vpop.xlane.xlu1 %1115  ;;  %v1054_v24 = vsel %vm960_vm0, %v4539_v57, 0.0  ;;  %v922_v61 = vmul.f32 1.442695, %v877_v21  ;;  %v1518_v6 = vmul.f32 %v1454_v2, %v1454_v2  ;;  %v1489_v49 = vsub.f32 %v7767_v36, %v6559_v8  ;;  %v1411_v57 = vld [vmem:[%s7464_s5 + $0x110] sm:$0xff] }
 0x24a   :  { %1001 = vadd.xlane.f32.xlu1 %v1000_v5  ;;  %v6590_v12 = vpop.xlane.xlu0 %1198  ;;  %v4541_v58 = vpop.eup %4540  ;;  %v1521_v5 = vmul.f32 %v1457_v9, %v1457_v9  ;;  %v879_v27 = vsub.f32 0.0, %v847_v0  ;;  %v1459_v9 = vsub.f32 %v7768_v51, %v6559_v8 }
 0x24b   :  { %v6625_v16 = vpop.eup %4542  ;;  %v1150_v56 = vsel %vm960_vm0, %v4541_v58, 0.0  ;;  %v1582_v53 = vsub.f32 0.0, %v1518_v6  ;;  %v1553_v0 = vmul.f32 %v1489_v49, %v1489_v49 }
 0x24c   :  { %v4545_v3 = vpop.eup %4544 }
 0x24d   :  { %v1238_v22 = vpop.xlane.xlu1 %1237  ;;  %v4547_v34 = vpop.eup %4546 }
 0x24e   :  { %1097 = vadd.xlane.f32.xlu1 %v1096_v32  ;;  %v1298_v52 = vmul.f32 %v1238_v22, %v1170_v26  ;;  %v6597_v54 = vpop.xlane.xlu0 %1034  ;;  %v1517_v26 = vmul.f32 %v1453_v7, %v1453_v7  ;;  %v4549_v32 = vpop.eup %4548  ;;  %v1585_v22 = vsub.f32 0.0, %v1521_v5  ;;  %v1272_v1 = vsel %vm960_vm0, %v4547_v34, 0.0 }
 0x24f   :  { %v1460_v7 = vsub.f32 %v7768_v51, %v6606_v11  ;;  %v1523_v34 = vmul.f32 %v1459_v9, %v1459_v9 }
 0x250   :  { %v1330_v41 = vmax.f32 %v1298_v52, 1e-20  ;;  %v1805_v52 = vmul.f32 %v4545_v3, %v6625_v16  ;;  %v1581_v58 = vsub.f32 0.0, %v1517_v26  ;;  %v1653_v31 = vmul.f32 1.442695, %v1585_v22  ;;  %v7771_v3 = vld [vmem:[#allocation80_spill] sm:$0xff] }
 0x251   :  { %v6602_v46 = vpop.xlane.xlu1 %971 }
 0x252   :  { %1219 = vadd.xlane.f32.xlu1 %v1218_v23  ;;  %4550 = vrcp.f32 %v1330_v41  ;;  %v6608_v45 = vpop.xlane.xlu0 %1130  ;;  %v958_v41 = vmul.f32 1.442695, %v895_v19  ;;  %v1409_v23 = vld [vmem:[%s7464_s5 + $0x100] sm:$0xff]  ;;  %v7770_v19 = vld [vmem:[#allocation86_spill] sm:$0xff]  ;;  %v1645_v49 = vmul.f32 1.442695, %v1581_v58 }
 0x253   :  { %4552 = vpow2.f32 %v350_v48  ;;  %v1869_v2 = vmul.f32 %v1805_v52, %v1409_v23 }
 0x254   :  { %4554 = vpow2.f32 %v638_v44  ;;  %v7769_v44 = vld [vmem:[#allocation27_spill] sm:$0xff] }
 0x255   :  { %v6615_v42 = vpop.xlane.xlu1 %1067  ;;  %4556 = vpow2.f32 %v922_v61  ;;  %v1491_v13 = vsub.f32 %v7769_v44, %v6559_v8  ;;  %v926_v61 = vmul.f32 1.442695, %v879_v27  ;;  %v1524_v27 = vmul.f32 %v1460_v7, %v1460_v7 }
 0x256   :  { %1055 = vadd.xlane.f32.xlu1 %v1054_v24  ;;  %v1586_v24 = vsub.f32 0.0, %v1522_v47  ;;  %4558 = vpow2.f32 %v958_v41 }
 0x257   :  { %v6623_v28 = vpop.xlane.xlu0 %1252  ;;  %v1555_v37 = vmul.f32 %v1491_v13, %v1491_v13  ;;  %4560 = vpow2.f32 %v1653_v31  ;;  %v1617_v13 = vsub.f32 0.0, %v1553_v0  ;;  %v1588_v0 = vsub.f32 0.0, %v1524_v27 }
 0x258   :  { %v1655_v22 = vmul.f32 1.442695, %v1586_v24  ;;  %4562 = vpow2.f32 %v926_v61 }
 0x259   :  { %v1619_v24 = vsub.f32 0.0, %v1555_v37 }
 0x25a   :  { %1151 = vadd.xlane.f32.xlu1 %v1150_v56  ;;  %v6628_v29 = vpop.xlane.xlu1 %1189  ;;  %v1171_v56 = vmul.f32 %v7771_v3, %v7770_v19  ;;  %4564 = vpow2.f32 %v1655_v22 }
 0x25b   :  { %4566 = vpow2.f32 %v1645_v49 }
 0x25c   :  { %v6631_v48 = vpop.eup %4550  ;;  %v6646_v21 = vpop.xlane.xlu0 %986  ;;  %v1299_v52 = vmul.f32 %v6422_v60, %v1171_v56 }
 0x25d   :  { %v4553_v55 = vpop.eup %4552  ;;  %v1807_v33 = vmul.f32 %v6631_v48, %v4549_v32 }
 0x25e   :  { %1273 = vadd.xlane.f32.xlu1 %v1272_v1  ;;  %v1006_v32 = vsel %vm960_vm0, %v4553_v55, 0.0  ;;  %v4555_v6 = vpop.eup %4554  ;;  %v7772_v1 = vld [vmem:[#allocation7_spill] sm:$0xff]  ;;  %v7773_v55 = vld [vmem:[#allocation13_spill] sm:$0xff]  ;;  %v1331_v19 = vmax.f32 %v1299_v52, 1e-20 }
 0x25f   :  { %v1871_v5 = vmul.f32 %v1807_v33, %v1411_v57  ;;  %v1455_v51 = vsub.f32 %v7772_v1, %v6559_v8  ;;  %v1456_v41 = vsub.f32 %v7772_v1, %v6606_v11  ;;  %v1647_v57 = vmul.f32 1.442695, %v1582_v53  ;;  %v4557_v7 = vpop.eup %4556 }
 0x260   :  { %v1463_v9 = vsub.f32 %v7773_v55, %v6559_v8  ;;  %v1587_v33 = vsub.f32 0.0, %v1523_v34  ;;  %v1464_v60 = vsub.f32 %v7773_v55, %v6606_v11  ;;  %v1102_v58 = vsel %vm960_vm0, %v4555_v6, 0.0  ;;  %v7775_v34 = vld [vmem:[#allocation10_spill] sm:$0xff]  ;;  %v4559_v27 = vpop.eup %4558 }
 0x261   :  { %v6654_v47 = vpop.xlane.xlu1 %1025  ;;  %v2719_v26 = vpack.c.bf16 %v1871_v5, %v1869_v2  ;;  %v1519_v2 = vmul.f32 %v1455_v51, %v1455_v51  ;;  %v7774_v5 = vld [vmem:[#allocation8_spill] sm:$0xff]  ;;  %v1520_v61 = vmul.f32 %v1456_v41, %v1456_v41  ;;  %v1172_v6 = vmul.f32 %v6588_v30, %v6580_v50 }
 0x262   :  { %1007 = vadd.xlane.f32.xlu1 %v1006_v32  ;;  %v1461_v53 = vsub.f32 %v7774_v5, %v6559_v8  ;;  %v1462_v3 = vsub.f32 %v7774_v5, %v6606_v11  ;;  %v1527_v37 = vmul.f32 %v1463_v9, %v1463_v9  ;;  %v1466_v32 = vsub.f32 %v7775_v34, %v6606_v11 }
 0x263   :  { %v6661_v23 = vpop.xlane.xlu0 %1082  ;;  %2815 = vxpose.xlu0.c.b16.start [1/8] %v2719_v26, 128  ;;  %v1717_v26 = vmul.f32 1.442695, %v1617_v13  ;;  %v1657_v22 = vmul.f32 1.442695, %v1587_v33  ;;  %v1528_v1 = vmul.f32 %v1464_v60, %v1464_v60  ;;  %v1721_v51 = vmul.f32 1.442695, %v1619_v24  ;;  %v6683_v33 = vpop.eup %4560 }
 0x264   :  { %v1224_v52 = vsel %vm960_vm0, %v4557_v7, 0.0  ;;  %v1583_v41 = vsub.f32 0.0, %v1519_v2  ;;  %v1525_v55 = vmul.f32 %v1461_v53, %v1461_v53  ;;  %4568 = vrcp.f32 %v1331_v19  ;;  %7776 = vst [vmem:[#allocation87_spill] sm:$0xff] %v6683_v33  ;;  %v7777_v24 = vld [vmem:[#allocation12_spill] sm:$0xff] }
 0x265   :  { %v6668_v31 = vpop.xlane.xlu1 %1121  ;;  %4570 = vpow2.f32 %v1647_v57  ;;  %v1659_v9 = vmul.f32 1.442695, %v1588_v0  ;;  %v1584_v5 = vsub.f32 0.0, %v1520_v61  ;;  %v1526_v39 = vmul.f32 %v1462_v3, %v1462_v3  ;;  %v4563_v57 = vpop.eup %4562 }
 0x266   :  { %1103 = vadd.xlane.f32.xlu1 %v1102_v58  ;;  %v1591_v34 = vsub.f32 0.0, %v1527_v37  ;;  %v1530_v50 = vmul.f32 %v1466_v32, %v1466_v32  ;;  %4572 = vpow2.f32 %v1717_v26  ;;  %v1592_v60 = vsub.f32 0.0, %v1528_v1  ;;  %v6694_v26 = vpop.eup %4564 }
 0x267   :  { %v6674_v56 = vpop.xlane.xlu0 %1204  ;;  %v1470_v7 = vsub.f32 %v7777_v24, %v6606_v11  ;;  %4574 = vpow2.f32 %v1721_v51  ;;  %v1278_v2 = vsel %vm960_vm0, %v4559_v27, 0.0  ;;  %v1649_v19 = vmul.f32 1.442695, %v1583_v41  ;;  %7778 = vst [vmem:[#allocation70_spill] sm:$0xff] %v6694_v26  ;;  %v6696_v51 = vpop.eup %4566 }
 0x268   :  { %v1589_v0 = vsub.f32 0.0, %v1525_v55  ;;  %v1651_v61 = vmul.f32 1.442695, %v1584_v5  ;;  %v1590_v3 = vsub.f32 0.0, %v1526_v39  ;;  %v1488_v37 = vsub.f32 %v7756_v20, %v6606_v11  ;;  %7779 = vst [vmem:[#allocation71_spill] sm:$0xff] %v6696_v51 }
 0x269   :  { %v1244_v49 = vpop.xlane.xlu1 %1243  ;;  %v1594_v1 = vsub.f32 0.0, %v1530_v50  ;;  %v1486_v27 = vsub.f32 %v7755_v62, %v6606_v11  ;;  %v1492_v41 = vsub.f32 %v7769_v44, %v6606_v11  ;;  %v1173_v26 = vmul.f32 %v6403_v59, %v6388_v17 }
 0x26a   :  { %1225 = vadd.xlane.f32.xlu1 %v1224_v52  ;;  %v1300_v58 = vmul.f32 %v1244_v49, %v1172_v6  ;;  %v1665_v6 = vmul.f32 1.442695, %v1591_v34  ;;  %v1667_v52 = vmul.f32 1.442695, %v1592_v60  ;;  %v1534_v49 = vmul.f32 %v1470_v7, %v1470_v7 }
 0x26b   :  { %v6681_v13 = vpop.xlane.xlu0 %1040  ;;  %v1661_v20 = vmul.f32 1.442695, %v1589_v0  ;;  %v1663_v34 = vmul.f32 1.442695, %v1590_v3  ;;  %v1552_v55 = vmul.f32 %v1488_v37, %v1488_v37  ;;  %v1671_v62 = vmul.f32 1.442695, %v1594_v1 }
 0x26c   :  { %v1332_v30 = vmax.f32 %v1300_v58, 1e-20  ;;  %v7780_v58 = vld [vmem:[#allocation24_spill] sm:$0xff]  ;;  %v1598_v60 = vsub.f32 0.0, %v1534_v49  ;;  %v1550_v7 = vmul.f32 %v1486_v27, %v1486_v27  ;;  %v1556_v44 = vmul.f32 %v1492_v41, %v1492_v41  ;;  %v1415_v27 = vld [vmem:[%s7464_s5 + $0x130] sm:$0xff] }
 0x26d   :  { %v6688_v53 = vpop.xlane.xlu1 %977  ;;  %v1616_v0 = vsub.f32 0.0, %v1552_v55  ;;  %v1282_v17 = vmul.f32 %v6628_v29, %v6575_v15  ;;  %v7792_v29 = vld [vmem:[#allocation28_spill] sm:$0xff] }
 0x26e   :  { %1279 = vadd.xlane.f32.xlu1 %v1278_v2  ;;  %4576 = vrcp.f32 %v1332_v30  ;;  %v6709_v50 = vpop.eup %4568  ;;  %v1614_v41 = vsub.f32 0.0, %v1550_v7  ;;  %v1620_v24 = vsub.f32 0.0, %v1556_v44 }
 0x26f   :  { %4578 = vpow2.f32 %v1657_v22  ;;  %v6692_v32 = vpop.xlane.xlu0 %1136  ;;  %v1230_v22 = vsel %vm960_vm0, %v4563_v57, 0.0  ;;  %7781 = vst [vmem:[#allocation47_spill] sm:$0xff] %v6709_v50  ;;  %v6711_v30 = vpop.eup %4570  ;;  %v1490_v57 = vsub.f32 %v7767_v36, %v6606_v11  ;;  %v1413_v36 = vld [vmem:[%s7464_s5 + $0x120] sm:$0xff]  ;;  %v1715_v33 = vmul.f32 1.442695, %v1616_v0 }
 0x270   :  { %4580 = vpow2.f32 %v1659_v9  ;;  %v1493_v9 = vsub.f32 %v7780_v58, %v6559_v8  ;;  %7782 = vst [vmem:[#allocation54_spill] sm:$0xff] %v6711_v30  ;;  %v4573_v2 = vpop.eup %4572 }
 0x271   :  { %v6701_v39 = vpop.xlane.xlu1 %1073  ;;  %4582 = vpow2.f32 %v1649_v19  ;;  %v4575_v19 = vpop.eup %4574 }
 0x272   :  { %1231 = vadd.xlane.f32.xlu1 %v1230_v22  ;;  %4584 = vpow2.f32 %v1651_v61  ;;  %v1557_v61 = vmul.f32 %v1493_v9, %v1493_v9 }
 0x273   :  { %v6707_v5 = vpop.xlane.xlu0 %1258  ;;  %4586 = vpow2.f32 %v1665_v6  ;;  %v1809_v6 = vmul.f32 %v4573_v2, %v6709_v50 }
 0x274   :  { %4588 = vpow2.f32 %v1667_v52  ;;  %v7785_v52 = vld [vmem:[#allocation29_spill] sm:$0xff]  ;;  %v1621_v30 = vsub.f32 0.0, %v1557_v61 }
 0x275   :  { %4590 = vpow2.f32 %v1661_v20  ;;  %v6715_v3 = vpop.xlane.xlu1 %1195  ;;  %v1495_v49 = vsub.f32 %v7785_v52, %v6559_v8  ;;  %v1679_v20 = vmul.f32 1.442695, %v1598_v60 }
 0x276   :  { %4592 = vpow2.f32 %v1663_v34  ;;  %v1496_v34 = vsub.f32 %v7785_v52, %v6606_v11  ;;  %v7789_v52 = vld [vmem:[#allocation45_spill] sm:$0xff]  ;;  %v1725_v15 = vmul.f32 1.442695, %v1621_v30 }
 0x277   :  { %v6717_v37 = vpop.xlane.xlu0 %992  ;;  %4594 = vpow2.f32 %v1671_v62  ;;  %v7788_v62 = vld [vmem:[#allocation14_spill] sm:$0xff]  ;;  %v1559_v50 = vmul.f32 %v1495_v49, %v1495_v49 }
 0x278   :  { %7783 = vst [vmem:[#allocation60_spill] sm:$0xff] %v6717_v37  ;;  %v6720_v1 = vpop.eup %4576  ;;  %v1474_v2 = vsub.f32 %v7788_v62, %v6606_v11  ;;  %v1554_v37 = vmul.f32 %v1490_v57, %v1490_v57  ;;  %v1301_v62 = vmul.f32 %v6553_v40, %v1173_v26  ;;  %v1711_v57 = vmul.f32 1.442695, %v1614_v41 }
 0x279   :  { %7784 = vst [vmem:[#allocation84_spill] sm:$0xff] %v6720_v1  ;;  %v6730_v22 = vpop.eup %4578  ;;  %v1811_v55 = vmul.f32 %v6720_v1, %v4575_v19  ;;  %v1494_v19 = vsub.f32 %v7780_v58, %v6606_v11  ;;  %v1560_v51 = vmul.f32 %v1496_v34, %v1496_v34  ;;  %v1723_v58 = vmul.f32 1.442695, %v1620_v24 }
 0x27a   :  { %7786 = vst [vmem:[#allocation42_spill] sm:$0xff] %v6730_v22  ;;  %v6735_v9 = vpop.eup %4580  ;;  %v1873_v22 = vmul.f32 %v1809_v6, %v1413_v36  ;;  %v1618_v49 = vsub.f32 0.0, %v1554_v37  ;;  %v7791_v36 = vld [vmem:[#allocation26_spill] sm:$0xff]  ;;  %4596 = vpow2.f32 %v1679_v20  ;;  %v6763_v41 = vmul.f32 %v1474_v2, %v1474_v2 }
 0x27b   :  { %7787 = vst [vmem:[#allocation90_spill] sm:$0xff] %v6735_v9  ;;  %v1875_v60 = vmul.f32 %v1811_v55, %v1415_v27  ;;  %v6741_v7 = vpop.eup %4582  ;;  %v7790_v9 = vld [vmem:[#allocation52_spill] sm:$0xff]  ;;  %v1498_v27 = vsub.f32 %v7791_v36, %v6606_v11  ;;  %v1502_v34 = vsub.f32 %v7792_v29, %v6606_v11  ;;  %4598 = vpow2.f32 %v1715_v33  ;;  %v7794_v29 = vld [vmem:[#allocation30_spill] sm:$0xff] }
 0x27c   :  { %v1153_v1 = vmul.f32 %v7790_v9, %v7789_v52  ;;  %v6748_v44 = vpop.eup %4584  ;;  %v6752_v59 = vpop.xlane.xlu1 %1031  ;;  %v1623_v24 = vsub.f32 0.0, %v1559_v50  ;;  %v1558_v37 = vmul.f32 %v1494_v19, %v1494_v19  ;;  %v1333_v55 = vmax.f32 %v1301_v62, 1e-20  ;;  %v7793_v19 = vld [vmem:[#allocation40_spill] sm:$0xff] }
 0x27d   :  { %v6754_v0 = vpop.xlane.xlu0 %1088  ;;  %v2721_v61 = vpack.c.bf16 %v1875_v60, %v1873_v22  ;;  %v6756_v6 = vpop.eup %4586  ;;  %4600 = vpow2.f32 %v1711_v57  ;;  %v1314_v20 = vmax.f32 %v1282_v17, 1e-20  ;;  %v1719_v52 = vmul.f32 1.442695, %v1618_v49 }
 0x27e   :  { %v1281_v40 = vmul.f32 %v6367_v25, %v1153_v1  ;;  %v6761_v26 = vpop.eup %4588  ;;  %v1624_v25 = vsub.f32 0.0, %v1560_v51  ;;  %v1156_v1 = vmul.f32 %v6615_v42, %v6602_v46  ;;  %4602 = vpow2.f32 %v1723_v58 }
 0x27f   :  { %2816 = vxpose.xlu0.c.b16.cont [2/8] %v2721_v61, 128  ;;  %v6767_v22 = vpop.eup %4590  ;;  %v1562_v33 = vmul.f32 %v1498_v27, %v1498_v27  ;;  %4604 = vpow2.f32 %v1725_v15  ;;  %v1566_v62 = vmul.f32 %v1502_v34, %v1502_v34  ;;  %v1155_v57 = vmul.f32 %v6357_v14, %v7793_v19  ;;  %v7795_v34 = vld [vmem:[#allocation31_spill] sm:$0xff] }
 0x280   :  { %v6769_v9 = vpop.eup %4592  ;;  %v1313_v50 = vmax.f32 %v1281_v40, 1e-20  ;;  %v1284_v51 = vmul.f32 %v6715_v3, %v1156_v1  ;;  %v1729_v61 = vmul.f32 1.442695, %v1623_v24  ;;  %v1622_v46 = vsub.f32 0.0, %v1558_v37 }
 0x281   :  { %v6773_v2 = vpop.xlane.xlu1 %1127  ;;  %v6775_v30 = vpop.xlane.xlu0 %1210  ;;  %4606 = vrcp.f32 %v1333_v55  ;;  %v1174_v42 = vmul.f32 %v6668_v31, %v6654_v47  ;;  %v1731_v17 = vmul.f32 1.442695, %v1624_v25  ;;  %v1506_v58 = vsub.f32 %v7794_v29, %v6606_v11 }
 0x282   :  { %v6777_v60 = vpop.eup %4594  ;;  %v1283_v49 = vmul.f32 %v6503_v4, %v1155_v57  ;;  %4608 = vrcp.f32 %v1314_v20  ;;  %v1626_v15 = vsub.f32 0.0, %v1562_v33  ;;  %v1175_v14 = vmul.f32 %v6540_v18, %v6526_v10 }
 0x283   :  { %4610 = vrcp.f32 %v1313_v50  ;;  %v1499_v47 = vsub.f32 %v7795_v34, %v6559_v8  ;;  %v1630_v31 = vsub.f32 0.0, %v1566_v62  ;;  %v1316_v24 = vmax.f32 %v1284_v51, 1e-20 }
 0x284   :  { %4612 = vpow2.f32 %v1719_v52  ;;  %v1727_v37 = vmul.f32 1.442695, %v1622_v46  ;;  %v1303_v4 = vmul.f32 %v6623_v28, %v1175_v14  ;;  %v6794_v25 = vpop.eup %4596  ;;  %v1570_v1 = vmul.f32 %v1506_v58, %v1506_v58 }
 0x285   :  { %v1250_v27 = vpop.xlane.xlu1 %1249  ;;  %v6787_v40 = vpop.xlane.xlu0 %1046  ;;  %4614 = vpow2.f32 %v1729_v61  ;;  %v1157_v20 = vmul.f32 %v6486_v38, %v6450_v63  ;;  %v1315_v10 = vmax.f32 %v1283_v49, 1e-20  ;;  %v1500_v33 = vsub.f32 %v7795_v34, %v6606_v11 }
 0x286   :  { %v1302_v3 = vmul.f32 %v1250_v27, %v1174_v42  ;;  %4616 = vpow2.f32 %v1731_v17  ;;  %v4599_v52 = vpop.eup %4598  ;;  %v1735_v50 = vmul.f32 1.442695, %v1626_v15  ;;  %v1177_v62 = vmul.f32 %v6608_v45, %v6597_v54  ;;  %v7796_v54 = vld [vmem:[#allocation15_spill] sm:$0xff] }
 0x287   :  { %v4601_v19 = vpop.eup %4600  ;;  %v6806_v57 = vmul.f32 %v1499_v47, %v1499_v47  ;;  %v1743_v51 = vmul.f32 1.442695, %v1630_v31  ;;  %v1285_v63 = vmul.f32 %v6590_v12, %v1157_v20  ;;  %v1159_v61 = vmul.f32 %v6583_v43, %v6571_v35 }
 0x288   :  { %v1334_v55 = vmax.f32 %v1302_v3, 1e-20  ;;  %v4603_v38 = vpop.eup %4602  ;;  %v1335_v46 = vmax.f32 %v1303_v4, 1e-20  ;;  %v1305_v42 = vmul.f32 %v6707_v5, %v1177_v62  ;;  %v6814_v45 = vsub.f32 %v7796_v54, %v6559_v8 }
 0x289   :  { %v6798_v18 = vpop.xlane.xlu1 %983  ;;  %v4605_v17 = vpop.eup %4604  ;;  %v6818_v58 = vsub.f32 %v7796_v54, %v6606_v11  ;;  %v1634_v49 = vsub.f32 0.0, %v1570_v1  ;;  %v1602_v35 = vsub.f32 0.0, %v6763_v41  ;;  %v1287_v43 = vmul.f32 %v6674_v56, %v1159_v61  ;;  %v1412_v1 = vld [vmem:[%s7464_s5 + $0x118] sm:$0xff] }
 0x28a   :  { %4618 = vrcp.f32 %v1334_v55  ;;  %v6804_v28 = vpop.xlane.xlu0 %1142  ;;  %v1179_v5 = vmul.f32 %v6692_v32, %v6681_v13  ;;  %v6830_v3 = vmul.f32 %v1500_v33, %v1500_v33  ;;  %v1317_v47 = vmax.f32 %v1285_v63, 1e-20  ;;  %v1410_v32 = vld [vmem:[%s7464_s5 + $0x108] sm:$0xff] }
 0x28b   :  { %4620 = vrcp.f32 %v1316_v24  ;;  %v6822_v27 = vpop.eup %4606  ;;  %v6835_v24 = vsub.f32 %v7791_v36, %v6559_v8  ;;  %v6837_v55 = vmul.f32 1.442695, %v1634_v49  ;;  %v1806_v20 = vmul.f32 %v4601_v19, %v6625_v16  ;;  %v1379_v16 = vld [vmem:[%s7464_s5 + $0x10] sm:$0xff]  ;;  %v1377_v49 = vld [vmem:[%s7464_s5] sm:$0xff] }
 0x28c   :  { %4622 = vpow2.f32 %v1727_v37  ;;  %v6828_v14 = vpop.eup %4608  ;;  %v1337_v37 = vmax.f32 %v1305_v42, 1e-20  ;;  %v1813_v13 = vmul.f32 %v6822_v27, %v4605_v17  ;;  %v1808_v36 = vmul.f32 %v4599_v52, %v6631_v48  ;;  %v7797_v19 = vld [vmem:[#allocation71_spill] sm:$0xff] }
 0x28d   :  { %4624 = vrcp.f32 %v1315_v10  ;;  %v6820_v12 = vpop.xlane.xlu1 %1079  ;;  %v4611_v31 = vpop.eup %4610  ;;  %v1161_v33 = vmul.f32 %v6661_v23, %v6646_v21  ;;  %v1158_v62 = vmul.f32 %v6701_v39, %v6688_v53  ;;  %v1417_v21 = vld [vmem:[%s7464_s5 + $0x140] sm:$0xff]  ;;  %v6861_v23 = vmul.f32 %v1806_v20, %v1410_v32  ;;  %v1419_v17 = vld [vmem:[%s7464_s5 + $0x150] sm:$0xff] }
 0x28e   :  { %4626 = vpow2.f32 %v1735_v50  ;;  %v1265_v15 = vpop.xlane.xlu0 %1264  ;;  %v4613_v4 = vpop.eup %4612  ;;  %v1319_v50 = vmax.f32 %v1287_v43, 1e-20  ;;  %v1773_v48 = vmul.f32 %v4611_v31, %v7797_v19  ;;  %v6863_v52 = vmul.f32 %v1808_v36, %v1412_v1 }
 0x28f   :  { %4628 = vpow2.f32 %v1743_v51  ;;  %v1307_v56 = vmul.f32 %v1265_v15, %v1179_v5  ;;  %v4615_v10 = vpop.eup %4614  ;;  %v1775_v51 = vmul.f32 %v6828_v14, %v6741_v7  ;;  %v1289_v39 = vmul.f32 %v6775_v30, %v1161_v33  ;;  %v1414_v30 = vld [vmem:[%s7464_s5 + $0x128] sm:$0xff]  ;;  %v7798_v15 = vld [vmem:[#allocation47_spill] sm:$0xff] }
 0x290   :  { %4630 = vrcp.f32 %v1335_v46  ;;  %v4617_v63 = vpop.eup %4616  ;;  %v1877_v36 = vmul.f32 %v1813_v13, %v1417_v21  ;;  %v7800_v5 = vld [vmem:[#allocation54_spill] sm:$0xff]  ;;  %v1531_v41 = vmul.f32 %v6814_v45, %v6814_v45 }
 0x291   :  { %4632 = vrcp.f32 %v1317_v47  ;;  %v1339_v7 = vmax.f32 %v1307_v56, 1e-20  ;;  %v1810_v47 = vmul.f32 %v4613_v4, %v7798_v15  ;;  %v1839_v20 = vmul.f32 %v1775_v51, %v1379_v16  ;;  %v1383_v13 = vld [vmem:[%s7464_s5 + $0x30] sm:$0xff]  ;;  %v1378_v16 = vld [vmem:[%s7464_s5 + $0x8] sm:$0xff] }
 0x292   :  { %v1202_v61 = vpop.xlane.xlu1 %1201  ;;  %4634 = vrcp.f32 %v1337_v37  ;;  %v7799_v37 = vld [vmem:[#allocation84_spill] sm:$0xff]  ;;  %v1774_v34 = vmul.f32 %v4611_v31, %v7800_v5  ;;  %v1321_v15 = vmax.f32 %v1289_v39, 1e-20  ;;  %v1776_v39 = vmul.f32 %v6828_v14, %v6748_v44 }
 0x293   :  { %v1286_v46 = vmul.f32 %v1202_v61, %v1158_v62  ;;  %v6866_v42 = vpop.xlane.xlu0 %998  ;;  %v1812_v56 = vmul.f32 %v4603_v38, %v7799_v37  ;;  %4636 = vrcp.f32 %v1319_v50  ;;  %v6884_v61 = vmul.f32 %v1810_v47, %v1414_v30  ;;  %v7801_v50 = vld [vmem:[#allocation42_spill] sm:$0xff]  ;;  %v7802_v47 = vld [vmem:[#allocation87_spill] sm:$0xff] }
 0x294   :  { %v4619_v53 = vpop.eup %4618  ;;  %v1837_v38 = vmul.f32 %v1773_v48, %v1377_v49  ;;  %v1380_v48 = vld [vmem:[%s7464_s5 + $0x18] sm:$0xff]  ;;  %v1418_v49 = vld [vmem:[%s7464_s5 + $0x148] sm:$0xff]  ;;  %v1561_v5 = vmul.f32 %v6835_v24, %v6835_v24 }
 0x295   :  { %v4621_v54 = vpop.eup %4620  ;;  %v1815_v43 = vmul.f32 %v4619_v53, %v4615_v10  ;;  %v1318_v1 = vmax.f32 %v1286_v46, 1e-20  ;;  %v1416_v10 = vld [vmem:[%s7464_s5 + $0x138] sm:$0xff]  ;;  %v1816_v44 = vmul.f32 %v4619_v53, %v4617_v63  ;;  %v1382_v63 = vld [vmem:[%s7464_s5 + $0x28] sm:$0xff] }
 0x296   :  { %v4623_v32 = vpop.eup %4622  ;;  %v6886_v19 = vmul.f32 %v1812_v56, %v1416_v10  ;;  %v1779_v51 = vmul.f32 %v4621_v54, %v7801_v50  ;;  %v2703_v14 = vpack.c.bf16 %v1839_v20, %v1837_v38  ;;  %v6925_v10 = vmul.f32 %v1776_v39, %v1380_v48  ;;  %v7803_v53 = vld [vmem:[#allocation70_spill] sm:$0xff] }
 0x297   :  { %v4625_v33 = vpop.eup %4624  ;;  %v1879_v62 = vmul.f32 %v1815_v43, %v1419_v17  ;;  %4638 = vrcp.f32 %v1318_v1  ;;  %v6896_v46 = vpop.xlane.xlu1 %1037  ;;  %v1814_v56 = vmul.f32 %v4623_v32, %v6822_v27  ;;  %v1381_v1 = vld [vmem:[%s7464_s5 + $0x20] sm:$0xff]  ;;  %v7804_v20 = vld [vmem:[#allocation90_spill] sm:$0xff]  ;;  %v1628_v39 = vsub.f32 0.0, %v6830_v3 }
 0x298   :  { %v4627_v4 = vpop.eup %4626  ;;  %4640 = vrcp.f32 %v1339_v7  ;;  %v1420_v7 = vld [vmem:[%s7464_s5 + $0x158] sm:$0xff]  ;;  %v6915_v30 = vpop.xlane.xlu0 %1094  ;;  %v1777_v37 = vmul.f32 %v4625_v33, %v7802_v47  ;;  %v1843_v24 = vmul.f32 %v1779_v51, %v1383_v13  ;;  %v1778_v32 = vmul.f32 %v4625_v33, %v7803_v53 }
 0x299   :  { %v4629_v21 = vpop.eup %4628  ;;  %v2723_v17 = vpack.c.bf16 %v1879_v62, %v1877_v36  ;;  %4642 = vpow2.f32 %v6837_v55  ;;  %v6923_v36 = vmul.f32 %v1774_v34, %v1378_v16  ;;  %v6927_v62 = vmul.f32 %v1814_v56, %v1418_v49  ;;  %v1384_v34 = vld [vmem:[%s7464_s5 + $0x38] sm:$0xff] }
 0x29a   :  { %v6911_v43 = vpop.eup %4630  ;;  %4644 = vrcp.f32 %v1321_v15  ;;  %v6929_v50 = vmul.f32 %v1816_v44, %v1420_v7  ;;  %v1780_v15 = vmul.f32 %v4621_v54, %v7804_v20  ;;  %v1687_v51 = vmul.f32 1.442695, %v1602_v35  ;;  %v7805_v49 = vld [vmem:[#allocation60_spill] sm:$0xff] }
 0x29b   :  { %2817 = vxpose.xlu0.c.b16.cont [3/8] %v2723_v17, 128  ;;  %v4633_v27 = vpop.eup %4632  ;;  %v6942_v38 = vmul.f32 %v6911_v43, %v4627_v4  ;;  %v1625_v16 = vsub.f32 0.0, %v1561_v5  ;;  %v1841_v17 = vmul.f32 %v1777_v37, %v1381_v1  ;;  %v1163_v33 = vmul.f32 %v6754_v0, %v7805_v49  ;;  %v1385_v44 = vld [vmem:[%s7464_s5 + $0x40] sm:$0xff]  ;;  %v1386_v1 = vld [vmem:[%s7464_s5 + $0x48] sm:$0xff] }
 0x29c   :  { %v6944_v13 = vpop.eup %4634  ;;  %v6955_v54 = vmul.f32 %v1778_v32, %v1382_v63  ;;  %v6957_v4 = vmul.f32 %v1780_v15, %v1384_v34  ;;  %v7806_v35 = vsub.f32 0.0, %v6806_v57  ;;  %v1781_v56 = vmul.f32 %v4633_v27, %v6767_v22  ;;  %v7807_v22 = vld [vmem:[#allocation10_spill] sm:$0xff] }
 0x29d   :  { %v6959_v47 = vpop.eup %4636  ;;  %v2705_v3 = vpack.c.bf16 %v1843_v24, %v1841_v17  ;;  %v1782_v45 = vmul.f32 %v4633_v27, %v6769_v9  ;;  %v6976_v57 = vmul.f32 %v6944_v13, %v4629_v21  ;;  %v1465_v63 = vsub.f32 %v7807_v22, %v6559_v8  ;;  %v1387_v32 = vld [vmem:[%s7464_s5 + $0x50] sm:$0xff]  ;;  %v1388_v9 = vld [vmem:[%s7464_s5 + $0x58] sm:$0xff] }
 0x29e   :  { %v6953_v7 = vpop.xlane.xlu1 %1133  ;;  %v1737_v5 = vmul.f32 1.442695, %v7806_v35  ;;  %4646 = vpow2.f32 %v1687_v51  ;;  %v1733_v34 = vmul.f32 1.442695, %v1625_v16  ;;  %v1176_v53 = vmul.f32 %v6773_v2, %v6752_v59 }
 0x29f   :  { %2783 = vxpose.xlu1.c.b16.start [1/8] %v2703_v14, 128  ;;  %v1739_v21 = vmul.f32 1.442695, %v1628_v39  ;;  %v1845_v2 = vmul.f32 %v1781_v56, %v1385_v44  ;;  %v6992_v17 = vmul.f32 %v1782_v45, %v1386_v1  ;;  %v6998_v39 = vmul.f32 %v6959_v47, %v6777_v60 }
 0x2a0   :  { %v1217_v37 = vpop.xlane.xlu0 %1216  ;;  %4648 = vpow2.f32 %v1737_v5  ;;  %v1532_v5 = vmul.f32 %v6818_v58, %v6818_v58  ;;  %v1595_v60 = vsub.f32 0.0, %v1531_v41  ;;  %v7808_v58 = vld [vmem:[#allocation33_spill] sm:$0xff]  ;;  %v1160_v41 = vmul.f32 %v6820_v12, %v6798_v18 }
 0x2a1   :  { %v1291_v0 = vmul.f32 %v1217_v37, %v1163_v33  ;;  %v4639_v24 = vpop.eup %4638 }
 0x2a2   :  { %v6988_v27 = vpop.eup %4640  ;;  %v1783_v51 = vmul.f32 %v4639_v24, %v6756_v6  ;;  %v1784_v16 = vmul.f32 %v4639_v24, %v6761_v26  ;;  %v1596_v24 = vsub.f32 0.0, %v1532_v5 }
 0x2a3   :  { %v1323_v20 = vmax.f32 %v1291_v0, 1e-20  ;;  %v1256_v15 = vpop.xlane.xlu1 %1255  ;;  %2784 = vxpose.xlu1.c.b16.cont [2/8] %v2705_v3, 128  ;;  %v4643_v49 = vpop.eup %4642  ;;  %v1529_v3 = vmul.f32 %v1465_v63, %v1465_v63 }
 0x2a4   :  { %v1304_v59 = vmul.f32 %v1256_v15, %v1176_v53  ;;  %v1847_v33 = vmul.f32 %v1783_v51, %v1387_v32  ;;  %v6994_v35 = vmul.f32 %v1784_v16, %v1388_v9  ;;  %v7000_v37 = vpop.eup %4644  ;;  %v7003_v26 = vmul.f32 %v4643_v49, %v6988_v27 }
 0x2a5   :  { %4650 = vrcp.f32 %v1323_v20  ;;  %v7013_v1 = vmul.f32 %v7000_v37, %v6794_v25  ;;  %v1593_v45 = vsub.f32 0.0, %v1529_v3  ;;  %v1673_v53 = vmul.f32 1.442695, %v1595_v60  ;;  %v1423_v60 = vld [vmem:[%s7464_s5 + $0x170] sm:$0xff] }
 0x2a6   :  { %4652 = vpow2.f32 %v1733_v34  ;;  %v1336_v6 = vmax.f32 %v1304_v59, 1e-20  ;;  %v2707_v0 = vpack.c.bf16 %v1847_v33, %v1845_v2  ;;  %v1503_v34 = vsub.f32 %v7808_v58, %v6559_v8 }
 0x2a7   :  { %4654 = vpow2.f32 %v1739_v21  ;;  %v7007_v56 = vpop.xlane.xlu1 %989  ;;  %v1669_v9 = vmul.f32 1.442695, %v1593_v45  ;;  %v7809_v21 = vld [vmem:[#allocation28_spill] sm:$0xff]  ;;  %v1675_v25 = vmul.f32 1.442695, %v1596_v24  ;;  %v1504_v51 = vsub.f32 %v7808_v58, %v6606_v11  ;;  %v1422_v45 = vld [vmem:[%s7464_s5 + $0x168] sm:$0xff] }
 0x2a8   :  { %4656 = vrcp.f32 %v1336_v6  ;;  %2785 = vxpose.xlu1.c.b16.cont [3/8] %v2707_v0, 128  ;;  %v4647_v63 = vpop.eup %4646  ;;  %v1501_v20 = vsub.f32 %v7809_v21, %v6559_v8  ;;  %v1567_v2 = vmul.f32 %v1503_v34, %v1503_v34  ;;  %v1421_v6 = vld [vmem:[%s7464_s5 + $0x160] sm:$0xff]  ;;  %v1424_v24 = vld [vmem:[%s7464_s5 + $0x178] sm:$0xff] }
 0x2a9   :  { %4658 = vpow2.f32 %v1673_v53 }
 0x2aa   :  { %v4649_v32 = vpop.eup %4648  ;;  %4660 = vpow2.f32 %v1669_v9  ;;  %v1565_v5 = vmul.f32 %v1501_v20, %v1501_v20  ;;  %v1631_v53 = vsub.f32 0.0, %v1567_v2  ;;  %v7046_v20 = vmul.f32 %v6942_v38, %v1422_v45 }
 0x2ab   :  { %v7015_v22 = vpop.xlane.xlu1 %1085  ;;  %4662 = vpow2.f32 %v1675_v25 }
 0x2ac   :  { %v1745_v2 = vmul.f32 1.442695, %v1631_v53 }
 0x2af   :  { %v7023_v15 = vpop.eup %4650  ;;  %v1208_v16 = vpop.xlane.xlu1 %1207 }
 0x2b0   :  { %v4653_v59 = vpop.eup %4652  ;;  %v1288_v49 = vmul.f32 %v1208_v16, %v1160_v41  ;;  %v7028_v33 = vmul.f32 %v7023_v15, %v4647_v63  ;;  %v1568_v63 = vmul.f32 %v1504_v51, %v1504_v51  ;;  %v1629_v16 = vsub.f32 0.0, %v1565_v5 }
 0x2b1   :  { %v4655_v3 = vpop.eup %4654  ;;  %v1817_v18 = vmul.f32 %v4653_v59, %v6911_v43 }
 0x2b2   :  { %v4657_v12 = vpop.eup %4656  ;;  %v1320_v0 = vmax.f32 %v1288_v49, 1e-20  ;;  %v1632_v59 = vsub.f32 0.0, %v1568_v63  ;;  %v1741_v38 = vmul.f32 1.442695, %v1629_v16  ;;  %v1392_v16 = vld [vmem:[%s7464_s5 + $0x78] sm:$0xff] }
 0x2b3   :  { %v7043_v58 = vpop.xlane.xlu1 %1043  ;;  %v1819_v43 = vmul.f32 %v4657_v12, %v4649_v32  ;;  %v1820_v34 = vmul.f32 %v4657_v12, %v4655_v3  ;;  %v1881_v9 = vmul.f32 %v1817_v18, %v1421_v6  ;;  %v7810_v32 = vld [vmem:[#allocation17_spill] sm:$0xff]  ;;  %v7811_v3 = vld [vmem:[#allocation12_spill] sm:$0xff]  ;;  %v1178_v18 = vmul.f32 %v6953_v7, %v6896_v46  ;;  %v4659_v12 = vpop.eup %4658  ;;  %v1391_v7 = vld [vmem:[%s7464_s5 + $0x70] sm:$0xff] }
 0x2b4   :  { %4664 = vrcp.f32 %v1320_v0  ;;  %v1471_v51 = vsub.f32 %v7810_v32, %v6559_v8  ;;  %v1469_v6 = vsub.f32 %v7811_v3, %v6559_v8  ;;  %v1472_v5 = vsub.f32 %v7810_v32, %v6606_v11  ;;  %v4661_v45 = vpop.eup %4660 }
 0x2b5   :  { %v1883_v21 = vmul.f32 %v1819_v43, %v1423_v60  ;;  %v7048_v41 = vmul.f32 %v1820_v34, %v1424_v24  ;;  %v1747_v0 = vmul.f32 1.442695, %v1632_v59  ;;  %v4663_v43 = vpop.eup %4662  ;;  %4666 = vpow2.f32 %v1745_v2 }
 0x2b6   :  { %v1535_v24 = vmul.f32 %v1471_v51, %v1471_v51  ;;  %v1785_v34 = vmul.f32 %v4661_v45, %v6959_v47  ;;  %4668 = vpow2.f32 %v1741_v38  ;;  %v1536_v59 = vmul.f32 %v1472_v5, %v1472_v5 }
 0x2b7   :  { %v7050_v49 = vpop.xlane.xlu1 %1139  ;;  %v2725_v44 = vpack.c.bf16 %v1883_v21, %v1881_v9  ;;  %v1533_v9 = vmul.f32 %v1469_v6, %v1469_v6  ;;  %v1390_v21 = vld [vmem:[%s7464_s5 + $0x68] sm:$0xff]  ;;  %4670 = vpow2.f32 %v1747_v0 }
 0x2b8   :  { %v1599_v2 = vsub.f32 0.0, %v1535_v24  ;;  %v7078_v38 = vmul.f32 %v6998_v39, %v1390_v21  ;;  %v1600_v45 = vsub.f32 0.0, %v1536_v59  ;;  %v1505_v39 = vsub.f32 %v7794_v29, %v6559_v8 }
 0x2b9   :  { %2818 = vxpose.xlu0.c.b16.cont [4/8] %v2725_v44, 128  ;;  %v1389_v44 = vld [vmem:[%s7464_s5 + $0x60] sm:$0xff] }
 0x2ba   :  { %v1849_v3 = vmul.f32 %v1785_v34, %v1389_v44  ;;  %7812 = vst [vmem:[#allocation55_spill] sm:$0xff] %v7078_v38  ;;  %v1681_v24 = vmul.f32 1.442695, %v1599_v2  ;;  %v1162_v44 = vmul.f32 %v7015_v22, %v7007_v56  ;;  %v1569_v56 = vmul.f32 %v1505_v39, %v1505_v39  ;;  %v7098_v22 = vpop.xlane.xlu0 %1052  ;;  %v1427_v2 = vld [vmem:[%s7464_s5 + $0x190] sm:$0xff] }
 0x2bb   :  { %v1262_v60 = vpop.xlane.xlu1 %1261 }
 0x2bc   :  { %v1306_v63 = vmul.f32 %v1262_v60, %v1178_v18  ;;  %v1597_v60 = vsub.f32 0.0, %v1533_v9 }
 0x2be   :  { %v4665_v53 = vpop.eup %4664  ;;  %v1338_v46 = vmax.f32 %v1306_v63, 1e-20 }
 0x2bf   :  { %v7075_v32 = vpop.xlane.xlu1 %995  ;;  %v1787_v47 = vmul.f32 %v4665_v53, %v4659_v12  ;;  %v1788_v51 = vmul.f32 %v4665_v53, %v4663_v43  ;;  %v7814_v12 = vld [vmem:[#allocation35_spill] sm:$0xff]  ;;  %v1677_v43 = vmul.f32 1.442695, %v1597_v60  ;;  %v4667_v34 = vpop.eup %4666  ;;  %v1683_v53 = vmul.f32 1.442695, %v1600_v45 }
 0x2c0   :  { %4672 = vrcp.f32 %v1338_v46  ;;  %v1507_v0 = vsub.f32 %v7814_v12, %v6559_v8  ;;  %v1508_v9 = vsub.f32 %v7814_v12, %v6606_v11 }
 0x2c1   :  { %v1851_v6 = vmul.f32 %v1787_v47, %v1391_v7  ;;  %v7080_v18 = vmul.f32 %v1788_v51, %v1392_v16  ;;  %v4669_v7 = vpop.eup %4668  ;;  %4674 = vpow2.f32 %v1681_v24 }
 0x2c2   :  { %v1571_v21 = vmul.f32 %v1507_v0, %v1507_v0  ;;  %v4671_v59 = vpop.eup %4670  ;;  %v1821_v29 = vmul.f32 %v4669_v7, %v6944_v13  ;;  %4676 = vpow2.f32 %v1677_v43  ;;  %v1572_v13 = vmul.f32 %v1508_v9, %v1508_v9 }
 0x2c3   :  { %7813 = vst [vmem:[#allocation48_spill] sm:$0xff] %v7080_v18  ;;  %v7082_v63 = vpop.xlane.xlu1 %1091  ;;  %v2709_v25 = vpack.c.bf16 %v1851_v6, %v1849_v3  ;;  %v1426_v3 = vld [vmem:[%s7464_s5 + $0x188] sm:$0xff]  ;;  %v1428_v6 = vld [vmem:[%s7464_s5 + $0x198] sm:$0xff]  ;;  %4678 = vpow2.f32 %v1683_v53 }
 0x2c4   :  { %v1635_v0 = vsub.f32 0.0, %v1571_v21  ;;  %v7112_v39 = vmul.f32 %v6976_v57, %v1426_v3  ;;  %v1636_v7 = vsub.f32 0.0, %v1572_v13  ;;  %v7122_v21 = vpop.xlane.xlu0 %1148  ;;  %v7817_v57 = vld [vmem:[#allocation14_spill] sm:$0xff] }
 0x2c5   :  { %2786 = vxpose.xlu1.c.b16.cont [4/8] %v2709_v25, 128  ;;  %v1425_v25 = vld [vmem:[%s7464_s5 + $0x180] sm:$0xff] }
 0x2c6   :  { %v1885_v24 = vmul.f32 %v1821_v29, %v1425_v25  ;;  %7815 = vst [vmem:[#allocation56_spill] sm:$0xff] %v7112_v39  ;;  %v1473_v25 = vsub.f32 %v7817_v57, %v6559_v8 }
 0x2c7   :  { %v1214_v46 = vpop.xlane.xlu1 %1213 }
 0x2c8   :  { %v1290_v16 = vmul.f32 %v1214_v46, %v1162_v44  ;;  %v1633_v46 = vsub.f32 0.0, %v1569_v56 }
 0x2ca   :  { %v4673_v47 = vpop.eup %4672  ;;  %v1322_v51 = vmax.f32 %v1290_v16, 1e-20  ;;  %v1749_v29 = vmul.f32 1.442695, %v1633_v46  ;;  %v1395_v46 = vld [vmem:[%s7464_s5 + $0x90] sm:$0xff] }
 0x2cb   :  { %v7109_v60 = vpop.xlane.xlu1 %1049  ;;  %v1823_v45 = vmul.f32 %v4673_v47, %v4667_v34  ;;  %v1824_v12 = vmul.f32 %v4673_v47, %v4671_v59  ;;  %v7816_v34 = vld [vmem:[#allocation19_spill] sm:$0xff]  ;;  %v1753_v59 = vmul.f32 1.442695, %v1635_v0  ;;  %v1180_v47 = vmul.f32 %v7050_v49, %v7043_v58  ;;  %v4675_v56 = vpop.eup %4674 }
 0x2cc   :  { %4680 = vrcp.f32 %v1322_v51  ;;  %v1475_v9 = vsub.f32 %v7816_v34, %v6559_v8  ;;  %v1476_v51 = vsub.f32 %v7816_v34, %v6606_v11  ;;  %v1271_v58 = vpop.xlane.xlu0 %1270  ;;  %v1396_v34 = vld [vmem:[%s7464_s5 + $0x98] sm:$0xff] }
 0x2cd   :  { %v1887_v43 = vmul.f32 %v1823_v45, %v1427_v2  ;;  %v7114_v44 = vmul.f32 %v1824_v12, %v1428_v6  ;;  %v1755_v2 = vmul.f32 1.442695, %v1636_v7  ;;  %v4677_v6 = vpop.eup %4676  ;;  %4682 = vpow2.f32 %v1753_v59  ;;  %v1394_v7 = vld [vmem:[%s7464_s5 + $0x88] sm:$0xff] }
 0x2ce   :  { %v1539_v13 = vmul.f32 %v1475_v9, %v1475_v9  ;;  %v4679_v12 = vpop.eup %4678  ;;  %v1789_v0 = vmul.f32 %v4677_v6, %v7000_v37  ;;  %4684 = vpow2.f32 %v1749_v29  ;;  %v1540_v9 = vmul.f32 %v1476_v51, %v1476_v51 }
 0x2cf   :  { %v7116_v16 = vpop.xlane.xlu1 %1145  ;;  %v2727_v5 = vpack.c.bf16 %v1887_v43, %v1885_v24  ;;  %v1537_v43 = vmul.f32 %v1473_v25, %v1473_v25  ;;  %4686 = vpow2.f32 %v1755_v2 }
 0x2d0   :  { %v1603_v25 = vsub.f32 0.0, %v1539_v13  ;;  %v1604_v53 = vsub.f32 0.0, %v1540_v9  ;;  %v7154_v2 = vpop.xlane.xlu0 %1004 }
 0x2d1   :  { %2819 = vxpose.xlu0.c.b16.cont [5/8] %v2727_v5, 128  ;;  %v1393_v5 = vld [vmem:[%s7464_s5 + $0x80] sm:$0xff] }
 0x2d2   :  { %v1853_v29 = vmul.f32 %v1789_v0, %v1393_v5 }
 0x2d3   :  { %v1268_v3 = vpop.xlane.xlu1 %1267 }
 0x2d4   :  { %v1308_v45 = vmul.f32 %v1268_v3, %v1180_v47  ;;  %v7146_v3 = vmul.f32 %v7013_v1, %v1394_v7  ;;  %v1164_v1 = vmul.f32 %v7082_v63, %v7075_v32  ;;  %v1181_v32 = vmul.f32 %v6804_v28, %v6787_v40  ;;  %v7168_v63 = vpop.xlane.xlu0 %1100 }
 0x2d6   :  { %v4681_v24 = vpop.eup %4680  ;;  %v1340_v49 = vmax.f32 %v1308_v45, 1e-20  ;;  %7818 = vst [vmem:[#allocation94_spill] sm:$0xff] %v7146_v3  ;;  %v1601_v45 = vsub.f32 0.0, %v1537_v43  ;;  %v7821_v43 = vld [vmem:[#allocation61_spill] sm:$0xff] }
 0x2d7   :  { %v7143_v37 = vpop.xlane.xlu1 %1001  ;;  %v1791_v59 = vmul.f32 %v4681_v24, %v4675_v56  ;;  %v1792_v57 = vmul.f32 %v4681_v24, %v4679_v12  ;;  %v1689_v56 = vmul.f32 1.442695, %v1603_v25  ;;  %v7820_v12 = vld [vmem:[#allocation32_spill] sm:$0xff]  ;;  %v4683_v0 = vpop.eup %4682  ;;  %v1691_v24 = vmul.f32 1.442695, %v1604_v53 }
 0x2d8   :  { %4688 = vrcp.f32 %v1340_v49  ;;  %v1685_v13 = vmul.f32 1.442695, %v1601_v45  ;;  %v1509_v5 = vsub.f32 %v7820_v12, %v6559_v8  ;;  %v1511_v49 = vsub.f32 %v7821_v43, %v6559_v8  ;;  %v4685_v7 = vpop.eup %4684 }
 0x2d9   :  { %v1855_v47 = vmul.f32 %v1791_v59, %v1395_v46  ;;  %v7148_v6 = vmul.f32 %v1792_v57, %v1396_v34  ;;  %v4687_v9 = vpop.eup %4686  ;;  %4690 = vpow2.f32 %v1689_v56  ;;  %v1825_v59 = vmul.f32 %v4685_v7, %v6988_v27  ;;  %v1432_v27 = vld [vmem:[%s7464_s5 + $0x1b8] sm:$0xff] }
 0x2da   :  { %4692 = vpow2.f32 %v1685_v13  ;;  %v1573_v25 = vmul.f32 %v1509_v5, %v1509_v5  ;;  %v1575_v45 = vmul.f32 %v1511_v49, %v1511_v49  ;;  %v7822_v13 = vld [vmem:[#allocation21_spill] sm:$0xff] }
 0x2db   :  { %7819 = vst [vmem:[#allocation78_spill] sm:$0xff] %v7148_v6  ;;  %v7150_v14 = vpop.xlane.xlu1 %1097  ;;  %v2711_v48 = vpack.c.bf16 %v1855_v47, %v1853_v29  ;;  %v1431_v29 = vld [vmem:[%s7464_s5 + $0x1b0] sm:$0xff]  ;;  %v1430_v47 = vld [vmem:[%s7464_s5 + $0x1a8] sm:$0xff]  ;;  %4694 = vpow2.f32 %v1691_v24  ;;  %v1479_v5 = vsub.f32 %v7822_v13, %v6559_v8 }
 0x2dc   :  { %v1637_v55 = vsub.f32 0.0, %v1573_v25  ;;  %v1639_v31 = vsub.f32 0.0, %v1575_v45 }
 0x2dd   :  { %2787 = vxpose.xlu1.c.b16.cont [5/8] %v2711_v48, 128  ;;  %v1429_v48 = vld [vmem:[%s7464_s5 + $0x1a0] sm:$0xff]  ;;  %v1543_v3 = vmul.f32 %v1479_v5, %v1479_v5 }
 0x2de   :  { %v1761_v25 = vmul.f32 1.442695, %v1639_v31  ;;  %v7827_v31 = vld [vmem:[#allocation85_spill] sm:$0xff] }
 0x2df   :  { %v1220_v46 = vpop.xlane.xlu1 %1219 }
 0x2e0   :  { %v1292_v34 = vmul.f32 %v1220_v46, %v1164_v1  ;;  %v1309_v1 = vmul.f32 %v1271_v58, %v1181_v32  ;;  %v1889_v46 = vmul.f32 %v1825_v59, %v1429_v48  ;;  %v7825_v58 = vld [vmem:[#allocation16_spill] sm:$0xff]  ;;  %v1757_v59 = vmul.f32 1.442695, %v1637_v55 }
 0x2e1   :  { %v1477_v48 = vsub.f32 %v7825_v58, %v6559_v8 }
 0x2e2   :  { %v4689_v57 = vpop.eup %4688  ;;  %v1324_v53 = vmax.f32 %v1292_v34, 1e-20  ;;  %v7184_v34 = vmul.f32 %v7003_v26, %v1430_v47  ;;  %v1182_v26 = vmul.f32 %v7116_v16, %v7109_v60  ;;  %v7826_v47 = vld [vmem:[#allocation34_spill] sm:$0xff]  ;;  %v1513_v60 = vsub.f32 %v7827_v31, %v6559_v8 }
 0x2e3   :  { %v7179_v56 = vpop.xlane.xlu1 %1055  ;;  %v1827_v40 = vmul.f32 %v4689_v57, %v4683_v0  ;;  %v1828_v28 = vmul.f32 %v4689_v57, %v4687_v9  ;;  %v1341_v9 = vmax.f32 %v1309_v1, 1e-20  ;;  %v1223_v57 = vpop.xlane.xlu0 %1222  ;;  %v1541_v5 = vmul.f32 %v1477_v48, %v1477_v48  ;;  %v1397_v1 = vld [vmem:[%s7464_s5 + $0xa0] sm:$0xff]  ;;  %v7828_v48 = vld [vmem:[#allocation18_spill] sm:$0xff] }
 0x2e4   :  { %4696 = vrcp.f32 %v1324_v53  ;;  %7823 = vst [vmem:[#allocation51_spill] sm:$0xff] %v7184_v34  ;;  %v4691_v32 = vpop.eup %4690  ;;  %v1165_v16 = vmul.f32 %v6915_v30, %v6866_v42  ;;  %v1577_v18 = vmul.f32 %v1513_v60, %v1513_v60 }
 0x2e5   :  { %v1891_v7 = vmul.f32 %v1827_v40, %v1431_v29  ;;  %v7186_v51 = vmul.f32 %v1828_v28, %v1432_v27  ;;  %v4693_v29 = vpop.eup %4692  ;;  %v1515_v27 = vsub.f32 %v7826_v47, %v6559_v8  ;;  %4698 = vrcp.f32 %v1341_v9  ;;  %v1398_v9 = vld [vmem:[%s7464_s5 + $0xa8] sm:$0xff] }
 0x2e6   :  { %v4695_v40 = vpop.eup %4694  ;;  %v1607_v28 = vsub.f32 0.0, %v1543_v3  ;;  %v1793_v55 = vmul.f32 %v4693_v29, %v7023_v15  ;;  %4700 = vpow2.f32 %v1757_v59  ;;  %v1399_v3 = vld [vmem:[%s7464_s5 + $0xb0] sm:$0xff]  ;;  %v1400_v15 = vld [vmem:[%s7464_s5 + $0xb8] sm:$0xff]  ;;  %v1481_v59 = vsub.f32 %v7828_v48, %v6559_v8 }
 0x2e7   :  { %7824 = vst [vmem:[#allocation41_spill] sm:$0xff] %v7186_v51  ;;  %v7188_v24 = vpop.xlane.xlu1 %1151  ;;  %v2729_v49 = vpack.c.bf16 %v1891_v7, %v1889_v46  ;;  %v1277_v7 = vpop.xlane.xlu0 %1276  ;;  %4702 = vpow2.f32 %v1761_v25  ;;  %v1183_v29 = vmul.f32 %v7122_v21, %v7098_v22  ;;  %v7220_v34 = vmul.f32 %v7028_v33, %v1398_v9  ;;  %v7829_v25 = vld [vmem:[#allocation23_spill] sm:$0xff] }
 0x2e8   :  { %v1857_v0 = vmul.f32 %v1793_v55, %v1397_v1  ;;  %v1605_v38 = vsub.f32 0.0, %v1541_v5  ;;  %v1483_v39 = vsub.f32 %v7829_v25, %v6559_v8  ;;  %v1697_v1 = vmul.f32 1.442695, %v1607_v28 }
 0x2e9   :  { %2820 = vxpose.xlu0.c.b16.cont [6/8] %v2729_v49, 128  ;;  %v1545_v55 = vmul.f32 %v1481_v59, %v1481_v59  ;;  %v1167_v33 = vmul.f32 %v7168_v63, %v7154_v2  ;;  %v1166_v8 = vmul.f32 %v7150_v14, %v7143_v37  ;;  %v1184_v14 = vmul.f32 %v7188_v24, %v7179_v56  ;;  %v1435_v37 = vld [vmem:[%s7464_s5 + $0x1d0] sm:$0xff] }
 0x2ea   :  { %v1693_v60 = vmul.f32 1.442695, %v1605_v38 }
 0x2eb   :  { %v1274_v53 = vpop.xlane.xlu1 %1273 }
 0x2ec   :  { %v1310_v45 = vmul.f32 %v1274_v53, %v1182_v26  ;;  %v1579_v53 = vmul.f32 %v1515_v27, %v1515_v27 }
 0x2ee   :  { %v4697_v46 = vpop.eup %4696  ;;  %v1342_v49 = vmax.f32 %v1310_v45, 1e-20  ;;  %v1293_v45 = vmul.f32 %v1223_v57, %v1165_v16  ;;  %v1229_v57 = vpop.xlane.xlu0 %1228  ;;  %v1641_v16 = vsub.f32 0.0, %v1577_v18 }
 0x2ef   :  { %v1008_v26 = vpop.xlane.xlu1 %1007  ;;  %v1795_v42 = vmul.f32 %v4697_v46, %v4691_v32  ;;  %v1796_v30 = vmul.f32 %v4697_v46, %v4695_v40  ;;  %v1311_v32 = vmul.f32 %v1277_v7, %v1183_v29  ;;  %v1643_v46 = vsub.f32 0.0, %v1579_v53  ;;  %v7230_v5 = vpop.eup %4698 }
 0x2f0   :  { %4704 = vrcp.f32 %v1342_v49  ;;  %v1325_v21 = vmax.f32 %v1293_v45, 1e-20  ;;  %v1295_v7 = vmul.f32 %v1229_v57, %v1167_v33  ;;  %v1765_v38 = vmul.f32 1.442695, %v1641_v16 }
 0x2f1   :  { %v1859_v6 = vmul.f32 %v1795_v42, %v1399_v3  ;;  %v7222_v51 = vmul.f32 %v1796_v30, %v1400_v15  ;;  %v4701_v3 = vpop.eup %4700  ;;  %v1609_v15 = vsub.f32 0.0, %v1545_v55  ;;  %v1769_v59 = vmul.f32 1.442695, %v1643_v46 }
 0x2f2   :  { %4706 = vrcp.f32 %v1325_v21  ;;  %v4703_v9 = vpop.eup %4702  ;;  %v1829_v2 = vmul.f32 %v4701_v3, %v7230_v5  ;;  %v1327_v30 = vmax.f32 %v1295_v7, 1e-20  ;;  %v1403_v7 = vld [vmem:[%s7464_s5 + $0xd0] sm:$0xff] }
 0x2f3   :  { %v1104_v40 = vpop.xlane.xlu1 %1103  ;;  %v2713_v27 = vpack.c.bf16 %v1859_v6, %v1857_v0  ;;  %v2714_v22 = vpack.c.bf16 %v7222_v51, %v7220_v34  ;;  %v1547_v6 = vmul.f32 %v1483_v39, %v1483_v39  ;;  %v1343_v0 = vmax.f32 %v1311_v32, 1e-20  ;;  %v1433_v39 = vld [vmem:[%s7464_s5 + $0x1c0] sm:$0xff] }
 0x2f4   :  { %4708 = vpow2.f32 %v1697_v1  ;;  %v1893_v32 = vmul.f32 %v1829_v2, %v1433_v39  ;;  %v1701_v24 = vmul.f32 1.442695, %v1609_v15  ;;  %v1437_v39 = vld [vmem:[%s7464_s5 + $0x1e0] sm:$0xff] }
 0x2f5   :  { %2788 = vxpose.xlu1.c.b16.cont [6/8] %v2713_v27, 128  ;;  %4710 = vpow2.f32 %v1693_v60  ;;  %v1611_v42 = vsub.f32 0.0, %v1547_v6  ;;  %v1168_v27 = vmul.f32 %v1104_v40, %v1008_v26 }
 0x2f6   :  { %4712 = vrcp.f32 %v1343_v0  ;;  %v1401_v0 = vld [vmem:[%s7464_s5 + $0xc0] sm:$0xff] }
 0x2f7   :  { %v1226_v49 = vpop.xlane.xlu1 %1225  ;;  %v1705_v57 = vmul.f32 1.442695, %v1611_v42 }
 0x2f8   :  { %v1294_v28 = vmul.f32 %v1226_v49, %v1166_v8 }
 0x2fa   :  { %v7235_v63 = vpop.eup %4704  ;;  %v1326_v18 = vmax.f32 %v1294_v28, 1e-20 }
 0x2fb   :  { %v1280_v53 = vpop.xlane.xlu1 %1279  ;;  %v1831_v29 = vmul.f32 %v7235_v63, %v4703_v9  ;;  %v1512_v9 = vsub.f32 %v7821_v43, %v6606_v11  ;;  %v1480_v43 = vsub.f32 %v7822_v13, %v6606_v11 }
 0x2fc   :  { %4714 = vrcp.f32 %v1326_v18  ;;  %v1312_v45 = vmul.f32 %v1280_v53, %v1184_v14  ;;  %v7246_v33 = vpop.eup %4706  ;;  %v1510_v18 = vsub.f32 %v7820_v12, %v6606_v11 }
 0x2fd   :  { %4716 = vpow2.f32 %v1769_v59  ;;  %v1895_v56 = vmul.f32 %v1831_v29, %v1435_v37  ;;  %v1439_v37 = vld [vmem:[%s7464_s5 + $0x1f0] sm:$0xff]  ;;  %v1516_v29 = vsub.f32 %v7826_v47, %v6606_v11  ;;  %v1405_v47 = vld [vmem:[%s7464_s5 + $0xe0] sm:$0xff] }
 0x2fe   :  { %4718 = vpow2.f32 %v1765_v38  ;;  %v1344_v21 = vmax.f32 %v1312_v45, 1e-20  ;;  %v4709_v16 = vpop.eup %4708  ;;  %v1576_v45 = vmul.f32 %v1512_v9, %v1512_v9  ;;  %v1574_v13 = vmul.f32 %v1510_v18, %v1510_v18 }
 0x2ff   :  { %4720 = vrcp.f32 %v1327_v30  ;;  %v1232_v1 = vpop.xlane.xlu1 %1231  ;;  %v2731_v55 = vpack.c.bf16 %v1895_v56, %v1893_v32  ;;  %v4711_v8 = vpop.eup %4710  ;;  %v1478_v32 = vsub.f32 %v7825_v58, %v6606_v11  ;;  %v1544_v58 = vmul.f32 %v1480_v43, %v1480_v43 }
 0x300   :  { %4722 = vrcp.f32 %v1344_v21  ;;  %v1296_v46 = vmul.f32 %v1232_v1, %v1168_v27  ;;  %v7248_v6 = vpop.eup %4712  ;;  %v1797_v26 = vmul.f32 %v4711_v8, %v7246_v33  ;;  %v1407_v1 = vld [vmem:[%s7464_s5 + $0xf0] sm:$0xff]  ;;  %v1640_v8 = vsub.f32 0.0, %v1576_v45 }
 0x301   :  { %2821 = vxpose.xlu0.c.b16.cont [7/8] %v2731_v55, 128  ;;  %4724 = vpow2.f32 %v1701_v24 }
 0x302   :  { %v1328_v60 = vmax.f32 %v1296_v46, 1e-20  ;;  %4726 = vpow2.f32 %v1705_v57  ;;  %v1861_v59 = vmul.f32 %v1797_v26, %v1401_v0  ;;  %v1514_v57 = vsub.f32 %v7827_v31, %v6606_v11 }
 0x303   :  { %v1542_v26 = vmul.f32 %v1478_v32, %v1478_v32  ;;  %v7834_v32 = vpack.c.bf16 %v6957_v4, %v6955_v54  ;;  %v1436_v54 = vld [vmem:[%s7464_s5 + $0x1d8] sm:$0xff] }
 0x304   :  { %4728 = vrcp.f32 %v1328_v60  ;;  %v1484_v60 = vsub.f32 %v7829_v25, %v6606_v11  ;;  %v7830_v25 = vpack.c.bf16 %v6863_v52, %v6861_v23 }
 0x305   :  { %v1606_v18 = vsub.f32 0.0, %v1542_v26 }
 0x306   :  { %v7251_v40 = vpop.eup %4714 }
 0x307   :  { %v4717_v49 = vpop.eup %4716  ;;  %v1799_v3 = vmul.f32 %v7251_v40, %v4709_v16  ;;  %v1580_v16 = vmul.f32 %v1516_v29, %v1516_v29  ;;  %v7832_v29 = vpack.c.bf16 %v6925_v10, %v6923_v36  ;;  %v7836_v36 = vpack.c.bf16 %v6994_v35, %v6992_v17 }
 0x308   :  { %v4719_v28 = vpop.eup %4718 }
 0x309   :  { %v7262_v15 = vpop.eup %4720  ;;  %v1863_v2 = vmul.f32 %v1799_v3, %v1403_v7  ;;  %v1833_v38 = vmul.f32 %v4719_v28, %v7248_v6  ;;  %v1482_v7 = vsub.f32 %v7828_v48, %v6606_v11  ;;  %v1578_v3 = vmul.f32 %v1514_v57, %v1514_v57 }
 0x30a   :  { %v7265_v14 = vpop.eup %4722  ;;  %v1608_v28 = vsub.f32 0.0, %v1544_v58  ;;  %v1695_v11 = vmul.f32 1.442695, %v1606_v18  ;;  %v7831_v48 = vpack.c.bf16 %v6886_v19, %v6884_v61  ;;  %v7835_v19 = vpack.c.bf16 %v7048_v41, %v7046_v20  ;;  %v7839_v20 = vld [vmem:[#allocation48_spill] sm:$0xff]  ;;  %v7840_v41 = vld [vmem:[#allocation55_spill] sm:$0xff] }
 0x30b   :  { %v2715_v42 = vpack.c.bf16 %v1863_v2, %v1861_v59  ;;  %v1835_v30 = vmul.f32 %v7265_v14, %v4717_v49  ;;  %v4725_v53 = vpop.eup %4724  ;;  %v1897_v56 = vmul.f32 %v1833_v38, %v1437_v39  ;;  %v1638_v49 = vsub.f32 0.0, %v1574_v13 }
 0x30c   :  { %v4727_v12 = vpop.eup %4726  ;;  %v1801_v27 = vmul.f32 %v4725_v53, %v7262_v15  ;;  %v1548_v59 = vmul.f32 %v1484_v60, %v1484_v60  ;;  %v1644_v2 = vsub.f32 0.0, %v1580_v16  ;;  %v1763_v38 = vmul.f32 1.442695, %v1640_v8  ;;  %v7845_v16 = vld [vmem:[#allocation78_spill] sm:$0xff] }
 0x30d   :  { %2789 = vxpose.xlu1.c.b16.cont [7/8] %v2715_v42, 128  ;;  %v1899_v24 = vmul.f32 %v1835_v30, %v1439_v37  ;;  %v1546_v39 = vmul.f32 %v1482_v7, %v1482_v7  ;;  %v1759_v37 = vmul.f32 1.442695, %v1638_v49  ;;  %v1642_v43 = vsub.f32 0.0, %v1578_v3  ;;  %v7846_v8 = vld [vmem:[#allocation94_spill] sm:$0xff] }
 0x30e   :  { %v7283_v21 = vpop.eup %4728  ;;  %v1865_v31 = vmul.f32 %v1801_v27, %v1405_v47  ;;  %v1699_v42 = vmul.f32 1.442695, %v1608_v28  ;;  %v1612_v30 = vsub.f32 0.0, %v1548_v59  ;;  %v1771_v53 = vmul.f32 1.442695, %v1644_v2  ;;  %v1438_v7 = vld [vmem:[%s7464_s5 + $0x1e8] sm:$0xff] }
 0x30f   :  { %v2733_v55 = vpack.c.bf16 %v1899_v24, %v1897_v56  ;;  %v1803_v46 = vmul.f32 %v7283_v21, %v4727_v12  ;;  %4730 = vpow2.f32 %v1763_v38  ;;  %v1610_v45 = vsub.f32 0.0, %v1546_v39  ;;  %v7837_v56 = vld [vmem:[#allocation56_spill] sm:$0xff]  ;;  %v1402_v49 = vld [vmem:[%s7464_s5 + $0xc8] sm:$0xff] }
 0x310   :  { %4732 = vpow2.f32 %v1759_v37  ;;  %v1767_v23 = vmul.f32 1.442695, %v1642_v43  ;;  %v1707_v52 = vmul.f32 1.442695, %v1612_v30  ;;  %v7833_v12 = vpack.c.bf16 %v6929_v50, %v6927_v62 }
 0x311   :  { %2822 = vxpose.xlu0.c.b16.end [8/8] %v2733_v55, 128  ;;  %v1867_v0 = vmul.f32 %v1803_v46, %v1407_v1  ;;  %4734 = vpow2.f32 %v1699_v42  ;;  %v1703_v61 = vmul.f32 1.442695, %v1610_v45  ;;  %v7838_v24 = vpack.c.bf16 %v7114_v44, %v7837_v56  ;;  %v1440_v44 = vld [vmem:[%s7464_s5 + $0x1f8] sm:$0xff]  ;;  %v7842_v55 = vld [vmem:[#allocation41_spill] sm:$0xff] }
 0x312   :  { %4736 = vpow2.f32 %v1771_v53  ;;  %v7841_v27 = vpack.c.bf16 %v7839_v20, %v7840_v41  ;;  %v7843_v46 = vld [vmem:[#allocation51_spill] sm:$0xff]  ;;  %v7847_v26 = vpack.c.bf16 %v7845_v16, %v7846_v8  ;;  %v4776_v41 = vmov 0.0  }
 0x313   :  { %v2717_v9 = vpack.c.bf16 %v1867_v0, %v1865_v31  ;;  %4738 = vpow2.f32 %v1695_v11  ;;  %v7844_v60 = vpack.c.bf16 %v7842_v55, %v7843_v46  ;;  %3169 = vst.msk [vmem:[#allocation2 + $0x10] sm:$0xff] %vm3168_vm1, %v4776_v41  ;;  %3172 = vst.msk [vmem:[#allocation2 + $0x28] sm:$0xff] %vm3168_vm1, %v4776_v41 }
 0x314   :  { %4740 = vpow2.f32 %v1767_v23  ;;  %3175 = vst.msk [vmem:[#allocation2 + $0x40] sm:$0xff] %vm3168_vm1, %v4776_v41  ;;  %3178 = vst.msk [vmem:[#allocation2 + $0x58] sm:$0xff] %vm3168_vm1, %v4776_v41 }
 0x315   :  { %2831 = vxpose.xlu0.c.b16.start [1/8] (narrow) %v7830_v25, 96  ;;  %2790 = vxpose.xlu1.c.b16.end [8/8] %v2717_v9, 128  ;;  %4742 = vpow2.f32 %v1707_v52  ;;  %v1406_v25 = vld [vmem:[%s7464_s5 + $0xe8] sm:$0xff]  ;;  %3181 = vst.msk [vmem:[#allocation2 + $0x70] sm:$0xff] %vm3168_vm1, %v4776_v41  ;;  %3184 = vst.msk [vmem:[#allocation2 + $0x88] sm:$0xff] %vm3168_vm1, %v4776_v41 }
 0x316   :  { %4744 = vpow2.f32 %v1703_v61  ;;  %3187 = vst.msk [vmem:[#allocation2 + $0xa0] sm:$0xff] %vm3168_vm1, %v4776_v41  ;;  %3190 = vst.msk [vmem:[#allocation2 + $0xb8] sm:$0xff] %vm3168_vm1, %v4776_v41 }
 0x317   :  { %3193 = vst.msk [vmem:[#allocation2 + $0xd0] sm:$0xff] %vm3168_vm1, %v4776_v41  ;;  %3196 = vst.msk [vmem:[#allocation2 + $0xe8] sm:$0xff] %vm3168_vm1, %v4776_v41 }
 0x318   :  { %3199 = vst.msk [vmem:[#allocation2 + $0x100] sm:$0xff] %vm3168_vm1, %v4776_v41  ;;  %3202 = vst.msk [vmem:[#allocation2 + $0x118] sm:$0xff] %vm3168_vm1, %v4776_v41 }
 0x319   :  { %2832 = vxpose.xlu0.c.b16.cont [2/8] (narrow) %v7831_v48, 96  ;;  %2799 = vxpose.xlu1.c.b16.start [1/8] (narrow) %v7832_v29, 96  ;;  %v4731_v10 = vpop.eup %4730  ;;  %3205 = vst.msk [vmem:[#allocation2 + $0x130] sm:$0xff] %vm3168_vm1, %v4776_v41  ;;  %3208 = vst.msk [vmem:[#allocation2 + $0x148] sm:$0xff] %vm3168_vm1, %v4776_v41 }
 0x31a   :  { %v1832_v62 = vmul.f32 %v4731_v10, %v7235_v63  ;;  %v4733_v50 = vpop.eup %4732  ;;  %v1434_v63 = vld [vmem:[%s7464_s5 + $0x1c8] sm:$0xff]  ;;  %3211 = vst.msk [vmem:[#allocation2 + $0x160] sm:$0xff] %vm3168_vm1, %v4776_v41  ;;  %3214 = vst.msk [vmem:[#allocation2 + $0x178] sm:$0xff] %vm3168_vm1, %v4776_v41 }
 0x31b   :  { %v4735_v4 = vpop.eup %4734  ;;  %v1830_v17 = vmul.f32 %v4733_v50, %v7230_v5  ;;  %v1404_v5 = vld [vmem:[%s7464_s5 + $0xd8] sm:$0xff]  ;;  %3217 = vst.msk [vmem:[#allocation2 + $0x190] sm:$0xff] %vm3168_vm1, %v4776_v41  ;;  %3220 = vst.msk [vmem:[#allocation2 + $0x1a8] sm:$0xff] %vm3168_vm1, %v4776_v41 }
 0x31c   :  { %v4737_v35 = vpop.eup %4736  ;;  %v1896_v57 = vmul.f32 %v1832_v62, %v1436_v54  ;;  %v1800_v1 = vmul.f32 %v4735_v4, %v7251_v40  ;;  %3223 = vst.msk [vmem:[#allocation2 + $0x1c0] sm:$0xff] %vm3168_vm1, %v4776_v41  ;;  %3226 = vst.msk [vmem:[#allocation2 + $0x1d8] sm:$0xff] %vm3168_vm1, %v4776_v41 }
 0x31d   :  { %2833 = vxpose.xlu0.c.b16.cont [3/8] (narrow) %v7833_v12, 96  ;;  %2800 = vxpose.xlu1.c.b16.cont [2/8] (narrow) %v7834_v32, 96  ;;  %v4739_v13 = vpop.eup %4738  ;;  %v1836_v47 = vmul.f32 %v4737_v35, %v7265_v14  ;;  %v1894_v14 = vmul.f32 %v1830_v17, %v1434_v63  ;;  %3229 = vst.msk [vmem:[#allocation2 + $0x1f0] sm:$0xff] %vm3168_vm1, %v4776_v41  ;;  %3232 = vst.msk [vmem:[#allocation2 + $0x208] sm:$0xff] %vm3168_vm1, %v4776_v41 }
 0x31e   :  { %v4741_v58 = vpop.eup %4740  ;;  %v1798_v31 = vmul.f32 %v4739_v13, %v7246_v33  ;;  %v1864_v9 = vmul.f32 %v1800_v1, %v1404_v5  ;;  %3235 = vst.msk [vmem:[#allocation2 + $0x220] sm:$0xff] %vm3168_vm1, %v4776_v41  ;;  %3238 = vst.msk [vmem:[#allocation2 + $0x238] sm:$0xff] %vm3168_vm1, %v4776_v41  ;;  %v3250_v1 = vld [vmem:[#allocation2 + $0x10] sm:$0xff] }
 0x31f   :  { %v1834_v40 = vmul.f32 %v4741_v58, %v7248_v6  ;;  %v4743_v0 = vpop.eup %4742  ;;  %v2732_v3 = vpack.c.bf16 %v1896_v57, %v1894_v14  ;;  %v1900_v28 = vmul.f32 %v1836_v47, %v1440_v44  ;;  %v1408_v6 = vld [vmem:[%s7464_s5 + $0xf8] sm:$0xff]  ;;  %3241 = vst.msk [vmem:[#allocation2 + $0x250] sm:$0xff] %vm3168_vm1, %v4776_v41  ;;  %3244 = vst.msk [vmem:[#allocation2 + $0x268] sm:$0xff] %vm3168_vm1, %v4776_v41  ;;  %s4777_s5 = smov [#allocation3]  }
 0x320   :  { %v1804_v59 = vmul.f32 %v4743_v0, %v7283_v21  ;;  %v4745_v2 = vpop.eup %4744  ;;  %v1862_v38 = vmul.f32 %v1798_v31, %v1402_v49  ;;  %3247 = vst.msk [vmem:[#allocation2 + $0x280] sm:$0xff] %vm3168_vm1, %v4776_v41  ;;  %v3268_v41 = vld [vmem:[#allocation2 + $0xa0] sm:$0xff]  ;;  %s3909_s10 = sshll.u32 %s4777_s5, 4  ;;  %s3910_s10 = int_to_ptr.vmem [resolvable:$true] %s3909_s10 }
 0x321   :  { %2834 = vxpose.xlu0.c.b16.cont [4/8] (narrow) %v7835_v19, 96  ;;  %2801 = vxpose.xlu1.c.b16.cont [3/8] (narrow) %v7836_v36, 96  ;;  %v1898_v33 = vmul.f32 %v1834_v40, %v1438_v7  ;;  %v1802_v18 = vmul.f32 %v4745_v2, %v7262_v15  ;;  %s4749_s11 = scalar_lea.vmem %s3910_s10, 5184  ;;  %p4754_p1 = scmp.lt.s32.totalorder %s3910_s10, %s3910_s10 }
 0x322   :  { %v2716_v21 = vpack.c.bf16 %v1864_v9, %v1862_v38  ;;  %v1868_v37 = vmul.f32 %v1804_v59, %v1408_v6  ;;  %p4750_p0 = scmp.ne.s32.totalorder %s3910_s10, %s4749_s11  ;;  %p4755_p2 = scmp.lt.s32.totalorder %s4749_s11, %s4749_s11 }
 0x323   :  { %v2734_v39 = vpack.c.bf16 %v1900_v28, %v1898_v33  ;;  %v1866_v43 = vmul.f32 %v1802_v18, %v1406_v25  ;;  %v3259_v33 = vld [vmem:[#allocation2 + $0x58] sm:$0xff] }
 0x324   :  { %p4756_p3 = por %p4755_p2, %p4754_p1 }
 0x325   :  { %2835 = vxpose.xlu0.c.b16.cont [5/8] (narrow) %v7838_v24, 96  ;;  %2802 = vxpose.xlu1.c.b16.cont [4/8] (narrow) %v7841_v27, 96  ;;  %v2718_v42 = vpack.c.bf16 %v1868_v37, %v1866_v43 }
 0x326   :  { %p4757_p4 = pnand %p4756_p3, %p4750_p0 }
 0x329   :  { %2836 = vxpose.xlu0.c.b16.cont [6/8] (narrow) %v7844_v60, 96  ;;  %2803 = vxpose.xlu1.c.b16.cont [5/8] (narrow) %v7847_v26, 96  ;;  %v3253_v60 = vld [vmem:[#allocation2 + $0x28] sm:$0xff] }
 0x32d   :  { %2837 = vxpose.xlu0.c.b16.cont [7/8] (narrow) %v2732_v3, 96  ;;  %2804 = vxpose.xlu1.c.b16.cont [6/8] (narrow) %v2714_v22, 96  ;;  %v3256_v3 = vld [vmem:[#allocation2 + $0x40] sm:$0xff] }
 0x331   :  { %2838 = vxpose.xlu0.c.b16.end [8/8] (narrow) %v2734_v39, 96  ;;  %2805 = vxpose.xlu1.c.b16.cont [7/8] (narrow) %v2716_v21, 96 }
 0x335   :  { %2806 = vxpose.xlu1.c.b16.end [8/8] (narrow) %v2718_v42, 96 }
 0x35b   :  { %v2823_v30 = vpop.trf.xlu0 }
 0x35c   :  { %2879 = vmatprep.mubr.bf16.mxu0 %v2823_v30  ;;  %3050 = vmatprep.mubr.bf16.mxu1 %v2823_v30 }
 0x35f   :  { %v2791_v51 = vpop.trf.xlu1  ;;  %v2824_v34 = vpop.trf.xlu0 }
 0x360   :  { %2880 = vmatmul.mubr.bf16.vlgmr.msra.gmra.mrb[0].mxu0 %v2791_v51  ;;  %3051 = vmatmul.mubr.bf16.vlgmr.msra.gmra.mrb[0].mxu1 %v2791_v51 }
 0x361   :  { %2889 = vmatprep.mubr.bf16.mxu0 %v2824_v34  ;;  %3058 = vmatprep.mubr.bf16.mxu1 %v2824_v34 }
 0x363   :  { %v2792_v22 = vpop.trf.xlu1  ;;  %v2825_v15 = vpop.trf.xlu0 }
 0x367   :  { %v2793_v53 = vpop.trf.xlu1  ;;  %v2826_v11 = vpop.trf.xlu0 }
 0x368   :  { %2890 = vmatmul.mubr.bf16.gmra.mrb[4].mxu0 %v2792_v22  ;;  %3059 = vmatmul.mubr.bf16.gmra.mrb[4].mxu1 %v2792_v22 }
 0x369   :  { %2899 = vmatprep.mubr.bf16.mxu0 %v2825_v15  ;;  %3066 = vmatprep.mubr.bf16.mxu1 %v2825_v15 }
 0x36b   :  { %v2794_v48 = vpop.trf.xlu1  ;;  %v2827_v29 = vpop.trf.xlu0 }
 0x36f   :  { %v2795_v45 = vpop.trf.xlu1  ;;  %v2828_v23 = vpop.trf.xlu0 }
 0x370   :  { %2900 = vmatmul.mubr.bf16.gmra.mrb[8].mxu0 %v2793_v53  ;;  %3067 = vmatmul.mubr.bf16.gmra.mrb[8].mxu1 %v2793_v53  ;;  %v3262_v53 = vld [vmem:[#allocation2 + $0x70] sm:$0xff] }
 0x371   :  { %2909 = vmatprep.mubr.bf16.mxu0 %v2826_v11  ;;  %3074 = vmatprep.mubr.bf16.mxu1 %v2826_v11 }
 0x373   :  { %v2796_v52 = vpop.trf.xlu1  ;;  %v2829_v12 = vpop.trf.xlu0 }
 0x377   :  { %v2797_v32 = vpop.trf.xlu1  ;;  %v2830_v61 = vpop.trf.xlu0 }
 0x378   :  { %2910 = vmatmul.mubr.bf16.gmra.mrb[12].mxu0 %v2794_v48  ;;  %3075 = vmatmul.mubr.bf16.gmra.mrb[12].mxu1 %v2794_v48 }
 0x379   :  { %2919 = vmatprep.mubr.bf16.mxu0 %v2827_v29  ;;  %3082 = vmatprep.mubr.bf16.mxu1 %v2827_v29 }
 0x37b   :  { %v2798_v19 = vpop.trf.xlu1  ;;  %v2839_v36 = vpop.trf.xlu0 }
 0x37f   :  { %v2807_v10 = vpop.trf.xlu1  ;;  %v2840_v62 = vpop.trf.xlu0 }
 0x380   :  { %2920 = vmatmul.mubr.bf16.gmra.mrb[16].mxu0 %v2795_v45  ;;  %3083 = vmatmul.mubr.bf16.gmra.mrb[16].mxu1 %v2795_v45 }
 0x381   :  { %2929 = vmatprep.mubr.bf16.mxu0 %v2828_v23  ;;  %3090 = vmatprep.mubr.bf16.mxu1 %v2828_v23 }
 0x383   :  { %v2808_v50 = vpop.trf.xlu1  ;;  %v2841_v54 = vpop.trf.xlu0 }
 0x387   :  { %v2809_v4 = vpop.trf.xlu1  ;;  %v2842_v56 = vpop.trf.xlu0 }
 0x388   :  { %2930 = vmatmul.mubr.bf16.gmra.mrb[20].mxu0 %v2796_v52  ;;  %3091 = vmatmul.mubr.bf16.gmra.mrb[20].mxu1 %v2796_v52  ;;  %v3265_v52 = vld [vmem:[#allocation2 + $0x88] sm:$0xff] }
 0x389   :  { %2939 = vmatprep.mubr.bf16.mxu0 %v2829_v12  ;;  %3098 = vmatprep.mubr.bf16.mxu1 %v2829_v12 }
 0x38b   :  { %v2810_v24 = vpop.trf.xlu1  ;;  %v2843_v20 = vpop.trf.xlu0 }
 0x38f   :  { %v2811_v27 = vpop.trf.xlu1  ;;  %v2844_v17 = vpop.trf.xlu0 }
 0x390   :  { %2940 = vmatmul.mubr.bf16.gmra.mrb[24].mxu0 %v2797_v32  ;;  %3099 = vmatmul.mubr.bf16.gmra.mrb[24].mxu1 %v2797_v32 }
 0x391   :  { %2949 = vmatprep.mubr.bf16.mxu0 %v2830_v61  ;;  %3106 = vmatprep.mubr.bf16.mxu1 %v2830_v61 }
 0x393   :  { %v2812_v35 = vpop.trf.xlu1 }
 0x398   :  { %2950 = vmatmul.mubr.bf16.gmra.mrb[28].mxu0 %v2798_v19  ;;  %3107 = vmatmul.mubr.bf16.gmra.mrb[28].mxu1 %v2798_v19 }
 0x399   :  { %2959 = vmatprep.mubr.bf16.mxu0 %v2839_v36  ;;  %3114 = vmatprep.mubr.bf16.mxu1 %v2839_v36 }
 0x3a0   :  { %2960 = vmatmul.mubr.bf16.gmra.mrb[32].mxu0 %v2807_v10  ;;  %3115 = vmatmul.mubr.bf16.gmra.mrb[32].mxu1 %v2807_v10 }
 0x3a1   :  { %2969 = vmatprep.mubr.bf16.mxu0 %v2840_v62  ;;  %3122 = vmatprep.mubr.bf16.mxu1 %v2840_v62 }
 0x3a8   :  { %2970 = vmatmul.mubr.bf16.gmra.mrb[36].mxu0 %v2808_v50  ;;  %3123 = vmatmul.mubr.bf16.gmra.mrb[36].mxu1 %v2808_v50 }
 0x3a9   :  { %2979 = vmatprep.mubr.bf16.mxu0 %v2841_v54  ;;  %3130 = vmatprep.mubr.bf16.mxu1 %v2841_v54 }
 0x3b0   :  { %2980 = vmatmul.mubr.bf16.gmra.mrb[40].mxu0 %v2809_v4  ;;  %3131 = vmatmul.mubr.bf16.gmra.mrb[40].mxu1 %v2809_v4 }
 0x3b1   :  { %2989 = vmatprep.mubr.bf16.mxu0 %v2842_v56  ;;  %3138 = vmatprep.mubr.bf16.mxu1 %v2842_v56 }
 0x3b8   :  { %2990 = vmatmul.mubr.bf16.gmra.mrb[44].mxu0 %v2810_v24  ;;  %3139 = vmatmul.mubr.bf16.gmra.mrb[44].mxu1 %v2810_v24 }
 0x3b9   :  { %2999 = vmatprep.mubr.bf16.mxu0 %v2843_v20  ;;  %3146 = vmatprep.mubr.bf16.mxu1 %v2843_v20 }
 0x3c0   :  { %3000 = vmatmul.mubr.bf16.gmra.mrb[48].mxu0 %v2811_v27  ;;  %3147 = vmatmul.mubr.bf16.gmra.mrb[48].mxu1 %v2811_v27 }
 0x3c1   :  { %3009 = vmatprep.mubr.bf16.mxu0 %v2844_v17  ;;  %3154 = vmatprep.mubr.bf16.mxu1 %v2844_v17 }
 0x3c8   :  { %3010 = vmatmul.mubr.bf16.gmra.mrb[52].mxu0 %v2812_v35  ;;  %3155 = vmatmul.mubr.bf16.gmra.mrb[52].mxu1 %v2812_v35 }
 0x433   :  { %v2881_v63 = vpop.f32.mrb[0].mxu0  ;;  %v4045_v13 = vpop.f32.mrb[0].mxu1 }
 0x434   :  { %v2883_v57 = vpop.f32.mrb[1].mxu0  ;;  %v4046_v47 = vpop.f32.mrb[1].mxu1 }
 0x435   :  { %v4047_v58 = vadd.f32 %v4046_v47, %v4045_v13  ;;  %v2885_v44 = vpop.f32.mrb[2].mxu0  ;;  %v4048_v5 = vpop.f32.mrb[2].mxu1  ;;  %v3975_v16 = vpack.c.bf16 %v2883_v57, %v2881_v63  ;;  %v3271_v57 = vld [vmem:[#allocation2 + $0xb8] sm:$0xff] }
 0x436   :  { %v2887_v55 = vpop.f32.mrb[3].mxu0  ;;  %v4049_v46 = vpop.f32.mrb[3].mxu1 }
 0x437   :  { %v3331_v8 = vadd.f32 %v4047_v58, %v3250_v1  ;;  %v4050_v26 = vadd.f32 %v4049_v46, %v4048_v5  ;;  %3849 = vst [vmem:[#allocation3] sm:$0xff] %v3975_v16  ;;  %v3977_v14 = vpack.c.bf16 %v2887_v55, %v2885_v44 }
 0x439   :  { %3413 = vst.msk [vmem:[#allocation2 + $0x10] sm:$0xff] %vm3168_vm1, %v3331_v8  ;;  %v3334_v40 = vadd.f32 %v4050_v26, %v3253_v60  ;;  %3852 = vst [vmem:[#allocation3 + $0xc] sm:$0xff] %v3977_v14 }
 0x43b   :  { %3416 = vst.msk [vmem:[#allocation2 + $0x28] sm:$0xff] %vm3168_vm1, %v3334_v40  ;;  %v2891_v31 = vpop.f32.mrb[4].mxu0  ;;  %v4051_v0 = vpop.f32.mrb[4].mxu1 }
 0x43c   :  { %v2893_v7 = vpop.f32.mrb[5].mxu0  ;;  %v4052_v49 = vpop.f32.mrb[5].mxu1 }
 0x43d   :  { %v4053_v28 = vadd.f32 %v4052_v49, %v4051_v0  ;;  %v2895_v9 = vpop.f32.mrb[6].mxu0  ;;  %v4054_v59 = vpop.f32.mrb[6].mxu1  ;;  %v3979_v38 = vpack.c.bf16 %v2893_v7, %v2891_v31  ;;  %v3274_v31 = vld [vmem:[#allocation2 + $0xd0] sm:$0xff] }
 0x43e   :  { %v2897_v2 = vpop.f32.mrb[7].mxu0  ;;  %v4055_v6 = vpop.f32.mrb[7].mxu1 }
 0x43f   :  { %v3337_v18 = vadd.f32 %v4053_v28, %v3256_v3  ;;  %v4056_v25 = vadd.f32 %v4055_v6, %v4054_v59  ;;  %3854 = vst [vmem:[#allocation3 + $0x18] sm:$0xff] %v3979_v38  ;;  %v3981_v37 = vpack.c.bf16 %v2897_v2, %v2895_v9  ;;  %v3277_v9 = vld [vmem:[#allocation2 + $0xe8] sm:$0xff] }
 0x440   :  { %v3497_v39 = vld [vmem:[#allocation2 + $0x10] sm:$0xff] }
 0x441   :  { %v3976_v21 = vpack.c.bf16 %v3497_v39, %v3497_v39  ;;  %3419 = vst.msk [vmem:[#allocation2 + $0x40] sm:$0xff] %vm3168_vm1, %v3337_v18  ;;  %v3340_v43 = vadd.f32 %v4056_v25, %v3259_v33  ;;  %3856 = vst [vmem:[#allocation3 + $0x24] sm:$0xff] %v3981_v37 }
 0x442   :  { %v3500_v42 = vld [vmem:[#allocation2 + $0x28] sm:$0xff] }
 0x443   :  { %3851 = vst.msk [vmem:[#allocation3 + $0x8] sm:$0xf] %vm3850_vm2, %v3976_v21  ;;  %v3978_v30 = vpack.c.bf16 %v3500_v42, %v3500_v42  ;;  %v2901_v51 = vpop.f32.mrb[8].mxu0  ;;  %v4057_v34 = vpop.f32.mrb[8].mxu1 }
 0x444   :  { %3422 = vst.msk [vmem:[#allocation2 + $0x58] sm:$0xff] %vm3168_vm1, %v3340_v43  ;;  %v2903_v22 = vpop.f32.mrb[9].mxu0  ;;  %v4058_v15 = vpop.f32.mrb[9].mxu1 }
 0x445   :  { %3853 = vst.msk [vmem:[#allocation3 + $0x14] sm:$0xf] %vm3850_vm2, %v3978_v30  ;;  %v4059_v11 = vadd.f32 %v4058_v15, %v4057_v34  ;;  %v2905_v48 = vpop.f32.mrb[10].mxu0  ;;  %v4060_v29 = vpop.f32.mrb[10].mxu1  ;;  %v3983_v12 = vpack.c.bf16 %v2903_v22, %v2901_v51  ;;  %v3280_v51 = vld [vmem:[#allocation2 + $0x100] sm:$0xff] }
 0x446   :  { %v2907_v45 = vpop.f32.mrb[11].mxu0  ;;  %v4061_v23 = vpop.f32.mrb[11].mxu1 }
 0x447   :  { %v3343_v32 = vadd.f32 %v4059_v11, %v3262_v53  ;;  %v4062_v61 = vadd.f32 %v4061_v23, %v4060_v29  ;;  %3858 = vst [vmem:[#allocation3 + $0x30] sm:$0xff] %v3983_v12  ;;  %v3985_v10 = vpack.c.bf16 %v2907_v45, %v2905_v48  ;;  %v3283_v48 = vld [vmem:[#allocation2 + $0x118] sm:$0xff] }
 0x448   :  { %v3503_v19 = vld [vmem:[#allocation2 + $0x40] sm:$0xff] }
 0x449   :  { %v3980_v36 = vpack.c.bf16 %v3503_v19, %v3503_v19  ;;  %3425 = vst.msk [vmem:[#allocation2 + $0x70] sm:$0xff] %vm3168_vm1, %v3343_v32  ;;  %v3346_v62 = vadd.f32 %v4062_v61, %v3265_v52  ;;  %3860 = vst [vmem:[#allocation3 + $0x3c] sm:$0xff] %v3985_v10 }
 0x44b   :  { %v3506_v50 = vld [vmem:[#allocation2 + $0x58] sm:$0xff]  ;;  %3855 = vst.msk [vmem:[#allocation3 + $0x20] sm:$0xf] %vm3850_vm2, %v3980_v36  ;;  %v2911_v4 = vpop.f32.mrb[12].mxu0  ;;  %v4063_v56 = vpop.f32.mrb[12].mxu1 }
 0x44c   :  { %v3982_v54 = vpack.c.bf16 %v3506_v50, %v3506_v50  ;;  %3428 = vst.msk [vmem:[#allocation2 + $0x88] sm:$0xff] %vm3168_vm1, %v3346_v62  ;;  %v2913_v24 = vpop.f32.mrb[13].mxu0  ;;  %v4064_v20 = vpop.f32.mrb[13].mxu1 }
 0x44d   :  { %v4065_v27 = vadd.f32 %v4064_v20, %v4063_v56  ;;  %v2915_v17 = vpop.f32.mrb[14].mxu0  ;;  %v4066_v35 = vpop.f32.mrb[14].mxu1  ;;  %v3987_v47 = vpack.c.bf16 %v2913_v24, %v2911_v4  ;;  %v3286_v4 = vld [vmem:[#allocation2 + $0x130] sm:$0xff] }
 0x44e   :  { %3857 = vst.msk [vmem:[#allocation3 + $0x2c] sm:$0xf] %vm3850_vm2, %v3982_v54  ;;  %v2917_v63 = vpop.f32.mrb[15].mxu0  ;;  %v4067_v13 = vpop.f32.mrb[15].mxu1 }
 0x44f   :  { %v3349_v1 = vadd.f32 %v4065_v27, %v3268_v41  ;;  %v4068_v58 = vadd.f32 %v4067_v13, %v4066_v35  ;;  %3862 = vst [vmem:[#allocation3 + $0x48] sm:$0xff] %v3987_v47  ;;  %v3989_v55 = vpack.c.bf16 %v2917_v63, %v2915_v17  ;;  %v3289_v17 = vld [vmem:[#allocation2 + $0x148] sm:$0xff] }
 0x450   :  { %v3509_v44 = vld [vmem:[#allocation2 + $0x70] sm:$0xff] }
 0x451   :  { %v3984_v5 = vpack.c.bf16 %v3509_v44, %v3509_v44  ;;  %3431 = vst.msk [vmem:[#allocation2 + $0xa0] sm:$0xff] %vm3168_vm1, %v3349_v1  ;;  %v3352_v46 = vadd.f32 %v4068_v58, %v3271_v57  ;;  %3864 = vst [vmem:[#allocation3 + $0x54] sm:$0xff] %v3989_v55 }
 0x453   :  { %v3512_v60 = vld [vmem:[#allocation2 + $0x88] sm:$0xff]  ;;  %3859 = vst.msk [vmem:[#allocation3 + $0x38] sm:$0xf] %vm3850_vm2, %v3984_v5  ;;  %v2921_v8 = vpop.f32.mrb[16].mxu0  ;;  %v4069_v26 = vpop.f32.mrb[16].mxu1 }
 0x454   :  { %v3986_v16 = vpack.c.bf16 %v3512_v60, %v3512_v60  ;;  %3434 = vst.msk [vmem:[#allocation2 + $0xb8] sm:$0xff] %vm3168_vm1, %v3352_v46  ;;  %v2923_v14 = vpop.f32.mrb[17].mxu0  ;;  %v4070_v40 = vpop.f32.mrb[17].mxu1 }
 0x455   :  { %v4071_v0 = vadd.f32 %v4070_v40, %v4069_v26  ;;  %v2925_v7 = vpop.f32.mrb[18].mxu0  ;;  %v4072_v49 = vpop.f32.mrb[18].mxu1  ;;  %v3991_v59 = vpack.c.bf16 %v2923_v14, %v2921_v8  ;;  %v3292_v8 = vld [vmem:[#allocation2 + $0x160] sm:$0xff] }
 0x456   :  { %3861 = vst.msk [vmem:[#allocation3 + $0x44] sm:$0xf] %vm3850_vm2, %v3986_v16  ;;  %v2927_v3 = vpop.f32.mrb[19].mxu0  ;;  %v4073_v28 = vpop.f32.mrb[19].mxu1 }
 0x457   :  { %v3355_v2 = vadd.f32 %v4071_v0, %v3274_v31  ;;  %v4074_v6 = vadd.f32 %v4073_v28, %v4072_v49  ;;  %3866 = vst [vmem:[#allocation3 + $0x60] sm:$0xff] %v3991_v59  ;;  %v3993_v18 = vpack.c.bf16 %v2927_v3, %v2925_v7  ;;  %v3295_v7 = vld [vmem:[#allocation2 + $0x178] sm:$0xff] }
 0x458   :  { %v3515_v33 = vld [vmem:[#allocation2 + $0xa0] sm:$0xff] }
 0x459   :  { %v3988_v38 = vpack.c.bf16 %v3515_v33, %v3515_v33  ;;  %3437 = vst.msk [vmem:[#allocation2 + $0xd0] sm:$0xff] %vm3168_vm1, %v3355_v2  ;;  %v3358_v25 = vadd.f32 %v4074_v6, %v3277_v9  ;;  %3868 = vst [vmem:[#allocation3 + $0x6c] sm:$0xff] %v3993_v18 }
 0x45b   :  { %v3518_v39 = vld [vmem:[#allocation2 + $0xb8] sm:$0xff]  ;;  %3863 = vst.msk [vmem:[#allocation3 + $0x50] sm:$0xf] %vm3850_vm2, %v3988_v38  ;;  %v2931_v37 = vpop.f32.mrb[20].mxu0  ;;  %v4075_v43 = vpop.f32.mrb[20].mxu1 }
 0x45c   :  { %v3990_v21 = vpack.c.bf16 %v3518_v39, %v3518_v39  ;;  %3440 = vst.msk [vmem:[#allocation2 + $0xe8] sm:$0xff] %vm3168_vm1, %v3358_v25  ;;  %v2933_v42 = vpop.f32.mrb[21].mxu0  ;;  %v4076_v30 = vpop.f32.mrb[21].mxu1 }
 0x45d   :  { %v4077_v34 = vadd.f32 %v4076_v30, %v4075_v43  ;;  %v2935_v22 = vpop.f32.mrb[22].mxu0  ;;  %v4078_v15 = vpop.f32.mrb[22].mxu1  ;;  %v3995_v29 = vpack.c.bf16 %v2933_v42, %v2931_v37  ;;  %v3298_v37 = vld [vmem:[#allocation2 + $0x190] sm:$0xff] }
 0x45e   :  { %3865 = vst.msk [vmem:[#allocation3 + $0x5c] sm:$0xf] %vm3850_vm2, %v3990_v21  ;;  %v2937_v53 = vpop.f32.mrb[23].mxu0  ;;  %v4079_v11 = vpop.f32.mrb[23].mxu1 }
 0x45f   :  { %v3361_v45 = vadd.f32 %v4077_v34, %v3280_v51  ;;  %v4080_v23 = vadd.f32 %v4079_v11, %v4078_v15  ;;  %3870 = vst [vmem:[#allocation3 + $0x78] sm:$0xff] %v3995_v29  ;;  %v3997_v32 = vpack.c.bf16 %v2937_v53, %v2935_v22  ;;  %v3301_v22 = vld [vmem:[#allocation2 + $0x1a8] sm:$0xff] }
 0x460   :  { %v3521_v52 = vld [vmem:[#allocation2 + $0xd0] sm:$0xff] }
 0x461   :  { %v3992_v12 = vpack.c.bf16 %v3521_v52, %v3521_v52  ;;  %3443 = vst.msk [vmem:[#allocation2 + $0x100] sm:$0xff] %vm3168_vm1, %v3361_v45  ;;  %v3364_v61 = vadd.f32 %v4080_v23, %v3283_v48  ;;  %3872 = vst [vmem:[#allocation3 + $0x84] sm:$0xff] %v3997_v32 }
 0x463   :  { %v3524_v19 = vld [vmem:[#allocation2 + $0xe8] sm:$0xff]  ;;  %3867 = vst.msk [vmem:[#allocation3 + $0x68] sm:$0xf] %vm3850_vm2, %v3992_v12  ;;  %v2941_v10 = vpop.f32.mrb[24].mxu0  ;;  %v4081_v62 = vpop.f32.mrb[24].mxu1 }
 0x464   :  { %v3994_v36 = vpack.c.bf16 %v3524_v19, %v3524_v19  ;;  %3446 = vst.msk [vmem:[#allocation2 + $0x118] sm:$0xff] %vm3168_vm1, %v3364_v61  ;;  %v2943_v50 = vpop.f32.mrb[25].mxu0  ;;  %v4082_v54 = vpop.f32.mrb[25].mxu1 }
 0x465   :  { %v4083_v56 = vadd.f32 %v4082_v54, %v4081_v62  ;;  %v2945_v24 = vpop.f32.mrb[26].mxu0  ;;  %v4084_v20 = vpop.f32.mrb[26].mxu1  ;;  %v3999_v35 = vpack.c.bf16 %v2943_v50, %v2941_v10  ;;  %v3304_v10 = vld [vmem:[#allocation2 + $0x1c0] sm:$0xff] }
 0x466   :  { %3869 = vst.msk [vmem:[#allocation3 + $0x74] sm:$0xf] %vm3850_vm2, %v3994_v36  ;;  %v2947_v41 = vpop.f32.mrb[27].mxu0  ;;  %v4085_v27 = vpop.f32.mrb[27].mxu1 }
 0x467   :  { %v3367_v63 = vadd.f32 %v4083_v56, %v3286_v4  ;;  %v4086_v13 = vadd.f32 %v4085_v27, %v4084_v20  ;;  %3874 = vst [vmem:[#allocation3 + $0x90] sm:$0xff] %v3999_v35  ;;  %v4001_v1 = vpack.c.bf16 %v2947_v41, %v2945_v24  ;;  %v3307_v24 = vld [vmem:[#allocation2 + $0x1d8] sm:$0xff] }
 0x468   :  { %v3527_v57 = vld [vmem:[#allocation2 + $0x100] sm:$0xff] }
 0x469   :  { %v3996_v47 = vpack.c.bf16 %v3527_v57, %v3527_v57  ;;  %3449 = vst.msk [vmem:[#allocation2 + $0x130] sm:$0xff] %vm3168_vm1, %v3367_v63  ;;  %v3370_v58 = vadd.f32 %v4086_v13, %v3289_v17  ;;  %3876 = vst [vmem:[#allocation3 + $0x9c] sm:$0xff] %v4001_v1 }
 0x46b   :  { %v3530_v44 = vld [vmem:[#allocation2 + $0x118] sm:$0xff]  ;;  %3871 = vst.msk [vmem:[#allocation3 + $0x80] sm:$0xf] %vm3850_vm2, %v3996_v47  ;;  %v2951_v55 = vpop.f32.mrb[28].mxu0  ;;  %v4087_v46 = vpop.f32.mrb[28].mxu1 }
 0x46c   :  { %v3998_v5 = vpack.c.bf16 %v3530_v44, %v3530_v44  ;;  %3452 = vst.msk [vmem:[#allocation2 + $0x148] sm:$0xff] %vm3168_vm1, %v3370_v58  ;;  %v2953_v60 = vpop.f32.mrb[29].mxu0  ;;  %v4088_v16 = vpop.f32.mrb[29].mxu1 }
 0x46d   :  { %v4089_v26 = vadd.f32 %v4088_v16, %v4087_v46  ;;  %v2955_v14 = vpop.f32.mrb[30].mxu0  ;;  %v4090_v40 = vpop.f32.mrb[30].mxu1  ;;  %v4003_v49 = vpack.c.bf16 %v2953_v60, %v2951_v55  ;;  %v3310_v55 = vld [vmem:[#allocation2 + $0x1f0] sm:$0xff] }
 0x46e   :  { %3873 = vst.msk [vmem:[#allocation3 + $0x8c] sm:$0xf] %vm3850_vm2, %v3998_v5  ;;  %v2957_v31 = vpop.f32.mrb[31].mxu0  ;;  %v4091_v0 = vpop.f32.mrb[31].mxu1 }
 0x46f   :  { %v3373_v3 = vadd.f32 %v4089_v26, %v3292_v8  ;;  %v4092_v28 = vadd.f32 %v4091_v0, %v4090_v40  ;;  %3878 = vst [vmem:[#allocation3 + $0xa8] sm:$0xff] %v4003_v49  ;;  %v4005_v2 = vpack.c.bf16 %v2957_v31, %v2955_v14  ;;  %v3313_v14 = vld [vmem:[#allocation2 + $0x208] sm:$0xff] }
 0x470   :  { %v3533_v9 = vld [vmem:[#allocation2 + $0x130] sm:$0xff] }
 0x471   :  { %v4000_v59 = vpack.c.bf16 %v3533_v9, %v3533_v9  ;;  %3455 = vst.msk [vmem:[#allocation2 + $0x160] sm:$0xff] %vm3168_vm1, %v3373_v3  ;;  %v3376_v6 = vadd.f32 %v4092_v28, %v3295_v7  ;;  %3880 = vst [vmem:[#allocation3 + $0xb4] sm:$0xff] %v4005_v2 }
 0x473   :  { %v3536_v33 = vld [vmem:[#allocation2 + $0x148] sm:$0xff]  ;;  %3875 = vst.msk [vmem:[#allocation3 + $0x98] sm:$0xf] %vm3850_vm2, %v4000_v59  ;;  %v2961_v18 = vpop.f32.mrb[32].mxu0  ;;  %v4093_v25 = vpop.f32.mrb[32].mxu1 }
 0x474   :  { %v4002_v38 = vpack.c.bf16 %v3536_v33, %v3536_v33  ;;  %3458 = vst.msk [vmem:[#allocation2 + $0x178] sm:$0xff] %vm3168_vm1, %v3376_v6  ;;  %v2963_v39 = vpop.f32.mrb[33].mxu0  ;;  %v4094_v21 = vpop.f32.mrb[33].mxu1 }
 0x475   :  { %v4095_v43 = vadd.f32 %v4094_v21, %v4093_v25  ;;  %v2965_v42 = vpop.f32.mrb[34].mxu0  ;;  %v4096_v30 = vpop.f32.mrb[34].mxu1  ;;  %v4007_v15 = vpack.c.bf16 %v2963_v39, %v2961_v18  ;;  %v3316_v18 = vld [vmem:[#allocation2 + $0x220] sm:$0xff] }
 0x476   :  { %3877 = vst.msk [vmem:[#allocation3 + $0xa4] sm:$0xf] %vm3850_vm2, %v4002_v38  ;;  %v2967_v51 = vpop.f32.mrb[35].mxu0  ;;  %v4097_v34 = vpop.f32.mrb[35].mxu1 }
 0x477   :  { %v3379_v53 = vadd.f32 %v4095_v43, %v3298_v37  ;;  %v4098_v11 = vadd.f32 %v4097_v34, %v4096_v30  ;;  %3882 = vst [vmem:[#allocation3 + $0xc0] sm:$0xff] %v4007_v15  ;;  %v4009_v45 = vpack.c.bf16 %v2967_v51, %v2965_v42  ;;  %v3319_v42 = vld [vmem:[#allocation2 + $0x238] sm:$0xff] }
 0x478   :  { %v3539_v48 = vld [vmem:[#allocation2 + $0x160] sm:$0xff] }
 0x479   :  { %v4004_v29 = vpack.c.bf16 %v3539_v48, %v3539_v48  ;;  %3461 = vst.msk [vmem:[#allocation2 + $0x190] sm:$0xff] %vm3168_vm1, %v3379_v53  ;;  %v3382_v23 = vadd.f32 %v4098_v11, %v3301_v22  ;;  %3884 = vst [vmem:[#allocation3 + $0xcc] sm:$0xff] %v4009_v45 }
 0x47b   :  { %v3542_v52 = vld [vmem:[#allocation2 + $0x178] sm:$0xff]  ;;  %3879 = vst.msk [vmem:[#allocation3 + $0xb0] sm:$0xf] %vm3850_vm2, %v4004_v29  ;;  %v2971_v32 = vpop.f32.mrb[36].mxu0  ;;  %v4099_v61 = vpop.f32.mrb[36].mxu1 }
 0x47c   :  { %v4006_v12 = vpack.c.bf16 %v3542_v52, %v3542_v52  ;;  %3464 = vst.msk [vmem:[#allocation2 + $0x1a8] sm:$0xff] %vm3168_vm1, %v3382_v23  ;;  %v2973_v19 = vpop.f32.mrb[37].mxu0  ;;  %v4100_v36 = vpop.f32.mrb[37].mxu1 }
 0x47d   :  { %v4101_v62 = vadd.f32 %v4100_v36, %v4099_v61  ;;  %v2975_v50 = vpop.f32.mrb[38].mxu0  ;;  %v4102_v54 = vpop.f32.mrb[38].mxu1  ;;  %v4011_v20 = vpack.c.bf16 %v2973_v19, %v2971_v32  ;;  %v3322_v32 = vld [vmem:[#allocation2 + $0x250] sm:$0xff] }
 0x47e   :  { %3881 = vst.msk [vmem:[#allocation3 + $0xbc] sm:$0xf] %vm3850_vm2, %v4006_v12  ;;  %v2977_v4 = vpop.f32.mrb[39].mxu0  ;;  %v4103_v56 = vpop.f32.mrb[39].mxu1 }
 0x47f   :  { %v3385_v41 = vadd.f32 %v4101_v62, %v3304_v10  ;;  %v4104_v27 = vadd.f32 %v4103_v56, %v4102_v54  ;;  %3886 = vst [vmem:[#allocation3 + $0xd8] sm:$0xff] %v4011_v20  ;;  %v4013_v63 = vpack.c.bf16 %v2977_v4, %v2975_v50  ;;  %v3325_v50 = vld [vmem:[#allocation2 + $0x268] sm:$0xff] }
 0x480   :  { %v3545_v17 = vld [vmem:[#allocation2 + $0x190] sm:$0xff] }
 0x481   :  { %v4008_v35 = vpack.c.bf16 %v3545_v17, %v3545_v17  ;;  %3467 = vst.msk [vmem:[#allocation2 + $0x1c0] sm:$0xff] %vm3168_vm1, %v3385_v41  ;;  %v3388_v13 = vadd.f32 %v4104_v27, %v3307_v24  ;;  %3888 = vst [vmem:[#allocation3 + $0xe4] sm:$0xff] %v4013_v63 }
 0x483   :  { %v3548_v57 = vld [vmem:[#allocation2 + $0x1a8] sm:$0xff]  ;;  %3883 = vst.msk [vmem:[#allocation3 + $0xc8] sm:$0xf] %vm3850_vm2, %v4008_v35  ;;  %v2981_v1 = vpop.f32.mrb[40].mxu0  ;;  %v4105_v58 = vpop.f32.mrb[40].mxu1 }
 0x484   :  { %v4010_v47 = vpack.c.bf16 %v3548_v57, %v3548_v57  ;;  %3470 = vst.msk [vmem:[#allocation2 + $0x1d8] sm:$0xff] %vm3168_vm1, %v3388_v13  ;;  %v2983_v44 = vpop.f32.mrb[41].mxu0  ;;  %v4106_v5 = vpop.f32.mrb[41].mxu1 }
 0x485   :  { %v4107_v46 = vadd.f32 %v4106_v5, %v4105_v58  ;;  %v2985_v60 = vpop.f32.mrb[42].mxu0  ;;  %v4108_v16 = vpop.f32.mrb[42].mxu1  ;;  %v4015_v40 = vpack.c.bf16 %v2983_v44, %v2981_v1  ;;  %v3328_v1 = vld [vmem:[#allocation2 + $0x280] sm:$0xff] }
 0x486   :  { %3885 = vst.msk [vmem:[#allocation3 + $0xd4] sm:$0xf] %vm3850_vm2, %v4010_v47  ;;  %v2987_v8 = vpop.f32.mrb[43].mxu0  ;;  %v4109_v26 = vpop.f32.mrb[43].mxu1 }
 0x487   :  { %v3391_v31 = vadd.f32 %v4107_v46, %v3310_v55  ;;  %v4110_v0 = vadd.f32 %v4109_v26, %v4108_v16  ;;  %3890 = vst [vmem:[#allocation3 + $0xf0] sm:$0xff] %v4015_v40  ;;  %v4017_v3 = vpack.c.bf16 %v2987_v8, %v2985_v60 }
 0x488   :  { %v3551_v7 = vld [vmem:[#allocation2 + $0x1c0] sm:$0xff] }
 0x489   :  { %v4012_v49 = vpack.c.bf16 %v3551_v7, %v3551_v7  ;;  %3473 = vst.msk [vmem:[#allocation2 + $0x1f0] sm:$0xff] %vm3168_vm1, %v3391_v31  ;;  %v3394_v28 = vadd.f32 %v4110_v0, %v3313_v14  ;;  %3892 = vst [vmem:[#allocation3 + $0xfc] sm:$0xff] %v4017_v3 }
 0x48b   :  { %v3554_v9 = vld [vmem:[#allocation2 + $0x1d8] sm:$0xff]  ;;  %3887 = vst.msk [vmem:[#allocation3 + $0xe0] sm:$0xf] %vm3850_vm2, %v4012_v49  ;;  %v2991_v2 = vpop.f32.mrb[44].mxu0  ;;  %v4111_v6 = vpop.f32.mrb[44].mxu1 }
 0x48c   :  { %v4014_v59 = vpack.c.bf16 %v3554_v9, %v3554_v9  ;;  %3476 = vst.msk [vmem:[#allocation2 + $0x208] sm:$0xff] %vm3168_vm1, %v3394_v28  ;;  %v2993_v33 = vpop.f32.mrb[45].mxu0  ;;  %v4112_v38 = vpop.f32.mrb[45].mxu1 }
 0x48d   :  { %v4113_v25 = vadd.f32 %v4112_v38, %v4111_v6  ;;  %v2995_v39 = vpop.f32.mrb[46].mxu0  ;;  %v4114_v21 = vpop.f32.mrb[46].mxu1  ;;  %v4019_v30 = vpack.c.bf16 %v2993_v33, %v2991_v2 }
 0x48e   :  { %3889 = vst.msk [vmem:[#allocation3 + $0xec] sm:$0xf] %vm3850_vm2, %v4014_v59  ;;  %v2997_v37 = vpop.f32.mrb[47].mxu0  ;;  %v4115_v43 = vpop.f32.mrb[47].mxu1 }
 0x48f   :  { %v3397_v51 = vadd.f32 %v4113_v25, %v3316_v18  ;;  %v4116_v34 = vadd.f32 %v4115_v43, %v4114_v21  ;;  %3894 = vst [vmem:[#allocation3 + $0x108] sm:$0xff] %v4019_v30  ;;  %v4021_v53 = vpack.c.bf16 %v2997_v37, %v2995_v39 }
 0x490   :  { %v3557_v22 = vld [vmem:[#allocation2 + $0x1f0] sm:$0xff] }
 0x491   :  { %v4016_v15 = vpack.c.bf16 %v3557_v22, %v3557_v22  ;;  %3479 = vst.msk [vmem:[#allocation2 + $0x220] sm:$0xff] %vm3168_vm1, %v3397_v51  ;;  %v3400_v11 = vadd.f32 %v4116_v34, %v3319_v42  ;;  %3896 = vst [vmem:[#allocation3 + $0x114] sm:$0xff] %v4021_v53 }
 0x493   :  { %v3560_v48 = vld [vmem:[#allocation2 + $0x208] sm:$0xff]  ;;  %3891 = vst.msk [vmem:[#allocation3 + $0xf8] sm:$0xf] %vm3850_vm2, %v4016_v15  ;;  %v3001_v45 = vpop.f32.mrb[48].mxu0  ;;  %v4117_v23 = vpop.f32.mrb[48].mxu1 }
 0x494   :  { %v4018_v29 = vpack.c.bf16 %v3560_v48, %v3560_v48  ;;  %3482 = vst.msk [vmem:[#allocation2 + $0x238] sm:$0xff] %vm3168_vm1, %v3400_v11  ;;  %v3003_v52 = vpop.f32.mrb[49].mxu0  ;;  %v4118_v12 = vpop.f32.mrb[49].mxu1 }
 0x495   :  { %v4119_v61 = vadd.f32 %v4118_v12, %v4117_v23  ;;  %v3005_v19 = vpop.f32.mrb[50].mxu0  ;;  %v4120_v36 = vpop.f32.mrb[50].mxu1  ;;  %v4023_v54 = vpack.c.bf16 %v3003_v52, %v3001_v45 }
 0x496   :  { %3893 = vst.msk [vmem:[#allocation3 + $0x104] sm:$0xf] %vm3850_vm2, %v4018_v29  ;;  %v3007_v10 = vpop.f32.mrb[51].mxu0  ;;  %v4121_v62 = vpop.f32.mrb[51].mxu1 }
 0x497   :  { %v3403_v4 = vadd.f32 %v4119_v61, %v3322_v32  ;;  %v4122_v56 = vadd.f32 %v4121_v62, %v4120_v36  ;;  %3898 = vst [vmem:[#allocation3 + $0x120] sm:$0xff] %v4023_v54  ;;  %v4025_v41 = vpack.c.bf16 %v3007_v10, %v3005_v19 }
 0x498   :  { %v3563_v24 = vld [vmem:[#allocation2 + $0x220] sm:$0xff] }
 0x499   :  { %v4020_v20 = vpack.c.bf16 %v3563_v24, %v3563_v24  ;;  %3485 = vst.msk [vmem:[#allocation2 + $0x250] sm:$0xff] %vm3168_vm1, %v3403_v4  ;;  %v3406_v27 = vadd.f32 %v4122_v56, %v3325_v50  ;;  %3900 = vst [vmem:[#allocation3 + $0x12c] sm:$0xff] %v4025_v41 }
 0x49b   :  { %v3566_v17 = vld [vmem:[#allocation2 + $0x238] sm:$0xff]  ;;  %3895 = vst.msk [vmem:[#allocation3 + $0x110] sm:$0xf] %vm3850_vm2, %v4020_v20  ;;  %v3011_v63 = vpop.f32.mrb[52].mxu0  ;;  %v4123_v13 = vpop.f32.mrb[52].mxu1 }
 0x49c   :  { %v4022_v35 = vpack.c.bf16 %v3566_v17, %v3566_v17  ;;  %3488 = vst.msk [vmem:[#allocation2 + $0x268] sm:$0xff] %vm3168_vm1, %v3406_v27  ;;  %v3013_v57 = vpop.f32.mrb[53].mxu0  ;;  %v4124_v47 = vpop.f32.mrb[53].mxu1 }
 0x49d   :  { %v4125_v58 = vadd.f32 %v4124_v47, %v4123_v13  ;;  %v3015_v44 = vpop.f32.mrb[54].mxu0  ;;  %v4126_v5 = vpop.f32.mrb[54].mxu1  ;;  %v4027_v60 = vpack.c.bf16 %v3013_v57, %v3011_v63 }
 0x49e   :  { %3897 = vst.msk [vmem:[#allocation3 + $0x11c] sm:$0xf] %vm3850_vm2, %v4022_v35  ;;  %v3016_v55 = vpop.f32.mrb[55].mxu0  ;;  %v4127_v46 = vpop.f32.mrb[55].mxu1 }
 0x49f   :  { %v3409_v16 = vadd.f32 %v4125_v58, %v3328_v1  ;;  %3902 = vst [vmem:[#allocation3 + $0x138] sm:$0xff] %v4027_v60 }
 0x4a0   :  { %v3569_v8 = vld [vmem:[#allocation2 + $0x250] sm:$0xff] }
 0x4a1   :  { %v4024_v26 = vpack.c.bf16 %v3569_v8, %v3569_v8  ;;  %3491 = vst.msk [vmem:[#allocation2 + $0x280] sm:$0xff] %vm3168_vm1, %v3409_v16 }
 0x4a3   :  { %v3572_v14 = vld [vmem:[#allocation2 + $0x268] sm:$0xff]  ;;  %3899 = vst.msk [vmem:[#allocation3 + $0x128] sm:$0xf] %vm3850_vm2, %v4024_v26 }
 0x4a4   :  { %v4026_v40 = vpack.c.bf16 %v3572_v14, %v3572_v14 }
 0x4a6   :  { %3901 = vst.msk [vmem:[#allocation3 + $0x134] sm:$0xf] %vm3850_vm2, %v4026_v40 }
 0x4a8   :  { %v3575_v31 = vld [vmem:[#allocation2 + $0x280] sm:$0xff] }
 0x4a9   :  { %v4028_v0 = vpack.c.bf16 %v3575_v31, %v3575_v31 }
 0x4ab   :  { %3903 = vst.msk [vmem:[#allocation3 + $0x140] sm:$0xf] %vm3850_vm2, %v4028_v0 }
 0x4ac   :  { %4760 = shalt.err (!%p4757_p4)
}
 0x4ad   :  { %s4761_s13 = scalar_lea.hbm %s7465_s6, 5184 }
 0x4ae   :  { %p4762_p5 = scmp.ne.s32.totalorder %s7465_s6, %s4761_s13  ;;  %p4765_p6 = scmp.lt.u32.totalorder %s4761_s13, %s7465_s6 }
 0x4b0   :  { %p4767_p7 = pnand %p4765_p6, %p4762_p5 }
 0x4b2   :  { %4770 = shalt.err (!%p4767_p7)
}
 0x4b3   :  { %s4778_s3 = smov 192   ;;  %s4779_s17 = smov 12  }
 0x4b4   :  { %3915 = dma.vmem_to_hbm [thread:$0]  %s3910_s10, 5184, %s7465_s6, [#allocation4], %s4778_s3, %s4778_s3, %s4779_s17  }
 0x4b5   :  { %4771 = dma.done.wait [#allocation4], 5184  }
 0x4b6   :  { %4772 = vsyncadd [#allocation4], 4294962112 }
 0x4b7   :  { %3919 = vsyncpa [#allocation4], 1 }

</bundles_post_ra>
